<compile_context>
chip_gen: v7x
topology: tpu7x:2x2x1
jax: 0.10.0
libtpu: 0.0.40
codegen_flags: <defaults>
</compile_context>

<pallas_src>
import functools

import jax
import jax.numpy as jnp
from jax.experimental import pallas as pl
from jax.experimental.pallas import tpu as pltpu

_LANE = 128
# In-kernel gather is used when the one-hot [V, TB] tiles / resident table stay cheap.
_MAX_INKERNEL_VOCAB = 2048
_MAX_INKERNEL_TABLE_BYTES = 2 * 1024 * 1024


# ---------------------------------------------------------------------------
# Kernels
# ---------------------------------------------------------------------------
def _fm_gather_kernel(idx_ref, val_ref, tab_ref, bias_ref, out_ref):
    """FM with the embedding gather done in-kernel (small vocabulary path).

    idx_ref  : VMEM [F, TB] int32  feature ids                (batch on lanes)
    val_ref  : VMEM [F, TB] f32    feature values
    tab_ref  : VMEM [K, V]  f32    embedding table (transposed), VMEM-resident
    bias_ref : VMEM [V, 1]  f32    per-feature bias column,      VMEM-resident
    out_ref  : VMEM [1, TB] f32    prediction (lane-dense store)
    """
    F, TB = idx_ref.shape
    K, V = tab_ref.shape

    tab = tab_ref[...]                                           # [K, V]
    bias = bias_ref[...]                                         # [V, 1]
    # Hoisted out of the field loop (JAX does not CSE broadcast_in_dim).
    row_ids = jax.lax.broadcasted_iota(jnp.int32, (V, TB), 0)    # [V, TB]

    s = jnp.zeros((K, TB), jnp.float32)    # sum_f x_f
    sq = jnp.zeros((1, TB), jnp.float32)   # sum_{f,k} x_f^2
    fb = jnp.zeros((1, TB), jnp.float32)   # sum_f bias[id_f] * v_f

    # Static unroll over fields (F is small); only the accumulators stay live,
    # no [F, K, TB] intermediate is ever materialized.
    for f in range(F):
        ids = idx_ref[f:f + 1, :]                                # [1, TB]
        val = val_ref[f:f + 1, :]                                # [1, TB]
        w = jnp.where(row_ids == ids, val, 0.0)                  # weighted one-hot [V, TB]
        # gather * value via MXU: x[k, b] = table[id_f[b], k] * v_f[b]
        x = jnp.dot(tab, w, preferred_element_type=jnp.float32,
                    precision=jax.lax.Precision.HIGHEST)         # [K, TB]
        s = s + x
        sq = sq + jnp.sum(x * x, axis=0, keepdims=True)          # [1, TB]
        fb = fb + jnp.sum(w * bias, axis=0, keepdims=True)       # [1, TB]

    fm = 0.5 * (jnp.sum(s * s, axis=0, keepdims=True) - sq)      # [1, TB]
    # TODO(synk): FM_layers (BatchNorm1d / Dropout) are identity in eval mode;
    # training-mode BatchNorm is not implemented.
    out_ref[...] = fm + fb


def _fm_pregathered_kernel(emb_ref, val_ref, fbias_ref, out_ref):
    """FM on pre-gathered embeddings (large-vocabulary fallback).

    emb_ref  : VMEM [F, TB, K] bf16  gathered embeddings (no wrapper transpose)
    val_ref  : VMEM [TB, F]    f32   feature values
    fbias_ref: VMEM [TB, F]    f32   gathered per-feature biases
    out_ref  : VMEM [TB, 1]    f32
    """
    F, TB, K = emb_ref.shape
    vals = val_ref[...]                                          # [TB, F]

    s = jnp.zeros((TB, K), jnp.float32)
    sq = jnp.zeros((TB, 1), jnp.float32)
    # Per-field accumulation: only [TB, K] accumulators stay live.
    for f in range(F):
        x = emb_ref[f].astype(jnp.float32) * vals[:, f:f + 1]    # [TB, K]
        s = s + x
        sq = sq + jnp.sum(x * x, axis=1, keepdims=True)          # [TB, 1]

    fm = 0.5 * (jnp.sum(s * s, axis=1, keepdims=True) - sq)      # [TB, 1]
    fb = jnp.sum(fbias_ref[...] * vals, axis=1, keepdims=True)   # [TB, 1]
    # TODO(synk): FM_layers (BatchNorm1d / Dropout) identity (eval mode only).
    out_ref[...] = fm + fb


# ---------------------------------------------------------------------------
# Wrappers
# ---------------------------------------------------------------------------
def _round_up(x, m):
    return ((x + m - 1) // m) * m


def _pick_tb(n, tb_max):
    """Batch tile: multiple of 128, up to tb_max, but keep >= 2 grid steps when
    the batch allows it so the 'parallel' axis can split across v7x's 2 TCs."""
    n128 = _round_up(max(n, 1), _LANE)
    if n128 <= _LANE:
        return _LANE
    two_way = _round_up((n128 + 1) // 2, _LANE)
    return max(_LANE, min(_round_up(tb_max, _LANE), two_way))


def _compiler_params(est_vmem_bytes):
    kwargs = dict(dimension_semantics=("parallel",))
    # Only raise the scoped-VMEM limit when the footprint needs it (defaults are
    # ~16 MiB on v5e / 32 MiB on v6e, v7x); stay well under v7x's 64 MiB physical.
    if est_vmem_bytes > 12 * 1024 * 1024:
        kwargs["vmem_limit_bytes"] = int(min(48 * 1024 * 1024,
                                             max(2 * est_vmem_bytes,
                                                 32 * 1024 * 1024)))
    return pltpu.CompilerParams(**kwargs)


def _fm_out_batched(embed_table, bias_table, global_bias, features,
                    feature_values, *, tb_max=1024, gather_in_kernel=None):
    """FM score for a stacked batch. features/feature_values: [N, F] -> [N]."""
    N, F = features.shape
    V, K = embed_table.shape

    tb = _pick_tb(N, tb_max)
    n_pad = pl.cdiv(N, tb) * tb
    pad = n_pad - N
    if pad:
        # Padding rows use feature id 0 with value 0 -> contribute exactly 0.
        features = jnp.pad(features, ((0, pad), (0, 0)))
        feature_values = jnp.pad(feature_values, ((0, pad), (0, 0)))

    features = features.astype(jnp.int32)
    vals = feature_values.astype(jnp.float32)
    grid = (n_pad // tb,)

    if gather_in_kernel is None:
        gather_in_kernel = (V <= _MAX_INKERNEL_VOCAB and
                            V * K * 4 <= _MAX_INKERNEL_TABLE_BYTES)

    if gather_in_kernel:
        # --- Path 1: gather inside the kernel (HBM traffic = ids + values) ---
        idx_t = features.T                                        # [F, n_pad]
        vals_t = vals.T                                           # [F, n_pad]
        tab_t = embed_table.astype(jnp.float32).T                 # [K, V] resident
        bias_c = bias_table.astype(jnp.float32).reshape(V, 1)     # [V, 1] resident

        est = (2 * (2 * F * tb * 4 + tb * 4) + K * V * 4
               + (K + 3 * V + 8) * tb * 4)
        out = pl.pallas_call(
            _fm_gather_kernel,
            out_shape=jax.ShapeDtypeStruct((1, n_pad), jnp.float32),
            grid=grid,
            in_specs=[
                pl.BlockSpec((F, tb), lambda i: (0, i)),          # feature ids
                pl.BlockSpec((F, tb), lambda i: (0, i)),          # feature values
                pl.BlockSpec((K, V), lambda i: (0, 0)),           # table (resident)
                pl.BlockSpec((V, 1), lambda i: (0, 0)),           # biases (resident)
            ],
            out_specs=pl.BlockSpec((1, tb), lambda i: (0, i)),
            compiler_params=_compiler_params(est),
        )(idx_t, vals_t, tab_t, bias_c)
        pred = out[0, :N]
    else:
        # --- Path 2: XLA gather, bf16, [F, N, K] layout -> no HBM transpose ---
        emb_g = jnp.take(embed_table.astype(jnp.bfloat16),
                         features.T, axis=0)                      # [F, n_pad, K]
        fbias_g = jnp.take(bias_table[:, 0].astype(jnp.float32),
                           features, axis=0)                      # [n_pad, F]

        est = (2 * (F * tb * K * 2 + 2 * tb * F * 4 + tb * 4)
               + (2 * K + 8) * tb * 4)
        out = pl.pallas_call(
            _fm_pregathered_kernel,
            out_shape=jax.ShapeDtypeStruct((n_pad, 1), jnp.float32),
            grid=grid,
            in_specs=[
                pl.BlockSpec((F, tb, K), lambda i: (0, i, 0)),    # embeddings
                pl.BlockSpec((tb, F), lambda i: (i, 0)),          # feature values
                pl.BlockSpec((tb, F), lambda i: (i, 0)),          # feature biases
            ],
            out_specs=pl.BlockSpec((tb, 1), lambda i: (i, 0)),
            compiler_params=_compiler_params(est),
        )(emb_g, vals, fbias_g)
        pred = out[:N, 0]

    # Global bias added in the cheap JAX epilogue (kept out of the kernel).
    return pred + global_bias.reshape(()).astype(jnp.float32)


@functools.partial(jax.jit, static_argnames=("tb_max", "gather_in_kernel"))
def pair_fm_forward(params, features_i, feature_values_i, features_j,
                    feature_values_j, *, tb_max=1024, gather_in_kernel=None):
    """PairFM.forward: returns (pred_i, pred_j), each shape [B]."""
    embed_table, bias_table, global_bias = params
    B = features_i.shape[0]
    # Fuse the i-side and j-side into a single pallas_call (batch = 2B).
    features = jnp.concatenate([features_i, features_j], axis=0)
    values = jnp.concatenate([feature_values_i, feature_values_j], axis=0)
    preds = _fm_out_batched(embed_table, bias_table, global_bias, features,
                            values, tb_max=tb_max,
                            gather_in_kernel=gather_in_kernel)
    return preds[:B], preds[B:]


def init_params(key, num_features, num_factors):
    # nn.init.normal_(embeddings.weight, std=0.01); biases zero; bias_ = 0.0
    (k_emb,) = jax.random.split(key, 1)
    embed_table = 0.01 * jax.random.normal(k_emb, (num_features, num_factors),
                                           dtype=jnp.float32)
    bias_table = jnp.zeros((num_features, 1), dtype=jnp.float32)
    global_bias = jnp.zeros((1,), dtype=jnp.float32)
    return embed_table, bias_table, global_bias


if __name__ == "__main__":
    num_features = 64     # feature-id vocabulary
    num_factors = 32      # embedding dim K
    B = 8                 # batch size
    F = 8                 # nonzero fields per example

    key = jax.random.PRNGKey(0)
    k_emb, k_b, k_fi, k_vi, k_fj, k_vj = jax.random.split(key, 6)

    embed_table, bias_table, global_bias = init_params(k_emb, num_features,
                                                       num_factors)
    # Non-trivial bias parameters so the bias terms are actually exercised
    # (the module inits them to zero, but forward must handle learned values).
    bias_table = 0.05 * jax.random.normal(k_b, (num_features, 1),
                                          dtype=jnp.float32)
    global_bias = jnp.array([0.1], dtype=jnp.float32)
    params = (embed_table, bias_table, global_bias)

    features_i = jax.random.randint(k_fi, (B, F), 0, num_features,
                                    dtype=jnp.int32)
    feature_values_i = jax.random.uniform(k_vi, (B, F), dtype=jnp.float32)
    features_j = jax.random.randint(k_fj, (B, F), 0, num_features,
                                    dtype=jnp.int32)
    feature_values_j = jax.random.uniform(k_vj, (B, F), dtype=jnp.float32)

    # Plain-JAX reference (matches the PyTorch module in eval mode).
    def ref_out(features, vals):
        emb = jnp.take(params[0], features, axis=0) * vals[:, :, None]
        fm = 0.5 * (jnp.sum(emb, axis=1) ** 2 - jnp.sum(emb ** 2, axis=1))
        fb = jnp.sum(jnp.take(params[1][:, 0], features, axis=0) * vals, axis=1)
        return jnp.sum(fm, axis=1) + fb + params[2][0]

    ref_i = ref_out(features_i, feature_values_i)
    ref_j = ref_out(features_j, feature_values_j)

    # Path 1: in-kernel gather (small vocabulary) -- f32 path, tight tolerance.
    pred_i, pred_j = pair_fm_forward(params, features_i, feature_values_i,
                                     features_j, feature_values_j)
    jax.block_until_ready((pred_i, pred_j))
    assert jnp.allclose(pred_i, ref_i, atol=5e-4, rtol=1e-3), (pred_i, ref_i)
    assert jnp.allclose(pred_j, ref_j, atol=5e-4, rtol=1e-3), (pred_j, ref_j)

    # Path 2: large-vocab fallback (bf16 pre-gathered embeddings) -- looser tol
    # (expected bf16 precision change, not an error).
    pred_i2, pred_j2 = pair_fm_forward(params, features_i, feature_values_i,
                                       features_j, feature_values_j,
                                       gather_in_kernel=False)
    jax.block_until_ready((pred_i2, pred_j2))
    assert jnp.allclose(pred_i2, ref_i, atol=2e-3, rtol=2e-2), (pred_i2, ref_i)
    assert jnp.allclose(pred_j2, ref_j, atol=2e-3, rtol=2e-2), (pred_j2, ref_j)

    print("KERNEL_OK")
</pallas_src>

<mosaic_0001>
module attributes {stable_mosaic.version = 11 : i64} {
  func.func @_fm_gather_kernel(%arg0: i32, %arg1: memref<8x128xi32, #tpu.memory_space<vmem>>, %arg2: memref<8x128xf32, #tpu.memory_space<vmem>>, %arg3: memref<32x64xf32, #tpu.memory_space<vmem>>, %arg4: memref<64x1xf32, #tpu.memory_space<vmem>>, %arg5: memref<1x128xf32, #tpu.memory_space<vmem>>) attributes {dimension_semantics = [#tpu.dimension_semantics<parallel>], iteration_bounds = array<i64: 1>, scalar_prefetch = 0 : i64, scratch_operands = 0 : i64, tpu.core_type = #tpu.core_type<tc>, window_params = [{transform_indices = @transform_0, window_bounds = array<i64: 8, 128>}, {transform_indices = @transform_1, window_bounds = array<i64: 8, 128>}, {pipeline_mode = #tpu.pipeline_mode<synchronous>, transform_indices = @transform_2, window_bounds = array<i64: 32, 64>}, {pipeline_mode = #tpu.pipeline_mode<synchronous>, transform_indices = @transform_3, window_bounds = array<i64: 64, 1>}, {transform_indices = @transform_4, window_bounds = array<i64: 1, 128>}]} {
    %c0 = arith.constant 0 : index
    %c0_0 = arith.constant 0 : index
    %0 = vector.load %arg3[%c0, %c0_0] : memref<32x64xf32, #tpu.memory_space<vmem>>, vector<32x64xf32>
    %c0_1 = arith.constant 0 : index
    %c0_2 = arith.constant 0 : index
    %1 = vector.load %arg4[%c0_1, %c0_2] : memref<64x1xf32, #tpu.memory_space<vmem>>, vector<64x1xf32>
    %2 = tpu.iota {dimensions = array<i32: 0>} : vector<64x128xi32>
    %cst = arith.constant 0.000000e+00 : f32
    %3 = vector.broadcast %cst : f32 to vector<32x128xf32>
    %cst_3 = arith.constant 0.000000e+00 : f32
    %4 = vector.broadcast %cst_3 : f32 to vector<1x128xf32>
    %cst_4 = arith.constant 0.000000e+00 : f32
    %5 = vector.broadcast %cst_4 : f32 to vector<1x128xf32>
    %c0_5 = arith.constant 0 : index
    %c0_6 = arith.constant 0 : index
    %6 = vector.load %arg1[%c0_5, %c0_6] : memref<8x128xi32, #tpu.memory_space<vmem>>, vector<1x128xi32>
    %c0_7 = arith.constant 0 : index
    %c0_8 = arith.constant 0 : index
    %7 = vector.load %arg2[%c0_7, %c0_8] : memref<8x128xf32, #tpu.memory_space<vmem>>, vector<1x128xf32>
    %8 = vector.broadcast %6 : vector<1x128xi32> to vector<64x128xi32>
    %9 = arith.cmpi eq, %2, %8 : vector<64x128xi32>
    %cst_9 = arith.constant 0.000000e+00 : f32
    %10 = vector.shape_cast %7 : vector<1x128xf32> to vector<1x128xf32>
    %11 = vector.broadcast %10 : vector<1x128xf32> to vector<64x128xf32>
    %12 = vector.broadcast %cst_9 : f32 to vector<64x128xf32>
    %13 = arith.select %9, %11, %12 : vector<64x128xi1>, vector<64x128xf32>
    %cst_10 = arith.constant dense<0.000000e+00> : vector<32x128xf32>
    %14 = tpu.matmul %0, %13, %cst_10 {dimension_numbers = #tpu.dot_dimension_numbers<[1], [0], [0], [1], [0, 0, 1, 1], [], []>, precision = #tpu.contract_precision<fp32>} : vector<32x64xf32>, vector<64x128xf32>, vector<32x128xf32> -> vector<32x128xf32>
    %15 = arith.addf %3, %14 : vector<32x128xf32>
    %16 = arith.mulf %14, %14 : vector<32x128xf32>
    %cst_11 = arith.constant dense<0.000000e+00> : vector<128xf32>
    %17 = vector.multi_reduction <add>, %16, %cst_11 [0] : vector<32x128xf32> to vector<128xf32>
    %18 = vector.shape_cast %17 : vector<128xf32> to vector<1x128xf32>
    %19 = arith.addf %4, %18 : vector<1x128xf32>
    %20 = vector.broadcast %1 : vector<64x1xf32> to vector<64x128xf32>
    %21 = arith.mulf %13, %20 : vector<64x128xf32>
    %cst_12 = arith.constant dense<0.000000e+00> : vector<128xf32>
    %22 = vector.multi_reduction <add>, %21, %cst_12 [0] : vector<64x128xf32> to vector<128xf32>
    %23 = vector.shape_cast %22 : vector<128xf32> to vector<1x128xf32>
    %24 = arith.addf %5, %23 : vector<1x128xf32>
    %c1 = arith.constant 1 : index
    %c0_13 = arith.constant 0 : index
    %25 = vector.load %arg1[%c1, %c0_13] : memref<8x128xi32, #tpu.memory_space<vmem>>, vector<1x128xi32>
    %c1_14 = arith.constant 1 : index
    %c0_15 = arith.constant 0 : index
    %26 = vector.load %arg2[%c1_14, %c0_15] : memref<8x128xf32, #tpu.memory_space<vmem>>, vector<1x128xf32>
    %27 = vector.broadcast %25 : vector<1x128xi32> to vector<64x128xi32>
    %28 = arith.cmpi eq, %2, %27 : vector<64x128xi32>
    %cst_16 = arith.constant 0.000000e+00 : f32
    %29 = vector.shape_cast %26 : vector<1x128xf32> to vector<1x128xf32>
    %30 = vector.broadcast %29 : vector<1x128xf32> to vector<64x128xf32>
    %31 = vector.broadcast %cst_16 : f32 to vector<64x128xf32>
    %32 = arith.select %28, %30, %31 : vector<64x128xi1>, vector<64x128xf32>
    %cst_17 = arith.constant dense<0.000000e+00> : vector<32x128xf32>
    %33 = tpu.matmul %0, %32, %cst_17 {dimension_numbers = #tpu.dot_dimension_numbers<[1], [0], [0], [1], [0, 0, 1, 1], [], []>, precision = #tpu.contract_precision<fp32>} : vector<32x64xf32>, vector<64x128xf32>, vector<32x128xf32> -> vector<32x128xf32>
    %34 = arith.addf %15, %33 : vector<32x128xf32>
    %35 = arith.mulf %33, %33 : vector<32x128xf32>
    %cst_18 = arith.constant dense<0.000000e+00> : vector<128xf32>
    %36 = vector.multi_reduction <add>, %35, %cst_18 [0] : vector<32x128xf32> to vector<128xf32>
    %37 = vector.shape_cast %36 : vector<128xf32> to vector<1x128xf32>
    %38 = arith.addf %19, %37 : vector<1x128xf32>
    %39 = vector.broadcast %1 : vector<64x1xf32> to vector<64x128xf32>
    %40 = arith.mulf %32, %39 : vector<64x128xf32>
    %cst_19 = arith.constant dense<0.000000e+00> : vector<128xf32>
    %41 = vector.multi_reduction <add>, %40, %cst_19 [0] : vector<64x128xf32> to vector<128xf32>
    %42 = vector.shape_cast %41 : vector<128xf32> to vector<1x128xf32>
    %43 = arith.addf %24, %42 : vector<1x128xf32>
    %c2 = arith.constant 2 : index
    %c0_20 = arith.constant 0 : index
    %44 = vector.load %arg1[%c2, %c0_20] : memref<8x128xi32, #tpu.memory_space<vmem>>, vector<1x128xi32>
    %c2_21 = arith.constant 2 : index
    %c0_22 = arith.constant 0 : index
    %45 = vector.load %arg2[%c2_21, %c0_22] : memref<8x128xf32, #tpu.memory_space<vmem>>, vector<1x128xf32>
    %46 = vector.broadcast %44 : vector<1x128xi32> to vector<64x128xi32>
    %47 = arith.cmpi eq, %2, %46 : vector<64x128xi32>
    %cst_23 = arith.constant 0.000000e+00 : f32
    %48 = vector.shape_cast %45 : vector<1x128xf32> to vector<1x128xf32>
    %49 = vector.broadcast %48 : vector<1x128xf32> to vector<64x128xf32>
    %50 = vector.broadcast %cst_23 : f32 to vector<64x128xf32>
    %51 = arith.select %47, %49, %50 : vector<64x128xi1>, vector<64x128xf32>
    %cst_24 = arith.constant dense<0.000000e+00> : vector<32x128xf32>
    %52 = tpu.matmul %0, %51, %cst_24 {dimension_numbers = #tpu.dot_dimension_numbers<[1], [0], [0], [1], [0, 0, 1, 1], [], []>, precision = #tpu.contract_precision<fp32>} : vector<32x64xf32>, vector<64x128xf32>, vector<32x128xf32> -> vector<32x128xf32>
    %53 = arith.addf %34, %52 : vector<32x128xf32>
    %54 = arith.mulf %52, %52 : vector<32x128xf32>
    %cst_25 = arith.constant dense<0.000000e+00> : vector<128xf32>
    %55 = vector.multi_reduction <add>, %54, %cst_25 [0] : vector<32x128xf32> to vector<128xf32>
    %56 = vector.shape_cast %55 : vector<128xf32> to vector<1x128xf32>
    %57 = arith.addf %38, %56 : vector<1x128xf32>
    %58 = vector.broadcast %1 : vector<64x1xf32> to vector<64x128xf32>
    %59 = arith.mulf %51, %58 : vector<64x128xf32>
    %cst_26 = arith.constant dense<0.000000e+00> : vector<128xf32>
    %60 = vector.multi_reduction <add>, %59, %cst_26 [0] : vector<64x128xf32> to vector<128xf32>
    %61 = vector.shape_cast %60 : vector<128xf32> to vector<1x128xf32>
    %62 = arith.addf %43, %61 : vector<1x128xf32>
    %c3 = arith.constant 3 : index
    %c0_27 = arith.constant 0 : index
    %63 = vector.load %arg1[%c3, %c0_27] : memref<8x128xi32, #tpu.memory_space<vmem>>, vector<1x128xi32>
    %c3_28 = arith.constant 3 : index
    %c0_29 = arith.constant 0 : index
    %64 = vector.load %arg2[%c3_28, %c0_29] : memref<8x128xf32, #tpu.memory_space<vmem>>, vector<1x128xf32>
    %65 = vector.broadcast %63 : vector<1x128xi32> to vector<64x128xi32>
    %66 = arith.cmpi eq, %2, %65 : vector<64x128xi32>
    %cst_30 = arith.constant 0.000000e+00 : f32
    %67 = vector.shape_cast %64 : vector<1x128xf32> to vector<1x128xf32>
    %68 = vector.broadcast %67 : vector<1x128xf32> to vector<64x128xf32>
    %69 = vector.broadcast %cst_30 : f32 to vector<64x128xf32>
    %70 = arith.select %66, %68, %69 : vector<64x128xi1>, vector<64x128xf32>
    %cst_31 = arith.constant dense<0.000000e+00> : vector<32x128xf32>
    %71 = tpu.matmul %0, %70, %cst_31 {dimension_numbers = #tpu.dot_dimension_numbers<[1], [0], [0], [1], [0, 0, 1, 1], [], []>, precision = #tpu.contract_precision<fp32>} : vector<32x64xf32>, vector<64x128xf32>, vector<32x128xf32> -> vector<32x128xf32>
    %72 = arith.addf %53, %71 : vector<32x128xf32>
    %73 = arith.mulf %71, %71 : vector<32x128xf32>
    %cst_32 = arith.constant dense<0.000000e+00> : vector<128xf32>
    %74 = vector.multi_reduction <add>, %73, %cst_32 [0] : vector<32x128xf32> to vector<128xf32>
    %75 = vector.shape_cast %74 : vector<128xf32> to vector<1x128xf32>
    %76 = arith.addf %57, %75 : vector<1x128xf32>
    %77 = vector.broadcast %1 : vector<64x1xf32> to vector<64x128xf32>
    %78 = arith.mulf %70, %77 : vector<64x128xf32>
    %cst_33 = arith.constant dense<0.000000e+00> : vector<128xf32>
    %79 = vector.multi_reduction <add>, %78, %cst_33 [0] : vector<64x128xf32> to vector<128xf32>
    %80 = vector.shape_cast %79 : vector<128xf32> to vector<1x128xf32>
    %81 = arith.addf %62, %80 : vector<1x128xf32>
    %c4 = arith.constant 4 : index
    %c0_34 = arith.constant 0 : index
    %82 = vector.load %arg1[%c4, %c0_34] : memref<8x128xi32, #tpu.memory_space<vmem>>, vector<1x128xi32>
    %c4_35 = arith.constant 4 : index
    %c0_36 = arith.constant 0 : index
    %83 = vector.load %arg2[%c4_35, %c0_36] : memref<8x128xf32, #tpu.memory_space<vmem>>, vector<1x128xf32>
    %84 = vector.broadcast %82 : vector<1x128xi32> to vector<64x128xi32>
    %85 = arith.cmpi eq, %2, %84 : vector<64x128xi32>
    %cst_37 = arith.constant 0.000000e+00 : f32
    %86 = vector.shape_cast %83 : vector<1x128xf32> to vector<1x128xf32>
    %87 = vector.broadcast %86 : vector<1x128xf32> to vector<64x128xf32>
    %88 = vector.broadcast %cst_37 : f32 to vector<64x128xf32>
    %89 = arith.select %85, %87, %88 : vector<64x128xi1>, vector<64x128xf32>
    %cst_38 = arith.constant dense<0.000000e+00> : vector<32x128xf32>
    %90 = tpu.matmul %0, %89, %cst_38 {dimension_numbers = #tpu.dot_dimension_numbers<[1], [0], [0], [1], [0, 0, 1, 1], [], []>, precision = #tpu.contract_precision<fp32>} : vector<32x64xf32>, vector<64x128xf32>, vector<32x128xf32> -> vector<32x128xf32>
    %91 = arith.addf %72, %90 : vector<32x128xf32>
    %92 = arith.mulf %90, %90 : vector<32x128xf32>
    %cst_39 = arith.constant dense<0.000000e+00> : vector<128xf32>
    %93 = vector.multi_reduction <add>, %92, %cst_39 [0] : vector<32x128xf32> to vector<128xf32>
    %94 = vector.shape_cast %93 : vector<128xf32> to vector<1x128xf32>
    %95 = arith.addf %76, %94 : vector<1x128xf32>
    %96 = vector.broadcast %1 : vector<64x1xf32> to vector<64x128xf32>
    %97 = arith.mulf %89, %96 : vector<64x128xf32>
    %cst_40 = arith.constant dense<0.000000e+00> : vector<128xf32>
    %98 = vector.multi_reduction <add>, %97, %cst_40 [0] : vector<64x128xf32> to vector<128xf32>
    %99 = vector.shape_cast %98 : vector<128xf32> to vector<1x128xf32>
    %100 = arith.addf %81, %99 : vector<1x128xf32>
    %c5 = arith.constant 5 : index
    %c0_41 = arith.constant 0 : index
    %101 = vector.load %arg1[%c5, %c0_41] : memref<8x128xi32, #tpu.memory_space<vmem>>, vector<1x128xi32>
    %c5_42 = arith.constant 5 : index
    %c0_43 = arith.constant 0 : index
    %102 = vector.load %arg2[%c5_42, %c0_43] : memref<8x128xf32, #tpu.memory_space<vmem>>, vector<1x128xf32>
    %103 = vector.broadcast %101 : vector<1x128xi32> to vector<64x128xi32>
    %104 = arith.cmpi eq, %2, %103 : vector<64x128xi32>
    %cst_44 = arith.constant 0.000000e+00 : f32
    %105 = vector.shape_cast %102 : vector<1x128xf32> to vector<1x128xf32>
    %106 = vector.broadcast %105 : vector<1x128xf32> to vector<64x128xf32>
    %107 = vector.broadcast %cst_44 : f32 to vector<64x128xf32>
    %108 = arith.select %104, %106, %107 : vector<64x128xi1>, vector<64x128xf32>
    %cst_45 = arith.constant dense<0.000000e+00> : vector<32x128xf32>
    %109 = tpu.matmul %0, %108, %cst_45 {dimension_numbers = #tpu.dot_dimension_numbers<[1], [0], [0], [1], [0, 0, 1, 1], [], []>, precision = #tpu.contract_precision<fp32>} : vector<32x64xf32>, vector<64x128xf32>, vector<32x128xf32> -> vector<32x128xf32>
    %110 = arith.addf %91, %109 : vector<32x128xf32>
    %111 = arith.mulf %109, %109 : vector<32x128xf32>
    %cst_46 = arith.constant dense<0.000000e+00> : vector<128xf32>
    %112 = vector.multi_reduction <add>, %111, %cst_46 [0] : vector<32x128xf32> to vector<128xf32>
    %113 = vector.shape_cast %112 : vector<128xf32> to vector<1x128xf32>
    %114 = arith.addf %95, %113 : vector<1x128xf32>
    %115 = vector.broadcast %1 : vector<64x1xf32> to vector<64x128xf32>
    %116 = arith.mulf %108, %115 : vector<64x128xf32>
    %cst_47 = arith.constant dense<0.000000e+00> : vector<128xf32>
    %117 = vector.multi_reduction <add>, %116, %cst_47 [0] : vector<64x128xf32> to vector<128xf32>
    %118 = vector.shape_cast %117 : vector<128xf32> to vector<1x128xf32>
    %119 = arith.addf %100, %118 : vector<1x128xf32>
    %c6 = arith.constant 6 : index
    %c0_48 = arith.constant 0 : index
    %120 = vector.load %arg1[%c6, %c0_48] : memref<8x128xi32, #tpu.memory_space<vmem>>, vector<1x128xi32>
    %c6_49 = arith.constant 6 : index
    %c0_50 = arith.constant 0 : index
    %121 = vector.load %arg2[%c6_49, %c0_50] : memref<8x128xf32, #tpu.memory_space<vmem>>, vector<1x128xf32>
    %122 = vector.broadcast %120 : vector<1x128xi32> to vector<64x128xi32>
    %123 = arith.cmpi eq, %2, %122 : vector<64x128xi32>
    %cst_51 = arith.constant 0.000000e+00 : f32
    %124 = vector.shape_cast %121 : vector<1x128xf32> to vector<1x128xf32>
    %125 = vector.broadcast %124 : vector<1x128xf32> to vector<64x128xf32>
    %126 = vector.broadcast %cst_51 : f32 to vector<64x128xf32>
    %127 = arith.select %123, %125, %126 : vector<64x128xi1>, vector<64x128xf32>
    %cst_52 = arith.constant dense<0.000000e+00> : vector<32x128xf32>
    %128 = tpu.matmul %0, %127, %cst_52 {dimension_numbers = #tpu.dot_dimension_numbers<[1], [0], [0], [1], [0, 0, 1, 1], [], []>, precision = #tpu.contract_precision<fp32>} : vector<32x64xf32>, vector<64x128xf32>, vector<32x128xf32> -> vector<32x128xf32>
    %129 = arith.addf %110, %128 : vector<32x128xf32>
    %130 = arith.mulf %128, %128 : vector<32x128xf32>
    %cst_53 = arith.constant dense<0.000000e+00> : vector<128xf32>
    %131 = vector.multi_reduction <add>, %130, %cst_53 [0] : vector<32x128xf32> to vector<128xf32>
    %132 = vector.shape_cast %131 : vector<128xf32> to vector<1x128xf32>
    %133 = arith.addf %114, %132 : vector<1x128xf32>
    %134 = vector.broadcast %1 : vector<64x1xf32> to vector<64x128xf32>
    %135 = arith.mulf %127, %134 : vector<64x128xf32>
    %cst_54 = arith.constant dense<0.000000e+00> : vector<128xf32>
    %136 = vector.multi_reduction <add>, %135, %cst_54 [0] : vector<64x128xf32> to vector<128xf32>
    %137 = vector.shape_cast %136 : vector<128xf32> to vector<1x128xf32>
    %138 = arith.addf %119, %137 : vector<1x128xf32>
    %c7 = arith.constant 7 : index
    %c0_55 = arith.constant 0 : index
    %139 = vector.load %arg1[%c7, %c0_55] : memref<8x128xi32, #tpu.memory_space<vmem>>, vector<1x128xi32>
    %c7_56 = arith.constant 7 : index
    %c0_57 = arith.constant 0 : index
    %140 = vector.load %arg2[%c7_56, %c0_57] : memref<8x128xf32, #tpu.memory_space<vmem>>, vector<1x128xf32>
    %141 = vector.broadcast %139 : vector<1x128xi32> to vector<64x128xi32>
    %142 = arith.cmpi eq, %2, %141 : vector<64x128xi32>
    %cst_58 = arith.constant 0.000000e+00 : f32
    %143 = vector.shape_cast %140 : vector<1x128xf32> to vector<1x128xf32>
    %144 = vector.broadcast %143 : vector<1x128xf32> to vector<64x128xf32>
    %145 = vector.broadcast %cst_58 : f32 to vector<64x128xf32>
    %146 = arith.select %142, %144, %145 : vector<64x128xi1>, vector<64x128xf32>
    %cst_59 = arith.constant dense<0.000000e+00> : vector<32x128xf32>
    %147 = tpu.matmul %0, %146, %cst_59 {dimension_numbers = #tpu.dot_dimension_numbers<[1], [0], [0], [1], [0, 0, 1, 1], [], []>, precision = #tpu.contract_precision<fp32>} : vector<32x64xf32>, vector<64x128xf32>, vector<32x128xf32> -> vector<32x128xf32>
    %148 = arith.addf %129, %147 : vector<32x128xf32>
    %149 = arith.mulf %147, %147 : vector<32x128xf32>
    %cst_60 = arith.constant dense<0.000000e+00> : vector<128xf32>
    %150 = vector.multi_reduction <add>, %149, %cst_60 [0] : vector<32x128xf32> to vector<128xf32>
    %151 = vector.shape_cast %150 : vector<128xf32> to vector<1x128xf32>
    %152 = arith.addf %133, %151 : vector<1x128xf32>
    %153 = vector.broadcast %1 : vector<64x1xf32> to vector<64x128xf32>
    %154 = arith.mulf %146, %153 : vector<64x128xf32>
    %cst_61 = arith.constant dense<0.000000e+00> : vector<128xf32>
    %155 = vector.multi_reduction <add>, %154, %cst_61 [0] : vector<64x128xf32> to vector<128xf32>
    %156 = vector.shape_cast %155 : vector<128xf32> to vector<1x128xf32>
    %157 = arith.addf %138, %156 : vector<1x128xf32>
    %158 = arith.mulf %148, %148 : vector<32x128xf32>
    %cst_62 = arith.constant dense<0.000000e+00> : vector<128xf32>
    %159 = vector.multi_reduction <add>, %158, %cst_62 [0] : vector<32x128xf32> to vector<128xf32>
    %160 = vector.shape_cast %159 : vector<128xf32> to vector<1x128xf32>
    %161 = arith.subf %160, %152 : vector<1x128xf32>
    %cst_63 = arith.constant 5.000000e-01 : f32
    %162 = vector.broadcast %cst_63 : f32 to vector<1x128xf32>
    %163 = arith.mulf %162, %161 : vector<1x128xf32>
    %164 = arith.addf %163, %157 : vector<1x128xf32>
    %c0_64 = arith.constant 0 : index
    %c0_65 = arith.constant 0 : index
    %165 = vector.load %arg5[%c0_64, %c0_65] : memref<1x128xf32, #tpu.memory_space<vmem>>, vector<1x128xf32>
    tpu.vector_store %arg5[%c0_64, %c0_65], %164 {strides = array<i32>} : memref<1x128xf32, #tpu.memory_space<vmem>>, vector<1x128xf32>,
    return
  }
  func.func @transform_0(%arg0: i32) -> (i32, i32) {
    %c0_i32 = arith.constant 0 : i32
    %c0_i32_0 = arith.constant 0 : i32
    return %c0_i32, %arg0 : i32, i32
  }
  func.func @transform_1(%arg0: i32) -> (i32, i32) {
    %c0_i32 = arith.constant 0 : i32
    %c0_i32_0 = arith.constant 0 : i32
    return %c0_i32, %arg0 : i32, i32
  }
  func.func @transform_2(%arg0: i32) -> (i32, i32) {
    %c0_i32 = arith.constant 0 : i32
    %c0_i32_0 = arith.constant 0 : i32
    %c0_i32_1 = arith.constant 0 : i32
    return %c0_i32, %c0_i32_0 : i32, i32
  }
  func.func @transform_3(%arg0: i32) -> (i32, i32) {
    %c0_i32 = arith.constant 0 : i32
    %c0_i32_0 = arith.constant 0 : i32
    %c0_i32_1 = arith.constant 0 : i32
    return %c0_i32, %c0_i32_0 : i32, i32
  }
  func.func @transform_4(%arg0: i32) -> (i32, i32) {
    %c0_i32 = arith.constant 0 : i32
    %c0_i32_0 = arith.constant 0 : i32
    return %c0_i32, %arg0 : i32, i32
  }
}

</mosaic_0001>

<bundles_post_ra>
// kernel: pair_fm_forward.1
= control target key start
LH: loop header
LB: loop body
LE: loop exit
PB: predicated region body
PF: predicated region fallthrough
CT: control target
= control target key end

     0   :  { %v29_v0 = vlaneseq  ;;  %vm64_vm0 = vcmask 523264   ;;  %s10545_s0 = inlined_call_operand.vmem [shape: s32[8,128], index: 0, kind: input, shape index: {}]   ;;  %s10546_s1 = inlined_call_operand.vmem [shape: f32[8,128], index: 1, kind: input, shape index: {}]   ;;  %s10547_s2 = inlined_call_operand.vmem [shape: f32[32,64], index: 2, kind: input, shape index: {}]   ;;  %s10548_s3 = inlined_call_operand.vmem [shape: f32[64,1], index: 3, kind: input, shape index: {}]   ;;  %s10549_s4 = inlined_call_operand.vmem [shape: f32[1,128], index: 4, kind: output, shape index: {}]  }
   0x1   :  { %v8576_v1 = vld [vmem:[%s10545_s0] ss:$0 sm:$0xff]  ;;  %v8586_v3 = vld [vmem:[%s10545_s0 + $0x1] ss:$0 sm:$0xff]  ;;  %v18_v7 = vld [vmem:[%s10547_s2 + $0x8] sm:$0xff] }
   0x2   :  { %v8581_v2 = vld [vmem:[%s10546_s1] ss:$0 sm:$0xff]  ;;  %v8588_v4 = vshrl.u32 %v29_v0, 7  ;;  %v8593_v5 = vld [vmem:[%s10546_s1 + $0x1] ss:$0 sm:$0xff]  ;;  %v8605_v9 = vsel %vm64_vm0, %v18_v7, 0 }
   0x3   :  { %v17_v6 = vld [vmem:[%s10547_s2] sm:$0xff] }
   0x4   :  { %v8602_v8 = vsel %vm64_vm0, %v17_v6, 0  ;;  %v8608_v10 = vadd.s32 8, %v8588_v4  ;;  %vm44_vm1 = vcmp.eq.s32.totalorder %v8588_v4, %v8576_v1  ;;  %vm829_vm2 = vcmp.eq.s32.totalorder %v8588_v4, %v8586_v3 }
   0x5   :  { %v8615_v11 = vadd.s32 16, %v8588_v4  ;;  %v8618_v12 = vsel %vm44_vm1, %v8581_v2, 0.0  ;;  %v8621_v13 = vsel %vm829_vm2, %v8593_v5, 0.0  ;;  %v8624_v14 = vadd.s32 24, %v8588_v4 }
   0x6   :  { %10648 = vst [vmem:[#allocation2_spill] sm:$0xff] %v8618_v12  ;;  %10649 = vst [vmem:[#allocation3_spill] sm:$0xff] %v8621_v13  ;;  %v8627_v15 = vadd.s32 32, %v8588_v4  ;;  %vm45_vm3 = vcmp.eq.s32.totalorder %v8608_v10, %v8576_v1  ;;  %v78_v16 = vand.u32 4294901760, %v8618_v12  ;;  %vm830_vm4 = vcmp.eq.s32.totalorder %v8608_v10, %v8586_v3 }
   0x7   :  { %v850_v17 = vand.u32 4294901760, %v8621_v13  ;;  %v8636_v18 = vsel %vm45_vm3, %v8581_v2, 0.0  ;;  %v8639_v19 = vsel %vm830_vm4, %v8593_v5, 0.0  ;;  %vm46_vm5 = vcmp.eq.s32.totalorder %v8615_v11, %v8576_v1 }
   0x8   :  { %10650 = vst [vmem:[#allocation4_spill] sm:$0xff] %v8627_v15  ;;  %10651 = vst [vmem:[#allocation5_spill] sm:$0xff] %v8636_v18  ;;  %vm47_vm6 = vcmp.eq.s32.totalorder %v8624_v14, %v8576_v1  ;;  %v81_v20 = vand.u32 4294901760, %v8636_v18  ;;  %v853_v21 = vand.u32 4294901760, %v8639_v19  ;;  %v8648_v22 = vsel %vm46_vm5, %v8581_v2, 0.0 }
   0x9   :  { %10652 = vst [vmem:[#allocation6_spill] sm:$0xff] %v8639_v19  ;;  %10653 = vst [vmem:[#allocation7_spill] sm:$0xff] %v8648_v22  ;;  %v8651_v23 = vsel %vm47_vm6, %v8581_v2, 0.0  ;;  %v84_v24 = vand.u32 4294901760, %v8648_v22  ;;  %vm831_vm7 = vcmp.eq.s32.totalorder %v8615_v11, %v8586_v3  ;;  %vm832_vm8 = vcmp.eq.s32.totalorder %v8624_v14, %v8586_v3 }
   0xa   :  { %10654 = vst [vmem:[#allocation8_spill] sm:$0xff] %v8651_v23  ;;  %v87_v25 = vand.u32 4294901760, %v8651_v23  ;;  %v8661_v26 = vpack.c.bf16 %v81_v20, %v78_v16  ;;  %v8665_v27 = vpack.c.bf16 %v853_v21, %v850_v17  ;;  %v8668_v28 = vsel %vm831_vm7, %v8593_v5, 0.0 }
   0xb   :  { %10655 = vst [vmem:[#allocation9_spill] sm:$0xff] %v8668_v28  ;;  %v8671_v29 = vsel %vm832_vm8, %v8593_v5, 0.0  ;;  %v856_v31 = vand.u32 4294901760, %v8668_v28  ;;  %v8682_v33 = vadd.s32 40, %v8588_v4  ;;  %vm48_vm9 = vcmp.eq.s32.totalorder %v8627_v15, %v8576_v1 }
   0xc   :  { %10656 = vst [vmem:[#allocation10_spill] sm:$0xff] %v8671_v29  ;;  %v8677_v30 = vpack.c.bf16 %v87_v25, %v84_v24  ;;  %v859_v32 = vand.u32 4294901760, %v8671_v29  ;;  %7617 = vmatprep.subr.bf16.mxu0 %v8661_v26  ;;  %7713 = vmatprep.subr.bf16.mxu1 %v8665_v27  ;;  %vm833_vm10 = vcmp.eq.s32.totalorder %v8627_v15, %v8586_v3  ;;  %v8691_v34 = vadd.s32 48, %v8588_v4 }
   0xd   :  { %10657 = vst [vmem:[#allocation11_spill] sm:$0xff] %v8682_v33  ;;  %v8694_v35 = vadd.s32 56, %v8588_v4  ;;  %7619 = vmatpush3.bf16.msra.mxu0 %v8661_v26  ;;  %7715 = vmatpush3.bf16.msra.mxu1 %v8665_v27  ;;  %vm49_vm11 = vcmp.eq.s32.totalorder %v8682_v33, %v8576_v1  ;;  %v8707_v37 = vsel %vm48_vm9, %v8581_v2, 0.0  ;;  %vm834_vm12 = vcmp.eq.s32.totalorder %v8682_v33, %v8586_v3 }
   0xe   :  { %10658 = vst [vmem:[#allocation12_spill] sm:$0xff] %v8691_v34  ;;  %v8702_v36 = vpack.c.bf16 %v859_v32, %v856_v31  ;;  %10660 = vst [vmem:[#allocation14_spill] sm:$0xff] %v8707_v37  ;;  %7621 = vmatprep.subr.bf16.mxu0 %v8677_v30  ;;  %v8713_v38 = vsel %vm49_vm11, %v8581_v2, 0.0  ;;  %v90_v39 = vand.u32 4294901760, %v8707_v37  ;;  %v8717_v40 = vsel %vm833_vm10, %v8593_v5, 0.0 }
   0xf   :  { %10659 = vst [vmem:[#allocation13_spill] sm:$0xff] %v8694_v35  ;;  %10661 = vst [vmem:[#allocation15_spill] sm:$0xff] %v8713_v38  ;;  %v8720_v41 = vsel %vm834_vm12, %v8593_v5, 0.0  ;;  %v93_v42 = vand.u32 4294901760, %v8713_v38  ;;  %v862_v43 = vand.u32 4294901760, %v8717_v40  ;;  %vm50_vm13 = vcmp.eq.s32.totalorder %v8691_v34, %v8576_v1 }
  0x10   :  { %10662 = vst [vmem:[#allocation16_spill] sm:$0xff] %v8717_v40  ;;  %10663 = vst [vmem:[#allocation17_spill] sm:$0xff] %v8720_v41  ;;  %7717 = vmatprep.subr.bf16.mxu1 %v8702_v36  ;;  %v10558_v44 = vand.u32 4294901760, %v8720_v41  ;;  %vm51_vm14 = vcmp.eq.s32.totalorder %v8694_v35, %v8576_v1  ;;  %v8731_v45 = vsel %vm50_vm13, %v8581_v2, 0.0  ;;  %vm835_vm15 = vcmp.eq.s32.totalorder %v8691_v34, %v8586_v3 }
  0x11   :  { %10664 = vst [vmem:[#allocation18_spill] sm:$0xff] %v8731_v45  ;;  %vm836_vm1 = vcmp.eq.s32.totalorder %v8694_v35, %v8586_v3  ;;  %7623 = vmatpush3.bf16.msra.mxu0 %v8677_v30  ;;  %7719 = vmatpush3.bf16.msra.mxu1 %v8702_v36  ;;  %v8743_v46 = vpack.c.bf16 %v93_v42, %v90_v39  ;;  %v8752_v48 = vsel %vm51_vm14, %v8581_v2, 0.0  ;;  %v10557_v49 = vand.u32 4294901760, %v8731_v45 }
  0x12   :  { %v8749_v47 = vpack.c.bf16 %v10558_v44, %v862_v43  ;;  %10665 = vst [vmem:[#allocation19_spill] sm:$0xff] %v8752_v48  ;;  %v10555_v50 = vand.u32 4294901760, %v8752_v48  ;;  %v8757_v51 = vsel %vm835_vm15, %v8593_v5, 0.0  ;;  %v8760_v52 = vsel %vm836_vm1, %v8593_v5, 0.0 }
  0x13   :  { %10666 = vst [vmem:[#allocation20_spill] sm:$0xff] %v8757_v51  ;;  %10667 = vst [vmem:[#allocation21_spill] sm:$0xff] %v8760_v52  ;;  %v8763_v53 = vand.u32 4294901760, %v8602_v8  ;;  %7625 = vmatprep.subr.bf16.mxu0 %v8743_v46  ;;  %v10553_v54 = vand.u32 4294901760, %v8757_v51  ;;  %v10552_v55 = vand.u32 4294901760, %v8760_v52  ;;  %v8772_v56 = vsub.f32 %v8618_v12, %v78_v16 }
  0x14   :  { %7721 = vmatprep.subr.bf16.mxu1 %v8749_v47  ;;  %v8775_v57 = vsub.f32 %v8636_v18, %v81_v20  ;;  %v8781_v58 = vpack.c.bf16 %v10555_v50, %v10557_v49  ;;  %v8790_v60 = vsub.f32 %v8621_v13, %v850_v17  ;;  %v8793_v61 = vsub.f32 %v8639_v19, %v853_v21 }
  0x15   :  { %v8785_v59 = vsub.f32 %v8602_v8, %v8763_v53  ;;  %7627 = vmatpush3.bf16.msra.mxu0 %v8743_v46  ;;  %7723 = vmatpush3.bf16.msra.mxu1 %v8749_v47  ;;  %v8801_v62 = vpack.c.bf16 %v10552_v55, %v10553_v54  ;;  %v10551_v63 = vand.u32 4294901760, %v8772_v56  ;;  %v8806_v1 = vand.u32 4294901760, %v8605_v9 }
  0x16   :  { %v10550_v0 = vand.u32 4294901760, %v8775_v57  ;;  %7629 = vmatprep.subr.bf16.mxu0 %v8781_v58  ;;  %v10554_v3 = vand.u32 4294901760, %v8790_v60  ;;  %v10556_v5 = vand.u32 4294901760, %v8793_v61  ;;  %v8817_v6 = vsub.f32 %v8648_v22, %v84_v24 }
  0x17   :  { %v8810_v2 = vand.u32 4294901760, %v8785_v59  ;;  %7725 = vmatprep.subr.bf16.mxu1 %v8801_v62  ;;  %v194_v7 = vsub.f32 %v8772_v56, %v10551_v63  ;;  %v8828_v16 = vsub.f32 %v8605_v9, %v8806_v1  ;;  %v8833_v17 = vsub.f32 %v8651_v23, %v87_v25 }
  0x18   :  { %v201_v8 = vsub.f32 %v8775_v57, %v10550_v0  ;;  %v966_v21 = vsub.f32 %v8790_v60, %v10554_v3  ;;  %v973_v24 = vsub.f32 %v8793_v61, %v10556_v5  ;;  %v10560_v0 = vand.u32 4294901760, %v8817_v6 }
  0x19   :  { %v153_v20 = vsub.f32 %v8785_v59, %v8810_v2  ;;  %7631 = vmatpush3.bf16.msra.mxu0 %v8781_v58  ;;  %7727 = vmatpush3.bf16.msra.mxu1 %v8801_v62  ;;  %v195_v9 = vand.u32 4294901760, %v194_v7  ;;  %v8847_v63 = vand.u32 4294901760, %v8828_v16  ;;  %v10559_v55 = vand.u32 4294901760, %v8833_v17 }
  0x1a   :  { %v202_v25 = vand.u32 4294901760, %v201_v8  ;;  %v967_v3 = vand.u32 4294901760, %v966_v21  ;;  %v974_v50 = vand.u32 4294901760, %v973_v24  ;;  %v208_v5 = vsub.f32 %v8817_v6, %v10560_v0 }
  0x1b   :  { %v8850_v54 = vand.u32 4294901760, %v153_v20  ;;  %v163_v44 = vsub.f32 %v8828_v16, %v8847_v63  ;;  %v215_v7 = vsub.f32 %v8833_v17, %v10559_v55  ;;  %v8863_v8 = vsub.f32 %v8668_v28, %v856_v31  ;;  %v19_v31 = vld [vmem:[%s10547_s2 + $0x10] sm:$0xff] }
  0x1c   :  { %v7632_v49 = vpack.c.bf16 %v202_v25, %v195_v9  ;;  %v7728_v20 = vpack.c.bf16 %v974_v50, %v967_v3  ;;  %v209_v21 = vand.u32 4294901760, %v208_v5  ;;  %v8870_v24 = vsub.f32 %v8671_v29, %v859_v32 }
  0x1d   :  { %6576 = vmatprep.mubr.f32.mxu0 %v8850_v54  ;;  %6708 = vmatprep.mubr.f32.mxu1 %v8850_v54  ;;  %v8875_v9 = vsub.f32 %v8707_v37, %v90_v39  ;;  %v8880_v25 = vand.u32 4294901760, %v163_v44  ;;  %v216_v55 = vand.u32 4294901760, %v215_v7  ;;  %v10563_v50 = vand.u32 4294901760, %v8863_v8 }
  0x1e   :  { %7633 = vmatprep.subr.bf16.mxu0 %v7632_v49  ;;  %v8886_v32 = vsub.f32 %v8713_v38, %v93_v42  ;;  %7729 = vmatprep.subr.bf16.mxu1 %v7728_v20  ;;  %v8893_v5 = vsub.f32 %v8717_v40, %v862_v43  ;;  %v10668_v44 = vand.u32 4294901760, %v8720_v41  ;;  %v72_v3 = vsel %vm64_vm0, %v19_v31, 0 }
  0x1f   :  { %6577 = vmatmul.mubr.f32.vlgmr.msra.gmra.mrb[0].mxu0 %v8880_v25  ;;  %6709 = vmatmul.mubr.f32.vlgmr.msra.gmra.mrb[0].mxu1 %v8880_v25  ;;  %v7636_v42 = vpack.c.bf16 %v216_v55, %v209_v21  ;;  %v980_v0 = vsub.f32 %v8863_v8, %v10563_v50  ;;  %v10669_v43 = vand.u32 4294901760, %v8870_v24  ;;  %v10672_v28 = vand.u32 4294901760, %v8752_v48 }
  0x20   :  { %v8898_v7 = vsub.f32 %v8720_v41, %v10668_v44  ;;  %v10567_v39 = vand.u32 4294901760, %v8886_v32  ;;  %7635 = vmatpush3.bf16.msra.mxu0 %v7632_v49  ;;  %7731 = vmatpush3.bf16.msra.mxu1 %v7728_v20  ;;  %v10670_v41 = vand.u32 4294901760, %v8875_v9  ;;  %v10570_v55 = vand.u32 4294901760, %v8893_v5 }
  0x21   :  { %v987_v44 = vsub.f32 %v8870_v24, %v10669_v43  ;;  %7637 = vmatprep.subr.bf16.mxu0 %v7636_v42  ;;  %v981_v50 = vand.u32 4294901760, %v980_v0  ;;  %v8918_v49 = vand.u32 4294901760, %v72_v3  ;;  %v10671_v20 = vand.u32 4294901760, %v8731_v45 }
  0x22   :  { %v222_v38 = vsub.f32 %v8875_v9, %v10670_v41  ;;  %v10572_v21 = vand.u32 4294901760, %v8898_v7  ;;  %v229_v31 = vsub.f32 %v8886_v32, %v10567_v39  ;;  %v994_v41 = vsub.f32 %v8893_v5, %v10570_v55 }
  0x23   :  { %v8923_v43 = vsub.f32 %v8731_v45, %v10671_v20  ;;  %v988_v40 = vand.u32 4294901760, %v987_v44  ;;  %v8932_v39 = vsub.f32 %v72_v3, %v8918_v49  ;;  %v8938_v20 = vsub.f32 %v8752_v48, %v10672_v28 }
  0x24   :  { %v223_v37 = vand.u32 4294901760, %v222_v38  ;;  %v1001_v0 = vsub.f32 %v8898_v7, %v10572_v21  ;;  %v230_v29 = vand.u32 4294901760, %v229_v31  ;;  %v20_v38 = vld [vmem:[%s10547_s2 + $0x18] sm:$0xff]  ;;  %7639 = vmatpush3.bf16.msra.mxu0 %v7636_v42  ;;  %v995_v55 = vand.u32 4294901760, %v994_v41 }
  0x25   :  { %v7732_v44 = vpack.c.bf16 %v988_v40, %v981_v50  ;;  %v10673_v31 = vand.u32 4294901760, %v8757_v51  ;;  %v8949_v23 = vand.u32 4294901760, %v8932_v39  ;;  %v10674_v28 = vand.u32 4294901760, %v8923_v43 }
  0x26   :  { %v1002_v45 = vand.u32 4294901760, %v1001_v0  ;;  %v7640_v21 = vpack.c.bf16 %v230_v29, %v223_v37  ;;  %v10575_v22 = vand.u32 4294901760, %v8938_v20  ;;  %v10675_v42 = vand.u32 4294901760, %v8760_v52 }
  0x27   :  { %v8946_v3 = vsub.f32 %v8757_v51, %v10673_v31  ;;  %v236_v48 = vsub.f32 %v8923_v43, %v10674_v28  ;;  %7733 = vmatprep.subr.bf16.mxu1 %v7732_v44  ;;  %v75_v29 = vsel %vm64_vm0, %v20_v38, 0  ;;  %v173_v37 = vsub.f32 %v8932_v39, %v8949_v23 }
  0x28   :  { %v7736_v40 = vpack.c.bf16 %v1002_v45, %v995_v55  ;;  %v8959_v41 = vsub.f32 %v8760_v52, %v10675_v42  ;;  %7735 = vmatpush3.bf16.msra.mxu1 %v7732_v44  ;;  %7641 = vmatprep.subr.bf16.mxu0 %v7640_v21  ;;  %v243_v31 = vsub.f32 %v8938_v20, %v10575_v22  ;;  %v8967_v45 = vand.u32 4294901760, %v75_v29 }
  0x29   :  { %v1007_v50 = vand.u32 4294901760, %v8946_v3  ;;  %v237_v0 = vand.u32 4294901760, %v236_v48  ;;  %7643 = vmatpush3.bf16.msra.mxu0 %v7640_v21  ;;  %v8973_v44 = vand.u32 4294901760, %v173_v37  ;;  %v7648_v37 = vpack.c.bf16 %v8775_v57, %v8772_v56 }
  0x2a   :  { %7737 = vmatprep.subr.bf16.mxu1 %v7736_v40  ;;  %v10577_v38 = vand.u32 4294901760, %v8959_v41  ;;  %v244_v28 = vand.u32 4294901760, %v243_v31  ;;  %v8976_v42 = vsub.f32 %v75_v29, %v8967_v45 }
  0x2b   :  { %v1008_v55 = vsub.f32 %v8946_v3, %v1007_v50  ;;  %6579 = vmatprep.mubr.f32.mxu0 %v8973_v44  ;;  %6711 = vmatprep.mubr.f32.mxu1 %v8973_v44 }
  0x2c   :  { %v1015_v22 = vsub.f32 %v8959_v41, %v10577_v38  ;;  %7739 = vmatpush3.bf16.msra.mxu1 %v7736_v40  ;;  %v7644_v21 = vpack.c.bf16 %v244_v28, %v237_v0  ;;  %v8983_v52 = vand.u32 4294901760, %v8976_v42  ;;  %v7744_v40 = vpack.c.bf16 %v8793_v61, %v8790_v60 }
  0x2d   :  { %v1009_v48 = vand.u32 4294901760, %v1008_v55  ;;  %v7748_v0 = vpack.c.bf16 %v8870_v24, %v8863_v8  ;;  %v7656_v28 = vpack.c.bf16 %v8886_v32, %v8875_v9 }
  0x2e   :  { %v1016_v31 = vand.u32 4294901760, %v1015_v22  ;;  %7645 = vmatprep.subr.bf16.mxu0 %v7644_v21  ;;  %v183_v29 = vsub.f32 %v8976_v42, %v8983_v52  ;;  %v7652_v22 = vpack.c.bf16 %v8833_v17, %v8817_v6 }
  0x2f   :  { %7647 = vmatpush3.bf16.msra.mxu0 %v7644_v21  ;;  %v7660_v21 = vpack.c.bf16 %v8938_v20, %v8923_v43 }
  0x30   :  { %v7740_v55 = vpack.c.bf16 %v1016_v31, %v1009_v48  ;;  %v8990_v38 = vand.u32 4294901760, %v183_v29  ;;  %7649 = vmatprep.subr.bf16.mxu0 %v7648_v37  ;;  %v7752_v48 = vpack.c.bf16 %v8898_v7, %v8893_v5  ;;  %v10676_v31 = vand.u32 4294901760, %v8772_v56 }
  0x31   :  { %v10677_v29 = vand.u32 4294901760, %v8775_v57  ;;  %v10682_v56 = vand.u32 4294901760, %v8863_v8  ;;  %v10683_v57 = vand.u32 4294901760, %v8870_v24  ;;  %v10687_v8 = vand.u32 4294901760, %v8898_v7 }
  0x32   :  { %7741 = vmatprep.subr.bf16.mxu1 %v7740_v55  ;;  %6580 = vmatmul.mubr.f32.gmra.mrb[2].mxu0 %v8990_v38  ;;  %v10688_v24 = vand.u32 4294901760, %v8923_v43  ;;  %v9090_v43 = vld [vmem:[%s10545_s0 + $0x3] ss:$0 sm:$0xff] }
  0x33   :  { %6712 = vmatmul.mubr.f32.gmra.mrb[2].mxu1 %v8990_v38  ;;  %6598 = vmatprep.mubr.f32.mxu0 %v8763_v53  ;;  %vm2293_vm3 = vcmp.eq.s32.totalorder %v8588_v4, %v9090_v43  ;;  %vm2294_vm4 = vcmp.eq.s32.totalorder %v8608_v10, %v9090_v43  ;;  %vm2295_vm7 = vcmp.eq.s32.totalorder %v8615_v11, %v9090_v43 }
  0x34   :  { %7743 = vmatpush3.bf16.msra.mxu1 %v7740_v55  ;;  %6730 = vmatprep.mubr.f32.mxu1 %v8763_v53  ;;  %v7680_v55 = vpack.c.bf16 %v10677_v29, %v10676_v31  ;;  %v9083_v29 = vld [vmem:[%s10545_s0 + $0x2] ss:$0 sm:$0xff]  ;;  %vm2296_vm8 = vcmp.eq.s32.totalorder %v8624_v14, %v9090_v43  ;;  %vm2297_vm11 = vcmp.eq.s32.totalorder %v8627_v15, %v9090_v43 }
  0x35   :  { %7745 = vmatprep.subr.bf16.mxu1 %v7744_v40  ;;  %vm1561_vm0 = vcmp.eq.s32.totalorder %v8588_v4, %v9083_v29  ;;  %vm1562_vm2 = vcmp.eq.s32.totalorder %v8608_v10, %v9083_v29  ;;  %vm1563_vm5 = vcmp.eq.s32.totalorder %v8615_v11, %v9083_v29  ;;  %vm1564_vm6 = vcmp.eq.s32.totalorder %v8624_v14, %v9083_v29 }
  0x36   :  { %6599 = vmatmul.mubr.f32.vlgmr.msra.gmra.mrb[0].mxu0 %v8806_v1  ;;  %vm1565_vm9 = vcmp.eq.s32.totalorder %v8627_v15, %v9083_v29  ;;  %vm1566_vm10 = vcmp.eq.s32.totalorder %v8682_v33, %v9083_v29  ;;  %vm2298_vm12 = vcmp.eq.s32.totalorder %v8682_v33, %v9090_v43  ;;  %vm1567_vm13 = vcmp.eq.s32.totalorder %v8691_v34, %v9083_v29 }
  0x37   :  { %6731 = vmatmul.mubr.f32.vlgmr.msra.gmra.mrb[0].mxu1 %v8806_v1  ;;  %7651 = vmatpush3.bf16.msra.mxu0 %v7648_v37  ;;  %v7756_v37 = vpack.c.bf16 %v8959_v41, %v8946_v3  ;;  %v9104_v3 = vld [vmem:[%s10546_s1 + $0x3] ss:$0 sm:$0xff]  ;;  %vm1568_vm14 = vcmp.eq.s32.totalorder %v8694_v35, %v9083_v29  ;;  %vm2299_vm15 = vcmp.eq.s32.totalorder %v8691_v34, %v9090_v43 }
  0x38   :  { %7747 = vmatpush3.bf16.msra.mxu1 %v7744_v40  ;;  %7653 = vmatprep.subr.bf16.mxu0 %v7652_v22  ;;  %v10678_v40 = vand.u32 4294901760, %v8790_v60  ;;  %v10684_v60 = vand.u32 4294901760, %v8875_v9  ;;  %v10689_v9 = vand.u32 4294901760, %v8938_v20  ;;  %v9095_v20 = vld [vmem:[%s10546_s1 + $0x2] ss:$0 sm:$0xff]  ;;  %vm2300_vm1 = vcmp.eq.s32.totalorder %v8694_v35, %v9090_v43 }
  0x39   :  { %7749 = vmatprep.subr.bf16.mxu1 %v7748_v0  ;;  %6601 = vmatprep.mubr.f32.mxu0 %v8918_v49 }
  0x3a   :  { %6733 = vmatprep.mubr.f32.mxu1 %v8918_v49  ;;  %6602 = vmatmul.mubr.f32.gmra.mrb[2].mxu0 %v8967_v45 }
  0x3b   :  { %6734 = vmatmul.mubr.f32.gmra.mrb[2].mxu1 %v8967_v45  ;;  %7655 = vmatpush3.bf16.msra.mxu0 %v7652_v22  ;;  %v10679_v22 = vand.u32 4294901760, %v8793_v61  ;;  %v10685_v61 = vand.u32 4294901760, %v8886_v32  ;;  %v7692_v32 = vpack.c.bf16 %v10689_v9, %v10688_v24 }
  0x3c   :  { %7751 = vmatpush3.bf16.msra.mxu1 %v7748_v0  ;;  %7657 = vmatprep.subr.bf16.mxu0 %v7656_v28 }
  0x3d   :  { %7753 = vmatprep.subr.bf16.mxu1 %v7752_v48  ;;  %6620 = vmatprep.mubr.f32.mxu0 %v8785_v59  ;;  %v7776_v0 = vpack.c.bf16 %v10679_v22, %v10678_v40  ;;  %v9120_v40 = vsel %vm2294_vm4, %v9104_v3, 0.0 }
  0x3e   :  { %6752 = vmatprep.mubr.f32.mxu1 %v8785_v59  ;;  %10694 = vst [vmem:[#allocation25_spill] sm:$0xff] %v9120_v40 }
  0x3f   :  { %7659 = vmatpush3.bf16.msra.mxu0 %v7656_v28  ;;  %v10680_v28 = vand.u32 4294901760, %v8817_v6  ;;  %v7688_v6 = vpack.c.bf16 %v10685_v61, %v10684_v60  ;;  %v9180_v60 = vsel %vm2296_vm8, %v9104_v3, 0.0  ;;  %v9186_v61 = vsel %vm1565_vm9, %v9095_v20, 0.0 }
  0x40   :  { %7755 = vmatpush3.bf16.msra.mxu1 %v7752_v48  ;;  %7661 = vmatprep.subr.bf16.mxu0 %v7660_v21  ;;  %v10681_v48 = vand.u32 4294901760, %v8833_v17  ;;  %v10686_v17 = vand.u32 4294901760, %v8893_v5  ;;  %v10690_v5 = vand.u32 4294901760, %v8959_v41  ;;  %v9114_v41 = vsel %vm1562_vm2, %v9095_v20, 0.0  ;;  %10698 = vst [vmem:[#allocation29_spill] sm:$0xff] %v9180_v60  ;;  %10699 = vst [vmem:[#allocation30_spill] sm:$0xff] %v9186_v61 }
  0x41   :  { %7757 = vmatprep.subr.bf16.mxu1 %v7756_v37  ;;  %10692 = vst [vmem:[#allocation23_spill] sm:$0xff] %v9114_v41  ;;  %v2323_v9 = vand.u32 4294901760, %v9180_v60 }
  0x42   :  { %v7784_v31 = vpack.c.bf16 %v10687_v8, %v10686_v17  ;;  %v7788_v7 = vpack.c.bf16 %v10690_v5, %v1007_v50  ;;  %v9111_v50 = vsel %vm1561_vm0, %v9095_v20, 0.0 }
  0x43   :  { %7663 = vmatpush3.bf16.msra.mxu0 %v7660_v21  ;;  %v7684_v21 = vpack.c.bf16 %v10681_v48, %v10680_v28  ;;  %10691 = vst [vmem:[#allocation22_spill] sm:$0xff] %v9111_v50  ;;  %v1582_v22 = vand.u32 4294901760, %v9111_v50  ;;  %v2317_v48 = vand.u32 4294901760, %v9120_v40  ;;  %v9276_v43 = vsub.f32 %v9180_v60, %v2323_v9 }
  0x44   :  { %7759 = vmatpush3.bf16.msra.mxu1 %v7756_v37  ;;  %7665 = vmatprep.subr.bf16.mxu0 %v8661_v26  ;;  %v7780_v37 = vpack.c.bf16 %v10683_v57, %v10682_v56  ;;  %v9165_v56 = vsel %vm1564_vm6, %v9095_v20, 0.0 }
  0x45   :  { %7761 = vmatprep.subr.bf16.mxu1 %v8665_v27  ;;  %10696 = vst [vmem:[#allocation27_spill] sm:$0xff] %v9165_v56  ;;  %v1591_v17 = vand.u32 4294901760, %v9165_v56  ;;  %v9217_v8 = vsub.f32 %v9111_v50, %v1582_v22  ;;  %v9228_v5 = vsub.f32 %v9120_v40, %v2317_v48 }
  0x46   :  { %6621 = vmatmul.mubr.f32.vlgmr.msra.gmra.mrb[0].mxu0 %v8828_v16 }
  0x47   :  { %6753 = vmatmul.mubr.f32.vlgmr.msra.gmra.mrb[0].mxu1 %v8828_v16  ;;  %7667 = vmatpush3.bf16.msra.mxu0 %v8661_v26  ;;  %v10710_v18 = vand.u32 4294901760, %v9228_v5 }
  0x48   :  { %7763 = vmatpush3.bf16.msra.mxu1 %v8665_v27  ;;  %7669 = vmatprep.subr.bf16.mxu0 %v8677_v30 }
  0x49   :  { %7765 = vmatprep.subr.bf16.mxu1 %v8702_v36  ;;  %6623 = vmatprep.mubr.f32.mxu0 %v8932_v39 }
  0x4a   :  { %6755 = vmatprep.mubr.f32.mxu1 %v8932_v39  ;;  %6624 = vmatmul.mubr.f32.gmra.mrb[2].mxu0 %v8976_v42 }
  0x4b   :  { %6756 = vmatmul.mubr.f32.gmra.mrb[2].mxu1 %v8976_v42  ;;  %7671 = vmatpush3.bf16.msra.mxu0 %v8677_v30 }
  0x4c   :  { %7767 = vmatpush3.bf16.msra.mxu1 %v8702_v36  ;;  %7673 = vmatprep.subr.bf16.mxu0 %v8743_v46 }
  0x4d   :  { %7769 = vmatprep.subr.bf16.mxu1 %v8749_v47  ;;  %6642 = vmatprep.mubr.f32.mxu0 %v8810_v2 }
  0x4e   :  { %6774 = vmatprep.mubr.f32.mxu1 %v8810_v2 }
  0x4f   :  { %7675 = vmatpush3.bf16.msra.mxu0 %v8743_v46 }
  0x50   :  { %7771 = vmatpush3.bf16.msra.mxu1 %v8749_v47  ;;  %7677 = vmatprep.subr.bf16.mxu0 %v8781_v58 }
  0x51   :  { %7773 = vmatprep.subr.bf16.mxu1 %v8801_v62 }
  0x53   :  { %7679 = vmatpush3.bf16.msra.mxu0 %v8781_v58 }
  0x54   :  { %7775 = vmatpush3.bf16.msra.mxu1 %v8801_v62  ;;  %7681 = vmatprep.subr.bf16.mxu0 %v7680_v55 }
  0x55   :  { %7777 = vmatprep.subr.bf16.mxu1 %v7776_v0 }
  0x56   :  { %6643 = vmatmul.mubr.f32.vlgmr.msra.gmra.mrb[0].mxu0 %v8847_v63 }
  0x57   :  { %6775 = vmatmul.mubr.f32.vlgmr.msra.gmra.mrb[0].mxu1 %v8847_v63  ;;  %7683 = vmatpush3.bf16.msra.mxu0 %v7680_v55  ;;  %v9117_v55 = vsel %vm2293_vm3, %v9104_v3, 0.0 }
  0x58   :  { %7779 = vmatpush3.bf16.msra.mxu1 %v7776_v0  ;;  %7685 = vmatprep.subr.bf16.mxu0 %v7684_v21  ;;  %10693 = vst [vmem:[#allocation24_spill] sm:$0xff] %v9117_v55  ;;  %v1585_v0 = vand.u32 4294901760, %v9114_v41  ;;  %v2314_v28 = vand.u32 4294901760, %v9117_v55 }
  0x59   :  { %7781 = vmatprep.subr.bf16.mxu1 %v7780_v37  ;;  %6645 = vmatprep.mubr.f32.mxu0 %v8949_v23 }
  0x5a   :  { %6777 = vmatprep.mubr.f32.mxu1 %v8949_v23  ;;  %6646 = vmatmul.mubr.f32.gmra.mrb[2].mxu0 %v8983_v52 }
  0x5b   :  { %6778 = vmatmul.mubr.f32.gmra.mrb[2].mxu1 %v8983_v52  ;;  %7687 = vmatpush3.bf16.msra.mxu0 %v7684_v21  ;;  %v9137_v21 = vsel %vm1563_vm5, %v9095_v20, 0.0 }
  0x5c   :  { %7783 = vmatpush3.bf16.msra.mxu1 %v7780_v37  ;;  %7689 = vmatprep.subr.bf16.mxu0 %v7688_v6  ;;  %10695 = vst [vmem:[#allocation26_spill] sm:$0xff] %v9137_v21  ;;  %v1588_v57 = vand.u32 4294901760, %v9137_v21  ;;  %v9172_v37 = vsel %vm2295_vm7, %v9104_v3, 0.0 }
  0x5d   :  { %7785 = vmatprep.subr.bf16.mxu1 %v7784_v31  ;;  %6664 = vmatprep.mubr.f32.mxu0 %v8763_v53  ;;  %10697 = vst [vmem:[#allocation28_spill] sm:$0xff] %v9172_v37  ;;  %v2320_v24 = vand.u32 4294901760, %v9172_v37 }
  0x5e   :  { %6796 = vmatprep.mubr.f32.mxu1 %v8763_v53  ;;  %v9265_v29 = vsub.f32 %v9137_v21, %v1588_v57 }
  0x5f   :  { %7691 = vmatpush3.bf16.msra.mxu0 %v7688_v6  ;;  %v9192_v6 = vsel %vm1566_vm10, %v9095_v20, 0.0  ;;  %v9273_v19 = vsub.f32 %v9172_v37, %v2320_v24 }
  0x60   :  { %7787 = vmatpush3.bf16.msra.mxu1 %v7784_v31  ;;  %7693 = vmatprep.subr.bf16.mxu0 %v7692_v32  ;;  %10700 = vst [vmem:[#allocation31_spill] sm:$0xff] %v9192_v6  ;;  %v9220_v31 = vsub.f32 %v9114_v41, %v1585_v0 }
  0x61   :  { %7789 = vmatprep.subr.bf16.mxu1 %v7788_v7 }
  0x63   :  { %7695 = vmatpush3.bf16.msra.mxu0 %v7692_v32  ;;  %v9225_v32 = vsub.f32 %v9117_v55, %v2314_v28  ;;  %v9282_v55 = vpack.c.bf16 %v2323_v9, %v2320_v24  ;;  %v10708_v24 = vand.u32 4294901760, %v9220_v31 }
  0x64   :  { %7791 = vmatpush3.bf16.msra.mxu1 %v7788_v7  ;;  %7697 = vmatprep.subr.bf16.mxu0 %v8661_v26  ;;  %v1594_v7 = vand.u32 4294901760, %v9186_v61 }
  0x65   :  { %7793 = vmatprep.subr.bf16.mxu1 %v8665_v27  ;;  %v1705_v9 = vsub.f32 %v9220_v31, %v10708_v24  ;;  %v10709_v21 = vand.u32 4294901760, %v9225_v32 }
  0x66   :  { %6665 = vmatmul.mubr.f32.vlgmr.msra.gmra.mrb[0].mxu0 %v8806_v1 }
  0x67   :  { %6797 = vmatmul.mubr.f32.vlgmr.msra.gmra.mrb[0].mxu1 %v8806_v1  ;;  %7699 = vmatpush3.bf16.msra.mxu0 %v8661_v26  ;;  %v9153_v26 = vpack.c.bf16 %v1585_v0, %v1582_v22  ;;  %v1597_v22 = vand.u32 4294901760, %v9192_v6  ;;  %v2430_v13 = vsub.f32 %v9225_v32, %v10709_v21  ;;  %v1706_v12 = vand.u32 4294901760, %v1705_v9 }
  0x68   :  { %7795 = vmatpush3.bf16.msra.mxu1 %v8665_v27  ;;  %7701 = vmatprep.subr.bf16.mxu0 %v8677_v30  ;;  %v9159_v27 = vpack.c.bf16 %v2317_v48, %v2314_v28  ;;  %v9242_v28 = vsel %vm1567_vm13, %v9095_v20, 0.0  ;;  %v9260_v48 = vsel %vm2300_vm1, %v9104_v3, 0.0 }
  0x69   :  { %7797 = vmatprep.subr.bf16.mxu1 %v8702_v36  ;;  %6667 = vmatprep.mubr.f32.mxu0 %v8918_v49  ;;  %10703 = vst [vmem:[#allocation34_spill] sm:$0xff] %v9242_v28  ;;  %10706 = vst [vmem:[#allocation37_spill] sm:$0xff] %v9260_v48  ;;  %v1600_v40 = vand.u32 4294901760, %v9242_v28  ;;  %v9288_v50 = vpack.c.bf16 %v1597_v22, %v1594_v7  ;;  %v9320_v35 = vsub.f32 %v9192_v6, %v1597_v22 }
  0x6a   :  { %6799 = vmatprep.mubr.f32.mxu1 %v8918_v49  ;;  %6668 = vmatmul.mubr.f32.gmra.mrb[2].mxu0 %v8967_v45  ;;  %v10711_v22 = vand.u32 4294901760, %v9265_v29 }
  0x6b   :  { %6800 = vmatmul.mubr.f32.gmra.mrb[2].mxu1 %v8967_v45  ;;  %7703 = vmatpush3.bf16.msra.mxu0 %v8677_v30  ;;  %v9198_v30 = vsel %vm2297_vm11, %v9104_v3, 0.0  ;;  %v9353_v33 = vsub.f32 %v9242_v28, %v1600_v40 }
  0x6c   :  { %7799 = vmatpush3.bf16.msra.mxu1 %v8702_v36  ;;  %10701 = vst [vmem:[#allocation32_spill] sm:$0xff] %v9198_v30  ;;  %7705 = vmatprep.subr.bf16.mxu0 %v8743_v46  ;;  %v9203_v36 = vsel %vm2298_vm12, %v9104_v3, 0.0  ;;  %v2326_v0 = vand.u32 4294901760, %v9198_v30  ;;  %v1712_v6 = vsub.f32 %v9265_v29, %v10711_v22 }
  0x6d   :  { %7801 = vmatprep.subr.bf16.mxu1 %v8749_v47  ;;  %10702 = vst [vmem:[#allocation33_spill] sm:$0xff] %v9203_v36  ;;  %6686 = vmatprep.mubr.f32.mxu0 %v8763_v53  ;;  %v2329_v51 = vand.u32 4294901760, %v9203_v36 }
  0x6e   :  { %6818 = vmatprep.mubr.f32.mxu1 %v8763_v53  ;;  %v9327_v21 = vsub.f32 %v9198_v30, %v2326_v0 }
  0x6f   :  { %7707 = vmatpush3.bf16.msra.mxu0 %v8743_v46  ;;  %v9248_v46 = vsel %vm1568_vm14, %v9095_v20, 0.0  ;;  %v9268_v20 = vsub.f32 %v9165_v56, %v1591_v17  ;;  %v9290_v60 = vpack.c.bf16 %v2329_v51, %v2326_v0  ;;  %v9317_v56 = vsub.f32 %v9186_v61, %v1594_v7 }
  0x70   :  { %7803 = vmatpush3.bf16.msra.mxu1 %v8749_v47  ;;  %7709 = vmatprep.subr.bf16.mxu0 %v8781_v58  ;;  %10704 = vst [vmem:[#allocation35_spill] sm:$0xff] %v9248_v46  ;;  %v9254_v47 = vsel %vm2299_vm15, %v9104_v3, 0.0  ;;  %v9280_v3 = vpack.c.bf16 %v1591_v17, %v1588_v57  ;;  %v1603_v41 = vand.u32 4294901760, %v9248_v46  ;;  %v10707_v57 = vand.u32 4294901760, %v9217_v8 }
  0x71   :  { %7805 = vmatprep.subr.bf16.mxu1 %v8801_v62  ;;  %10705 = vst [vmem:[#allocation36_spill] sm:$0xff] %v9254_v47  ;;  %v9330_v24 = vsub.f32 %v9203_v36, %v2329_v51  ;;  %v10712_v61 = vand.u32 4294901760, %v9268_v20  ;;  %v2431_v51 = vand.u32 4294901760, %v2430_v13  ;;  %v10713_v36 = vand.u32 4294901760, %v9273_v19 }
  0x72   :  { %v1698_v17 = vsub.f32 %v9217_v8, %v10707_v57  ;;  %v2437_v57 = vsub.f32 %v9228_v5, %v10710_v18  ;;  %v9314_v37 = vpack.c.bf16 %v1603_v41, %v1600_v40  ;;  %v9356_v13 = vsub.f32 %v9248_v46, %v1603_v41 }
  0x73   :  { %7711 = vmatpush3.bf16.msra.mxu0 %v8781_v58  ;;  %v2332_v58 = vand.u32 4294901760, %v9254_v47  ;;  %v1719_v34 = vsub.f32 %v9268_v20, %v10712_v61  ;;  %v2444_v30 = vsub.f32 %v9273_v19, %v10713_v36  ;;  %v1713_v41 = vand.u32 4294901760, %v1712_v6 }
  0x74   :  { %7807 = vmatpush3.bf16.msra.mxu1 %v8801_v62  ;;  %7809 = vmatprep.subr.bf16.mxu0 %v9153_v26  ;;  %v2335_v62 = vand.u32 4294901760, %v9260_v48  ;;  %v1699_v7 = vand.u32 4294901760, %v1698_v17  ;;  %v2438_v0 = vand.u32 4294901760, %v2437_v57  ;;  %v10714_v17 = vand.u32 4294901760, %v9276_v43 }
  0x75   :  { %7905 = vmatprep.subr.bf16.mxu1 %v9159_v27  ;;  %v1720_v46 = vand.u32 4294901760, %v1719_v34  ;;  %v2445_v28 = vand.u32 4294901760, %v2444_v30  ;;  %v10717_v34 = vand.u32 4294901760, %v9327_v21 }
  0x76   :  { %6687 = vmatmul.mubr.f32.vlgmr.msra.gmra.mrb[0].mxu0 %v8806_v1  ;;  %v9324_v18 = vpack.c.bf16 %v2335_v62, %v2332_v58  ;;  %v2451_v9 = vsub.f32 %v9276_v43, %v10714_v17  ;;  %v9363_v17 = vsub.f32 %v9254_v47, %v2332_v58  ;;  %v9366_v61 = vsub.f32 %v9260_v48, %v2335_v62 }
  0x77   :  { %6819 = vmatmul.mubr.f32.vlgmr.msra.gmra.mrb[0].mxu1 %v8806_v1  ;;  %7811 = vmatpush3.bf16.msra.mxu0 %v9153_v26  ;;  %v7824_v40 = vpack.c.bf16 %v1706_v12, %v1699_v7  ;;  %v7920_v22 = vpack.c.bf16 %v2438_v0, %v2431_v51  ;;  %v10715_v58 = vand.u32 4294901760, %v9317_v56  ;;  %v10716_v62 = vand.u32 4294901760, %v9320_v35 }
  0x78   :  { %7907 = vmatpush3.bf16.msra.mxu1 %v9159_v27  ;;  %6689 = vmatprep.mubr.f32.mxu0 %v8918_v49  ;;  %v2452_v15 = vand.u32 4294901760, %v2451_v9  ;;  %v2458_v30 = vsub.f32 %v9327_v21, %v10717_v34  ;;  %v10718_v7 = vand.u32 4294901760, %v9330_v24  ;;  %v10719_v48 = vand.u32 4294901760, %v9353_v33 }
  0x79   :  { %6821 = vmatprep.mubr.f32.mxu1 %v8918_v49  ;;  %7813 = vmatprep.subr.bf16.mxu0 %v9280_v3  ;;  %v1726_v57 = vsub.f32 %v9317_v56, %v10715_v58  ;;  %v1733_v36 = vsub.f32 %v9320_v35, %v10716_v62  ;;  %v7828_v58 = vpack.c.bf16 %v1720_v46, %v1713_v41  ;;  %v10720_v47 = vand.u32 4294901760, %v9356_v13 }
  0x7a   :  { %7909 = vmatprep.subr.bf16.mxu1 %v9282_v55  ;;  %6690 = vmatmul.mubr.f32.gmra.mrb[2].mxu0 %v8967_v45  ;;  %v2465_v51 = vsub.f32 %v9330_v24, %v10718_v7  ;;  %v7924_v62 = vpack.c.bf16 %v2452_v15, %v2445_v28  ;;  %v1740_v34 = vsub.f32 %v9353_v33, %v10719_v48  ;;  %v2459_v0 = vand.u32 4294901760, %v2458_v30 }
  0x7b   :  { %6822 = vmatmul.mubr.f32.gmra.mrb[2].mxu1 %v8967_v45  ;;  %7815 = vmatpush3.bf16.msra.mxu0 %v9280_v3  ;;  %v1727_v6 = vand.u32 4294901760, %v1726_v57  ;;  %v1734_v12 = vand.u32 4294901760, %v1733_v36  ;;  %v1747_v7 = vsub.f32 %v9356_v13, %v10720_v47  ;;  %v10721_v15 = vand.u32 4294901760, %v9363_v17 }
  0x7c   :  { %7911 = vmatpush3.bf16.msra.mxu1 %v9282_v55  ;;  %7817 = vmatprep.subr.bf16.mxu0 %v9288_v50  ;;  %v2466_v9 = vand.u32 4294901760, %v2465_v51  ;;  %v10722_v46 = vand.u32 4294901760, %v9366_v61  ;;  %v1741_v47 = vand.u32 4294901760, %v1740_v34  ;;  %v7852_v34 = vpack.c.bf16 %v9356_v13, %v9353_v33 }
  0x7d   :  { %7913 = vmatprep.subr.bf16.mxu1 %v9290_v60  ;;  %6840 = vmatprep.mubr.f32.mxu0 %v8850_v54  ;;  %v2472_v28 = vsub.f32 %v9363_v17, %v10721_v15  ;;  %v7832_v48 = vpack.c.bf16 %v1734_v12, %v1727_v6  ;;  %v1748_v41 = vand.u32 4294901760, %v1747_v7  ;;  %v7840_v12 = vpack.c.bf16 %v9220_v31, %v9217_v8 }
  0x7e   :  { %6972 = vmatprep.mubr.f32.mxu1 %v8850_v54  ;;  %v2479_v36 = vsub.f32 %v9366_v61, %v10722_v46  ;;  %v7928_v57 = vpack.c.bf16 %v2466_v9, %v2459_v0  ;;  %v7936_v6 = vpack.c.bf16 %v9228_v5, %v9225_v32  ;;  %v7844_v0 = vpack.c.bf16 %v9268_v20, %v9265_v29 }
  0x7f   :  { %7819 = vmatpush3.bf16.msra.mxu0 %v9288_v50  ;;  %v2473_v30 = vand.u32 4294901760, %v2472_v28  ;;  %v7940_v9 = vpack.c.bf16 %v9276_v43, %v9273_v19  ;;  %v7948_v7 = vpack.c.bf16 %v9366_v61, %v9363_v17  ;;  %v10723_v15 = vand.u32 4294901760, %v9217_v8 }
  0x80   :  { %7915 = vmatpush3.bf16.msra.mxu1 %v9290_v60  ;;  %7821 = vmatprep.subr.bf16.mxu0 %v9314_v37  ;;  %v2480_v51 = vand.u32 4294901760, %v2479_v36  ;;  %v10724_v28 = vand.u32 4294901760, %v9220_v31  ;;  %v10725_v36 = vand.u32 4294901760, %v9225_v32  ;;  %v10729_v8 = vand.u32 4294901760, %v9273_v19 }
  0x81   :  { %7917 = vmatprep.subr.bf16.mxu1 %v9324_v18  ;;  %v10730_v31 = vand.u32 4294901760, %v9276_v43  ;;  %v10731_v32 = vand.u32 4294901760, %v9317_v56  ;;  %v10734_v19 = vand.u32 4294901760, %v9330_v24 }
  0x82   :  { %v7872_v46 = vpack.c.bf16 %v10724_v28, %v10723_v15 }
  0x83   :  { %7823 = vmatpush3.bf16.msra.mxu0 %v9314_v37 }
  0x84   :  { %7919 = vmatpush3.bf16.msra.mxu1 %v9324_v18  ;;  %7825 = vmatprep.subr.bf16.mxu0 %v7824_v40 }
  0x85   :  { %7921 = vmatprep.subr.bf16.mxu1 %v7920_v22 }
  0x86   :  { %6841 = vmatmul.mubr.f32.vlgmr.msra.gmra.mrb[4].mxu0 %v8880_v25 }
  0x87   :  { %6973 = vmatmul.mubr.f32.vlgmr.msra.gmra.mrb[4].mxu1 %v8880_v25  ;;  %7827 = vmatpush3.bf16.msra.mxu0 %v7824_v40  ;;  %v7932_v40 = vpack.c.bf16 %v2480_v51, %v2473_v30  ;;  %v7972_v51 = vpack.c.bf16 %v10730_v31, %v10729_v8  ;;  %v10753_v8 = vld [vmem:[#allocation12_spill] sm:$0xff]  ;;  %v10754_v31 = vld [vmem:[#allocation13_spill] sm:$0xff] }
  0x88   :  { %7923 = vmatpush3.bf16.msra.mxu1 %v7920_v22  ;;  %7829 = vmatprep.subr.bf16.mxu0 %v7828_v58  ;;  %v7836_v22 = vpack.c.bf16 %v1748_v41, %v1741_v47  ;;  %v10728_v41 = vand.u32 4294901760, %v9268_v20  ;;  %v10733_v20 = vand.u32 4294901760, %v9327_v21 }
  0x89   :  { %7925 = vmatprep.subr.bf16.mxu1 %v7924_v62  ;;  %6843 = vmatprep.mubr.f32.mxu0 %v8973_v44 }
  0x8a   :  { %6975 = vmatprep.mubr.f32.mxu1 %v8973_v44  ;;  %6844 = vmatmul.mubr.f32.gmra.mrb[6].mxu0 %v8990_v38 }
  0x8b   :  { %6976 = vmatmul.mubr.f32.gmra.mrb[6].mxu1 %v8990_v38  ;;  %7831 = vmatpush3.bf16.msra.mxu0 %v7828_v58  ;;  %v7848_v58 = vpack.c.bf16 %v9320_v35, %v9317_v56  ;;  %v10736_v56 = vand.u32 4294901760, %v9356_v13  ;;  %v9522_v13 = vld [vmem:[%s10546_s1 + $0x5] ss:$0 sm:$0xff] }
  0x8c   :  { %7927 = vmatpush3.bf16.msra.mxu1 %v7924_v62  ;;  %7833 = vmatprep.subr.bf16.mxu0 %v7832_v48  ;;  %v7944_v62 = vpack.c.bf16 %v9330_v24, %v9327_v21  ;;  %v10737_v24 = vand.u32 4294901760, %v9363_v17  ;;  %v10738_v21 = vand.u32 4294901760, %v9366_v61  ;;  %v9513_v61 = vld [vmem:[%s10546_s1 + $0x4] ss:$0 sm:$0xff] }
  0x8d   :  { %7929 = vmatprep.subr.bf16.mxu1 %v7928_v57  ;;  %6862 = vmatprep.mubr.f32.mxu0 %v8763_v53 }
  0x8e   :  { %6994 = vmatprep.mubr.f32.mxu1 %v8763_v53 }
  0x8f   :  { %7835 = vmatpush3.bf16.msra.mxu0 %v7832_v48  ;;  %v10726_v48 = vand.u32 4294901760, %v9228_v5  ;;  %v10732_v5 = vand.u32 4294901760, %v9320_v35  ;;  %v10735_v35 = vand.u32 4294901760, %v9353_v33  ;;  %v9508_v33 = vld [vmem:[%s10545_s0 + $0x5] ss:$0 sm:$0xff] }
  0x90   :  { %7931 = vmatpush3.bf16.msra.mxu1 %v7928_v57  ;;  %7837 = vmatprep.subr.bf16.mxu0 %v7836_v22  ;;  %v10727_v57 = vand.u32 4294901760, %v9265_v29  ;;  %vm3757_vm3 = vcmp.eq.s32.totalorder %v8588_v4, %v9508_v33  ;;  %vm3758_vm4 = vcmp.eq.s32.totalorder %v8608_v10, %v9508_v33  ;;  %vm3759_vm7 = vcmp.eq.s32.totalorder %v8615_v11, %v9508_v33 }
  0x91   :  { %7933 = vmatprep.subr.bf16.mxu1 %v7932_v40  ;;  %v7968_v47 = vpack.c.bf16 %v10726_v48, %v10725_v36  ;;  %v7880_v29 = vpack.c.bf16 %v10732_v5, %v10731_v32  ;;  %v7884_v43 = vpack.c.bf16 %v10736_v56, %v10735_v35  ;;  %vm3760_vm8 = vcmp.eq.s32.totalorder %v8624_v14, %v9508_v33 }
  0x92   :  { %v7876_v30 = vpack.c.bf16 %v10728_v41, %v10727_v57  ;;  %v9598_v57 = vsel %vm3760_vm8, %v9522_v13, 0.0  ;;  %vm3763_vm15 = vcmp.eq.s32.totalorder %v10753_v8, %v9508_v33  ;;  %vm3764_vm1 = vcmp.eq.s32.totalorder %v10754_v31, %v9508_v33 }
  0x93   :  { %7839 = vmatpush3.bf16.msra.mxu0 %v7836_v22  ;;  %v7976_v22 = vpack.c.bf16 %v10734_v19, %v10733_v20  ;;  %10748 = vst [vmem:[#allocation45_spill] sm:$0xff] %v9598_v57  ;;  %v3787_v20 = vand.u32 4294901760, %v9598_v57 }
  0x94   :  { %7935 = vmatpush3.bf16.msra.mxu1 %v7932_v40  ;;  %7841 = vmatprep.subr.bf16.mxu0 %v7840_v12  ;;  %v7980_v40 = vpack.c.bf16 %v10738_v21, %v10737_v24 }
  0x95   :  { %7937 = vmatprep.subr.bf16.mxu1 %v7936_v6 }
  0x96   :  { %6863 = vmatmul.mubr.f32.vlgmr.msra.gmra.mrb[4].mxu0 %v8806_v1 }
  0x97   :  { %6995 = vmatmul.mubr.f32.vlgmr.msra.gmra.mrb[4].mxu1 %v8806_v1  ;;  %7843 = vmatpush3.bf16.msra.mxu0 %v7840_v12  ;;  %v9501_v12 = vld [vmem:[%s10545_s0 + $0x4] ss:$0 sm:$0xff] }
  0x98   :  { %7939 = vmatpush3.bf16.msra.mxu1 %v7936_v6  ;;  %7845 = vmatprep.subr.bf16.mxu0 %v7844_v0  ;;  %vm3025_vm0 = vcmp.eq.s32.totalorder %v8588_v4, %v9501_v12  ;;  %vm3026_vm2 = vcmp.eq.s32.totalorder %v8608_v10, %v9501_v12  ;;  %vm3027_vm5 = vcmp.eq.s32.totalorder %v8615_v11, %v9501_v12 }
  0x99   :  { %7941 = vmatprep.subr.bf16.mxu1 %v7940_v9  ;;  %6865 = vmatprep.mubr.f32.mxu0 %v8918_v49  ;;  %v9529_v17 = vsel %vm3025_vm0, %v9513_v61, 0.0  ;;  %v9532_v6 = vsel %vm3026_vm2, %v9513_v61, 0.0  ;;  %vm3028_vm6 = vcmp.eq.s32.totalorder %v8624_v14, %v9501_v12  ;;  %v9555_v15 = vsel %vm3027_vm5, %v9513_v61, 0.0 }
  0x9a   :  { %6997 = vmatprep.mubr.f32.mxu1 %v8918_v49  ;;  %6866 = vmatmul.mubr.f32.gmra.mrb[6].mxu0 %v8967_v45  ;;  %10739 = vst [vmem:[#allocation38_spill] sm:$0xff] %v9529_v17  ;;  %10740 = vst [vmem:[#allocation39_spill] sm:$0xff] %v9532_v6  ;;  %v9583_v36 = vsel %vm3028_vm6, %v9513_v61, 0.0  ;;  %v3052_v48 = vand.u32 4294901760, %v9555_v15  ;;  %vm3031_vm13 = vcmp.eq.s32.totalorder %v10753_v8, %v9501_v12 }
  0x9b   :  { %6998 = vmatmul.mubr.f32.gmra.mrb[6].mxu1 %v8967_v45  ;;  %7847 = vmatpush3.bf16.msra.mxu0 %v7844_v0  ;;  %v9535_v0 = vsel %vm3757_vm3, %v9522_v13, 0.0  ;;  %10743 = vst [vmem:[#allocation42_spill] sm:$0xff] %v9555_v15  ;;  %10746 = vst [vmem:[#allocation43_spill] sm:$0xff] %v9583_v36  ;;  %vm3032_vm14 = vcmp.eq.s32.totalorder %v10754_v31, %v9501_v12  ;;  %v9660_v21 = vsel %vm3031_vm13, %v9513_v61, 0.0 }
  0x9c   :  { %7943 = vmatpush3.bf16.msra.mxu1 %v7940_v9  ;;  %7849 = vmatprep.subr.bf16.mxu0 %v7848_v58  ;;  %10741 = vst [vmem:[#allocation40_spill] sm:$0xff] %v9535_v0  ;;  %v9538_v9 = vsel %vm3758_vm4, %v9522_v13, 0.0  ;;  %10755 = vst [vmem:[#allocation50_spill] sm:$0xff] %v9660_v21 }
  0x9d   :  { %7945 = vmatprep.subr.bf16.mxu1 %v7944_v62  ;;  %6884 = vmatprep.mubr.f32.mxu0 %v8785_v59  ;;  %10742 = vst [vmem:[#allocation41_spill] sm:$0xff] %v9538_v9 }
  0x9e   :  { %7016 = vmatprep.mubr.f32.mxu1 %v8785_v59 }
  0x9f   :  { %7851 = vmatpush3.bf16.msra.mxu0 %v7848_v58  ;;  %v3046_v58 = vand.u32 4294901760, %v9529_v17 }
  0xa0   :  { %7947 = vmatpush3.bf16.msra.mxu1 %v7944_v62  ;;  %7853 = vmatprep.subr.bf16.mxu0 %v7852_v34  ;;  %v3049_v62 = vand.u32 4294901760, %v9532_v6 }
  0xa1   :  { %7949 = vmatprep.subr.bf16.mxu1 %v7948_v7  ;;  %v9635_v32 = vsub.f32 %v9529_v17, %v3046_v58 }
  0xa2   :  { %v9571_v28 = vpack.c.bf16 %v3049_v62, %v3046_v58  ;;  %v9638_v5 = vsub.f32 %v9532_v6, %v3049_v62  ;;  %v3064_v58 = vand.u32 4294901760, %v9660_v21 }
  0xa3   :  { %7855 = vmatpush3.bf16.msra.mxu0 %v7852_v34  ;;  %v3778_v34 = vand.u32 4294901760, %v9535_v0 }
  0xa4   :  { %7951 = vmatpush3.bf16.msra.mxu1 %v7948_v7  ;;  %7857 = vmatprep.subr.bf16.mxu0 %v9153_v26  ;;  %v3781_v7 = vand.u32 4294901760, %v9538_v9 }
  0xa5   :  { %7953 = vmatprep.subr.bf16.mxu1 %v9159_v27  ;;  %v9643_v19 = vsub.f32 %v9535_v0, %v3778_v34 }
  0xa6   :  { %6885 = vmatmul.mubr.f32.vlgmr.msra.gmra.mrb[4].mxu0 %v8828_v16 }
  0xa7   :  { %7017 = vmatmul.mubr.f32.vlgmr.msra.gmra.mrb[4].mxu1 %v8828_v16  ;;  %7859 = vmatpush3.bf16.msra.mxu0 %v9153_v26 }
  0xa8   :  { %7955 = vmatpush3.bf16.msra.mxu1 %v9159_v27  ;;  %7861 = vmatprep.subr.bf16.mxu0 %v9280_v3 }
  0xa9   :  { %7957 = vmatprep.subr.bf16.mxu1 %v9282_v55  ;;  %6887 = vmatprep.mubr.f32.mxu0 %v8932_v39 }
  0xaa   :  { %7019 = vmatprep.mubr.f32.mxu1 %v8932_v39  ;;  %6888 = vmatmul.mubr.f32.gmra.mrb[6].mxu0 %v8976_v42 }
  0xab   :  { %7020 = vmatmul.mubr.f32.gmra.mrb[6].mxu1 %v8976_v42  ;;  %7863 = vmatpush3.bf16.msra.mxu0 %v9280_v3 }
  0xac   :  { %7959 = vmatpush3.bf16.msra.mxu1 %v9282_v55  ;;  %7865 = vmatprep.subr.bf16.mxu0 %v9288_v50 }
  0xad   :  { %7961 = vmatprep.subr.bf16.mxu1 %v9290_v60  ;;  %6906 = vmatprep.mubr.f32.mxu0 %v8810_v2 }
  0xae   :  { %7038 = vmatprep.mubr.f32.mxu1 %v8810_v2 }
  0xaf   :  { %7867 = vmatpush3.bf16.msra.mxu0 %v9288_v50 }
  0xb0   :  { %7963 = vmatpush3.bf16.msra.mxu1 %v9290_v60  ;;  %7869 = vmatprep.subr.bf16.mxu0 %v9314_v37 }
  0xb1   :  { %7965 = vmatprep.subr.bf16.mxu1 %v9324_v18 }
  0xb3   :  { %7871 = vmatpush3.bf16.msra.mxu0 %v9314_v37 }
  0xb4   :  { %7967 = vmatpush3.bf16.msra.mxu1 %v9324_v18  ;;  %7873 = vmatprep.subr.bf16.mxu0 %v7872_v46 }
  0xb5   :  { %7969 = vmatprep.subr.bf16.mxu1 %v7968_v47 }
  0xb6   :  { %6907 = vmatmul.mubr.f32.vlgmr.msra.gmra.mrb[4].mxu0 %v8847_v63 }
  0xb7   :  { %7039 = vmatmul.mubr.f32.vlgmr.msra.gmra.mrb[4].mxu1 %v8847_v63  ;;  %7875 = vmatpush3.bf16.msra.mxu0 %v7872_v46  ;;  %v9577_v46 = vpack.c.bf16 %v3781_v7, %v3778_v34 }
  0xb8   :  { %7971 = vmatpush3.bf16.msra.mxu1 %v7968_v47  ;;  %7877 = vmatprep.subr.bf16.mxu0 %v7876_v30  ;;  %v9590_v47 = vsel %vm3759_vm7, %v9522_v13, 0.0 }
  0xb9   :  { %7973 = vmatprep.subr.bf16.mxu1 %v7972_v51  ;;  %6909 = vmatprep.mubr.f32.mxu0 %v8949_v23  ;;  %10747 = vst [vmem:[#allocation44_spill] sm:$0xff] %v9590_v47 }
  0xba   :  { %7041 = vmatprep.mubr.f32.mxu1 %v8949_v23  ;;  %6910 = vmatmul.mubr.f32.gmra.mrb[6].mxu0 %v8983_v52 }
  0xbb   :  { %7042 = vmatmul.mubr.f32.gmra.mrb[6].mxu1 %v8983_v52  ;;  %7879 = vmatpush3.bf16.msra.mxu0 %v7876_v30 }
  0xbc   :  { %7975 = vmatpush3.bf16.msra.mxu1 %v7972_v51  ;;  %7881 = vmatprep.subr.bf16.mxu0 %v7880_v29  ;;  %v3055_v51 = vand.u32 4294901760, %v9583_v36 }
  0xbd   :  { %7977 = vmatprep.subr.bf16.mxu1 %v7976_v22  ;;  %6928 = vmatprep.mubr.f32.mxu0 %v8763_v53 }
  0xbe   :  { %7060 = vmatprep.mubr.f32.mxu1 %v8763_v53 }
  0xbf   :  { %7883 = vmatpush3.bf16.msra.mxu0 %v7880_v29  ;;  %v3784_v29 = vand.u32 4294901760, %v9590_v47 }
  0xc0   :  { %7979 = vmatpush3.bf16.msra.mxu1 %v7976_v22  ;;  %7885 = vmatprep.subr.bf16.mxu0 %v7884_v43  ;;  %v9646_v22 = vsub.f32 %v9538_v9, %v3781_v7 }
  0xc1   :  { %7981 = vmatprep.subr.bf16.mxu1 %v7980_v40  ;;  %v9691_v9 = vsub.f32 %v9590_v47, %v3784_v29  ;;  %v9700_v62 = vpack.c.bf16 %v3787_v20, %v3784_v29  ;;  %v10760_v29 = vand.u32 4294901760, %v9638_v5 }
  0xc2   :  { %v10762_v6 = vand.u32 4294901760, %v9646_v22 }
  0xc3   :  { %7887 = vmatpush3.bf16.msra.mxu0 %v7884_v43 }
  0xc4   :  { %7983 = vmatpush3.bf16.msra.mxu1 %v7980_v40  ;;  %7889 = vmatprep.subr.bf16.mxu0 %v9153_v26  ;;  %v9678_v40 = vsel %vm3764_vm1, %v9522_v13, 0.0 }
  0xc5   :  { %7985 = vmatprep.subr.bf16.mxu1 %v9159_v27  ;;  %10758 = vst [vmem:[#allocation53_spill] sm:$0xff] %v9678_v40 }
  0xc6   :  { %6929 = vmatmul.mubr.f32.vlgmr.msra.gmra.mrb[4].mxu0 %v8806_v1 }
  0xc7   :  { %7061 = vmatmul.mubr.f32.vlgmr.msra.gmra.mrb[4].mxu1 %v8806_v1  ;;  %7891 = vmatpush3.bf16.msra.mxu0 %v9153_v26  ;;  %v10744_v26 = vld [vmem:[#allocation4_spill] sm:$0xff] }
  0xc8   :  { %7987 = vmatpush3.bf16.msra.mxu1 %v9159_v27  ;;  %7893 = vmatprep.subr.bf16.mxu0 %v9280_v3  ;;  %vm3029_vm9 = vcmp.eq.s32.totalorder %v10744_v26, %v9501_v12  ;;  %v10745_v27 = vld [vmem:[#allocation11_spill] sm:$0xff]  ;;  %vm3761_vm11 = vcmp.eq.s32.totalorder %v10744_v26, %v9508_v33 }
  0xc9   :  { %7989 = vmatprep.subr.bf16.mxu1 %v9282_v55  ;;  %vm3030_vm10 = vcmp.eq.s32.totalorder %v10745_v27, %v9501_v12  ;;  %6931 = vmatprep.mubr.f32.mxu0 %v8918_v49  ;;  %vm3762_vm12 = vcmp.eq.s32.totalorder %v10745_v27, %v9508_v33  ;;  %v9604_v41 = vsel %vm3029_vm9, %v9513_v61, 0.0  ;;  %v9683_v12 = vsub.f32 %v9555_v15, %v3052_v48 }
  0xca   :  { %7063 = vmatprep.mubr.f32.mxu1 %v8918_v49  ;;  %6932 = vmatmul.mubr.f32.gmra.mrb[6].mxu0 %v8967_v45  ;;  %10749 = vst [vmem:[#allocation46_spill] sm:$0xff] %v9604_v41  ;;  %v9610_v30 = vsel %vm3030_vm10, %v9513_v61, 0.0  ;;  %v3058_v35 = vand.u32 4294901760, %v9604_v41  ;;  %v9694_v33 = vsub.f32 %v9598_v57, %v3787_v20  ;;  %v3169_v20 = vsub.f32 %v9638_v5, %v10760_v29 }
  0xcb   :  { %7064 = vmatmul.mubr.f32.gmra.mrb[6].mxu1 %v8967_v45  ;;  %7895 = vmatpush3.bf16.msra.mxu0 %v9280_v3  ;;  %10750 = vst [vmem:[#allocation47_spill] sm:$0xff] %v9610_v30  ;;  %v9621_v3 = vsel %vm3762_vm12, %v9522_v13, 0.0  ;;  %v3061_v56 = vand.u32 4294901760, %v9610_v30  ;;  %v10761_v15 = vand.u32 4294901760, %v9643_v19  ;;  %v9771_v27 = vsub.f32 %v9660_v21, %v3064_v58 }
  0xcc   :  { %7991 = vmatpush3.bf16.msra.mxu1 %v9282_v55  ;;  %v9616_v55 = vsel %vm3761_vm11, %v9522_v13, 0.0  ;;  %7897 = vmatprep.subr.bf16.mxu0 %v9288_v50  ;;  %10752 = vst [vmem:[#allocation49_spill] sm:$0xff] %v9621_v3  ;;  %v3793_v24 = vand.u32 4294901760, %v9621_v3  ;;  %v3170_v17 = vand.u32 4294901760, %v3169_v20 }
  0xcd   :  { %10751 = vst [vmem:[#allocation48_spill] sm:$0xff] %v9616_v55  ;;  %7993 = vmatprep.subr.bf16.mxu1 %v9290_v60  ;;  %6950 = vmatprep.mubr.f32.mxu0 %v8763_v53  ;;  %v3790_v43 = vand.u32 4294901760, %v9616_v55  ;;  %v9706_v7 = vpack.c.bf16 %v3061_v56, %v3058_v35  ;;  %v3894_v0 = vsub.f32 %v9643_v19, %v10761_v15 }
  0xce   :  { %7082 = vmatprep.mubr.f32.mxu1 %v8763_v53  ;;  %v9738_v31 = vsub.f32 %v9610_v30, %v3061_v56  ;;  %v9748_v29 = vsub.f32 %v9621_v3, %v3793_v24  ;;  %v10763_v56 = vand.u32 4294901760, %v9683_v12  ;;  %v10765_v3 = vand.u32 4294901760, %v9691_v9 }
  0xcf   :  { %7899 = vmatpush3.bf16.msra.mxu0 %v9288_v50  ;;  %v9666_v50 = vsel %vm3032_vm14, %v9513_v61, 0.0  ;;  %v9686_v61 = vsub.f32 %v9583_v36, %v3055_v51  ;;  %v9708_v57 = vpack.c.bf16 %v3793_v24, %v3790_v43  ;;  %v9735_v36 = vsub.f32 %v9604_v41, %v3058_v35 }
  0xd0   :  { %7995 = vmatpush3.bf16.msra.mxu1 %v9290_v60  ;;  %7901 = vmatprep.subr.bf16.mxu0 %v9314_v37  ;;  %10756 = vst [vmem:[#allocation51_spill] sm:$0xff] %v9666_v50  ;;  %v9672_v60 = vsel %vm3763_vm15, %v9522_v13, 0.0  ;;  %v9698_v13 = vpack.c.bf16 %v3055_v51, %v3052_v48  ;;  %v3067_v34 = vand.u32 4294901760, %v9666_v50  ;;  %v10759_v48 = vand.u32 4294901760, %v9635_v32 }
  0xd1   :  { %7997 = vmatprep.subr.bf16.mxu1 %v9324_v18  ;;  %10757 = vst [vmem:[#allocation52_spill] sm:$0xff] %v9672_v60  ;;  %v9745_v15 = vsub.f32 %v9616_v55, %v3790_v43  ;;  %v3176_v30 = vsub.f32 %v9683_v12, %v10763_v56  ;;  %v10764_v41 = vand.u32 4294901760, %v9686_v61  ;;  %v3895_v43 = vand.u32 4294901760, %v3894_v0 }
  0xd2   :  { %v3162_v51 = vsub.f32 %v9635_v32, %v10759_v48  ;;  %v3901_v48 = vsub.f32 %v9646_v22, %v10762_v6  ;;  %v9732_v47 = vpack.c.bf16 %v3067_v34, %v3064_v58  ;;  %v3908_v55 = vsub.f32 %v9691_v9, %v10765_v3 }
  0xd3   :  { %7903 = vmatpush3.bf16.msra.mxu0 %v9314_v37  ;;  %v3796_v37 = vand.u32 4294901760, %v9672_v60  ;;  %v3183_v8 = vsub.f32 %v9686_v61, %v10764_v41  ;;  %v9774_v0 = vsub.f32 %v9666_v50, %v3067_v34  ;;  %v3177_v34 = vand.u32 4294901760, %v3176_v30 }
  0xd4   :  { %7999 = vmatpush3.bf16.msra.mxu1 %v9324_v18  ;;  %8001 = vmatprep.subr.bf16.mxu0 %v9571_v28  ;;  %v3799_v18 = vand.u32 4294901760, %v9678_v40  ;;  %v3163_v35 = vand.u32 4294901760, %v3162_v51  ;;  %v3902_v24 = vand.u32 4294901760, %v3901_v48  ;;  %v10766_v51 = vand.u32 4294901760, %v9694_v33 }
  0xd5   :  { %8097 = vmatprep.subr.bf16.mxu1 %v9577_v46  ;;  %v3184_v50 = vand.u32 4294901760, %v3183_v8  ;;  %v3909_v21 = vand.u32 4294901760, %v3908_v55  ;;  %v10769_v55 = vand.u32 4294901760, %v9745_v15 }
  0xd6   :  { %6951 = vmatmul.mubr.f32.vlgmr.msra.gmra.mrb[4].mxu0 %v8806_v1  ;;  %v9742_v6 = vpack.c.bf16 %v3799_v18, %v3796_v37  ;;  %v3915_v20 = vsub.f32 %v9694_v33, %v10766_v51  ;;  %v9781_v51 = vsub.f32 %v9672_v60, %v3796_v37  ;;  %v9784_v41 = vsub.f32 %v9678_v40, %v3799_v18 }
  0xd7   :  { %7083 = vmatmul.mubr.f32.vlgmr.msra.gmra.mrb[4].mxu1 %v8806_v1  ;;  %8003 = vmatpush3.bf16.msra.mxu0 %v9571_v28  ;;  %v8016_v58 = vpack.c.bf16 %v3170_v17, %v3163_v35  ;;  %v8112_v56 = vpack.c.bf16 %v3902_v24, %v3895_v43  ;;  %v10767_v37 = vand.u32 4294901760, %v9735_v36  ;;  %v10768_v18 = vand.u32 4294901760, %v9738_v31 }
  0xd8   :  { %8099 = vmatpush3.bf16.msra.mxu1 %v9577_v46  ;;  %6953 = vmatprep.mubr.f32.mxu0 %v8918_v49  ;;  %v3916_v26 = vand.u32 4294901760, %v3915_v20  ;;  %v3922_v8 = vsub.f32 %v9745_v15, %v10769_v55  ;;  %v10770_v35 = vand.u32 4294901760, %v9748_v29  ;;  %v10771_v40 = vand.u32 4294901760, %v9771_v27 }
  0xd9   :  { %7085 = vmatprep.mubr.f32.mxu1 %v8918_v49  ;;  %8005 = vmatprep.subr.bf16.mxu0 %v9698_v13  ;;  %v3190_v48 = vsub.f32 %v9735_v36, %v10767_v37  ;;  %v3197_v3 = vsub.f32 %v9738_v31, %v10768_v18  ;;  %v8020_v37 = vpack.c.bf16 %v3184_v50, %v3177_v34  ;;  %v10772_v60 = vand.u32 4294901760, %v9774_v0 }
  0xda   :  { %8101 = vmatprep.subr.bf16.mxu1 %v9700_v62  ;;  %6954 = vmatmul.mubr.f32.gmra.mrb[6].mxu0 %v8967_v45  ;;  %v3929_v43 = vsub.f32 %v9748_v29, %v10770_v35  ;;  %v8116_v18 = vpack.c.bf16 %v3916_v26, %v3909_v21  ;;  %v3204_v55 = vsub.f32 %v9771_v27, %v10771_v40  ;;  %v3923_v24 = vand.u32 4294901760, %v3922_v8 }
  0xdb   :  { %7086 = vmatmul.mubr.f32.gmra.mrb[6].mxu1 %v8967_v45  ;;  %8007 = vmatpush3.bf16.msra.mxu0 %v9698_v13  ;;  %v3191_v30 = vand.u32 4294901760, %v3190_v48  ;;  %v3198_v17 = vand.u32 4294901760, %v3197_v3  ;;  %v3211_v35 = vsub.f32 %v9774_v0, %v10772_v60  ;;  %v10773_v26 = vand.u32 4294901760, %v9781_v51 }
  0xdc   :  { %8103 = vmatpush3.bf16.msra.mxu1 %v9700_v62  ;;  %8009 = vmatprep.subr.bf16.mxu0 %v9706_v7  ;;  %v3930_v20 = vand.u32 4294901760, %v3929_v43  ;;  %v10774_v50 = vand.u32 4294901760, %v9784_v41  ;;  %v3205_v60 = vand.u32 4294901760, %v3204_v55  ;;  %v8044_v55 = vpack.c.bf16 %v9774_v0, %v9771_v27 }
  0xdd   :  { %8105 = vmatprep.subr.bf16.mxu1 %v9708_v57  ;;  %7104 = vmatprep.mubr.f32.mxu0 %v8850_v54  ;;  %v3936_v21 = vsub.f32 %v9781_v51, %v10773_v26  ;;  %v8024_v40 = vpack.c.bf16 %v3198_v17, %v3191_v30  ;;  %v3212_v34 = vand.u32 4294901760, %v3211_v35  ;;  %v8032_v17 = vpack.c.bf16 %v9638_v5, %v9635_v32 }
  0xde   :  { %7236 = vmatprep.mubr.f32.mxu1 %v8850_v54  ;;  %v3943_v3 = vsub.f32 %v9784_v41, %v10774_v50  ;;  %v8120_v48 = vpack.c.bf16 %v3930_v20, %v3923_v24  ;;  %v8128_v30 = vpack.c.bf16 %v9646_v22, %v9643_v19  ;;  %v8036_v24 = vpack.c.bf16 %v9686_v61, %v9683_v12 }
  0xdf   :  { %8011 = vmatpush3.bf16.msra.mxu0 %v9706_v7  ;;  %v3937_v8 = vand.u32 4294901760, %v3936_v21  ;;  %v8132_v20 = vpack.c.bf16 %v9694_v33, %v9691_v9  ;;  %v8140_v35 = vpack.c.bf16 %v9784_v41, %v9781_v51  ;;  %v10775_v26 = vand.u32 4294901760, %v9635_v32 }
  0xe0   :  { %8107 = vmatpush3.bf16.msra.mxu1 %v9708_v57  ;;  %8013 = vmatprep.subr.bf16.mxu0 %v9732_v47  ;;  %v3944_v43 = vand.u32 4294901760, %v3943_v3  ;;  %v10776_v21 = vand.u32 4294901760, %v9638_v5  ;;  %v10777_v3 = vand.u32 4294901760, %v9643_v19  ;;  %v10781_v32 = vand.u32 4294901760, %v9691_v9 }
  0xe1   :  { %8109 = vmatprep.subr.bf16.mxu1 %v9742_v6  ;;  %v10782_v5 = vand.u32 4294901760, %v9694_v33  ;;  %v10783_v19 = vand.u32 4294901760, %v9735_v36  ;;  %v10786_v9 = vand.u32 4294901760, %v9748_v29  ;;  %v10788_v33 = vand.u32 4294901760, %v9774_v0 }
  0xe2   :  { %v8064_v50 = vpack.c.bf16 %v10776_v21, %v10775_v26 }
  0xe3   :  { %8015 = vmatpush3.bf16.msra.mxu0 %v9732_v47 }
  0xe4   :  { %8111 = vmatpush3.bf16.msra.mxu1 %v9742_v6  ;;  %8017 = vmatprep.subr.bf16.mxu0 %v8016_v58 }
  0xe5   :  { %8113 = vmatprep.subr.bf16.mxu1 %v8112_v56 }
  0xe6   :  { %7105 = vmatmul.mubr.f32.vlgmr.msra.gmra.mrb[8].mxu0 %v8880_v25 }
  0xe7   :  { %7237 = vmatmul.mubr.f32.vlgmr.msra.gmra.mrb[8].mxu1 %v8880_v25  ;;  %8019 = vmatpush3.bf16.msra.mxu0 %v8016_v58  ;;  %v8124_v58 = vpack.c.bf16 %v3944_v43, %v3937_v8  ;;  %v8164_v43 = vpack.c.bf16 %v10782_v5, %v10781_v32 }
  0xe8   :  { %8115 = vmatpush3.bf16.msra.mxu1 %v8112_v56  ;;  %8021 = vmatprep.subr.bf16.mxu0 %v8020_v37  ;;  %v8028_v56 = vpack.c.bf16 %v3212_v34, %v3205_v60  ;;  %v10780_v34 = vand.u32 4294901760, %v9686_v61  ;;  %v10785_v61 = vand.u32 4294901760, %v9745_v15 }
  0xe9   :  { %8117 = vmatprep.subr.bf16.mxu1 %v8116_v18  ;;  %7107 = vmatprep.mubr.f32.mxu0 %v8973_v44 }
  0xea   :  { %7239 = vmatprep.mubr.f32.mxu1 %v8973_v44  ;;  %7108 = vmatmul.mubr.f32.gmra.mrb[10].mxu0 %v8990_v38 }
  0xeb   :  { %7240 = vmatmul.mubr.f32.gmra.mrb[10].mxu1 %v8990_v38  ;;  %8023 = vmatpush3.bf16.msra.mxu0 %v8020_v37  ;;  %v8040_v37 = vpack.c.bf16 %v9738_v31, %v9735_v36  ;;  %v9911_v36 = vld [vmem:[%s10545_s0 + $0x6] ss:$0 sm:$0xff] }
  0xec   :  { %8119 = vmatpush3.bf16.msra.mxu1 %v8116_v18  ;;  %8025 = vmatprep.subr.bf16.mxu0 %v8024_v40  ;;  %v8136_v18 = vpack.c.bf16 %v9748_v29, %v9745_v15  ;;  %v10789_v15 = vand.u32 4294901760, %v9781_v51  ;;  %vm4489_vm0 = vcmp.eq.s32.totalorder %v8588_v4, %v9911_v36  ;;  %vm4490_vm2 = vcmp.eq.s32.totalorder %v8608_v10, %v9911_v36 }
  0xed   :  { %8121 = vmatprep.subr.bf16.mxu1 %v8120_v48  ;;  %7126 = vmatprep.mubr.f32.mxu0 %v8763_v53  ;;  %vm4491_vm5 = vcmp.eq.s32.totalorder %v8615_v11, %v9911_v36  ;;  %vm4492_vm6 = vcmp.eq.s32.totalorder %v8624_v14, %v9911_v36 }
  0xee   :  { %7258 = vmatprep.mubr.f32.mxu1 %v8763_v53 }
  0xef   :  { %8027 = vmatpush3.bf16.msra.mxu0 %v8024_v40  ;;  %v10778_v40 = vand.u32 4294901760, %v9646_v22  ;;  %v10784_v22 = vand.u32 4294901760, %v9738_v31  ;;  %v10787_v31 = vand.u32 4294901760, %v9771_v27  ;;  %v9933_v27 = vld [vmem:[%s10546_s1 + $0x6] ss:$0 sm:$0xff] }
  0xf0   :  { %8123 = vmatpush3.bf16.msra.mxu1 %v8120_v48  ;;  %8029 = vmatprep.subr.bf16.mxu0 %v8028_v56  ;;  %v10779_v48 = vand.u32 4294901760, %v9683_v12  ;;  %v9947_v0 = vsel %vm4489_vm0, %v9933_v27, 0.0  ;;  %v9950_v51 = vsel %vm4490_vm2, %v9933_v27, 0.0 }
  0xf1   :  { %8125 = vmatprep.subr.bf16.mxu1 %v8124_v58  ;;  %v8160_v60 = vpack.c.bf16 %v10778_v40, %v10777_v3  ;;  %v8072_v12 = vpack.c.bf16 %v10784_v22, %v10783_v19  ;;  %v8076_v29 = vpack.c.bf16 %v10788_v33, %v10787_v31 }
  0xf2   :  { %v8068_v8 = vpack.c.bf16 %v10780_v34, %v10779_v48 }
  0xf3   :  { %8031 = vmatpush3.bf16.msra.mxu0 %v8028_v56  ;;  %v8168_v56 = vpack.c.bf16 %v10786_v9, %v10785_v61 }
  0xf4   :  { %8127 = vmatpush3.bf16.msra.mxu1 %v8124_v58  ;;  %8033 = vmatprep.subr.bf16.mxu0 %v8032_v17  ;;  %v10790_v58 = vand.u32 4294901760, %v9784_v41  ;;  %v9940_v41 = vld [vmem:[%s10546_s1 + $0x7] ss:$0 sm:$0xff] }
  0xf5   :  { %8129 = vmatprep.subr.bf16.mxu1 %v8128_v30 }
  0xf6   :  { %7127 = vmatmul.mubr.f32.vlgmr.msra.gmra.mrb[8].mxu0 %v8806_v1 }
  0xf7   :  { %7259 = vmatmul.mubr.f32.vlgmr.msra.gmra.mrb[8].mxu1 %v8806_v1  ;;  %8035 = vmatpush3.bf16.msra.mxu0 %v8032_v17  ;;  %v8172_v17 = vpack.c.bf16 %v10790_v58, %v10789_v15 }
  0xf8   :  { %8131 = vmatpush3.bf16.msra.mxu1 %v8128_v30  ;;  %8037 = vmatprep.subr.bf16.mxu0 %v8036_v24  ;;  %v9924_v30 = vld [vmem:[%s10545_s0 + $0x7] ss:$0 sm:$0xff] }
  0xf9   :  { %8133 = vmatprep.subr.bf16.mxu1 %v8132_v20  ;;  %7129 = vmatprep.mubr.f32.mxu0 %v8918_v49  ;;  %vm5221_vm3 = vcmp.eq.s32.totalorder %v8588_v4, %v9924_v30  ;;  %vm5222_vm4 = vcmp.eq.s32.totalorder %v8608_v10, %v9924_v30  ;;  %v4510_v4 = vand.u32 4294901760, %v9947_v0  ;;  %v4513_v10 = vand.u32 4294901760, %v9950_v51 }
  0xfa   :  { %7261 = vmatprep.mubr.f32.mxu1 %v8918_v49  ;;  %7130 = vmatmul.mubr.f32.gmra.mrb[10].mxu0 %v8967_v45  ;;  %vm5223_vm7 = vcmp.eq.s32.totalorder %v8615_v11, %v9924_v30  ;;  %vm5224_vm8 = vcmp.eq.s32.totalorder %v8624_v14, %v9924_v30  ;;  %v10796_v11 = vld [vmem:[#allocation11_spill] sm:$0xff] }
  0xfb   :  { %7262 = vmatmul.mubr.f32.gmra.mrb[10].mxu1 %v8967_v45  ;;  %8039 = vmatpush3.bf16.msra.mxu0 %v8036_v24  ;;  %v9953_v24 = vsel %vm5221_vm3, %v9940_v41, 0.0  ;;  %vm4494_vm10 = vcmp.eq.s32.totalorder %v10796_v11, %v9911_v36  ;;  %v10002_v3 = vsel %vm5224_vm8, %v9940_v41, 0.0  ;;  %vm5226_vm12 = vcmp.eq.s32.totalorder %v10796_v11, %v9924_v30 }
  0xfc   :  { %8135 = vmatpush3.bf16.msra.mxu1 %v8132_v20  ;;  %8041 = vmatprep.subr.bf16.mxu0 %v8040_v37  ;;  %10791 = vst [vmem:[#allocation54_spill] sm:$0xff] %v9953_v24  ;;  %v9956_v20 = vsel %vm5222_vm4, %v9940_v41, 0.0  ;;  %10798 = vst [vmem:[#allocation11_spill] sm:$0xff] %v10002_v3  ;;  %v10025_v48 = vsub.f32 %v9947_v0, %v4510_v4  ;;  %v10058_v9 = vsel %vm5226_vm12, %v9940_v41, 0.0 }
  0xfd   :  { %8137 = vmatprep.subr.bf16.mxu1 %v8136_v18  ;;  %7148 = vmatprep.mubr.f32.mxu0 %v8785_v59  ;;  %10792 = vst [vmem:[#allocation55_spill] sm:$0xff] %v9956_v20  ;;  %10804 = vst [vmem:[#allocation59_spill] sm:$0xff] %v10058_v9 }
  0xfe   :  { %7280 = vmatprep.mubr.f32.mxu1 %v8785_v59  ;;  %v10628_v33 = vand.u32 4294901760, %v10025_v48 }
  0xff   :  { %8043 = vmatpush3.bf16.msra.mxu0 %v8040_v37  ;;  %v5242_v37 = vand.u32 4294901760, %v9953_v24 }
 0x100   :  { %8139 = vmatpush3.bf16.msra.mxu1 %v8136_v18  ;;  %8045 = vmatprep.subr.bf16.mxu0 %v8044_v55  ;;  %v5245_v18 = vand.u32 4294901760, %v9956_v20 }
 0x101   :  { %8141 = vmatprep.subr.bf16.mxu1 %v8140_v35  ;;  %v10036_v32 = vsub.f32 %v9953_v24, %v5242_v37 }
 0x102   :  { %v9990_v26 = vpack.c.bf16 %v5245_v18, %v5242_v37  ;;  %v10043_v22 = vsub.f32 %v9956_v20, %v5245_v18 }
 0x103   :  { %8047 = vmatpush3.bf16.msra.mxu0 %v8044_v55  ;;  %v9973_v55 = vsel %vm4491_vm5, %v9933_v27, 0.0 }
 0x104   :  { %8143 = vmatpush3.bf16.msra.mxu1 %v8140_v35  ;;  %8049 = vmatprep.subr.bf16.mxu0 %v9571_v28  ;;  %10793 = vst [vmem:[#allocation56_spill] sm:$0xff] %v9973_v55  ;;  %v9976_v35 = vsel %vm4492_vm6, %v9933_v27, 0.0  ;;  %v4516_v14 = vand.u32 4294901760, %v9973_v55 }
 0x105   :  { %8145 = vmatprep.subr.bf16.mxu1 %v9577_v46  ;;  %10794 = vst [vmem:[#allocation57_spill] sm:$0xff] %v9976_v35  ;;  %v4519_v21 = vand.u32 4294901760, %v9976_v35 }
 0x106   :  { %7149 = vmatmul.mubr.f32.vlgmr.msra.gmra.mrb[8].mxu0 %v8828_v16  ;;  %v10090_v15 = vsub.f32 %v9973_v55, %v4516_v14  ;;  %v8547_v55 = vmov 0  }
 0x107   :  { %7281 = vmatmul.mubr.f32.vlgmr.msra.gmra.mrb[8].mxu1 %v8828_v16  ;;  %8051 = vmatpush3.bf16.msra.mxu0 %v9571_v28  ;;  %v10038_v5 = vpack.c.bf16 %v4519_v21, %v4516_v14  ;;  %v10093_v58 = vsub.f32 %v9976_v35, %v4519_v21 }
 0x108   :  { %8147 = vmatpush3.bf16.msra.mxu1 %v9577_v46  ;;  %8053 = vmatprep.subr.bf16.mxu0 %v9698_v13 }
 0x109   :  { %8149 = vmatprep.subr.bf16.mxu1 %v9700_v62  ;;  %7151 = vmatprep.mubr.f32.mxu0 %v8932_v39  ;;  %v10810_v35 = vand.u32 4294901760, %v10093_v58 }
 0x10a   :  { %7283 = vmatprep.mubr.f32.mxu1 %v8932_v39  ;;  %7152 = vmatmul.mubr.f32.gmra.mrb[10].mxu0 %v8976_v42 }
 0x10b   :  { %7284 = vmatmul.mubr.f32.gmra.mrb[10].mxu1 %v8976_v42  ;;  %8055 = vmatpush3.bf16.msra.mxu0 %v9698_v13 }
 0x10c   :  { %8151 = vmatpush3.bf16.msra.mxu1 %v9700_v62  ;;  %8057 = vmatprep.subr.bf16.mxu0 %v9706_v7 }
 0x10d   :  { %8153 = vmatprep.subr.bf16.mxu1 %v9708_v57  ;;  %7170 = vmatprep.mubr.f32.mxu0 %v8810_v2 }
 0x10e   :  { %7302 = vmatprep.mubr.f32.mxu1 %v8810_v2  ;;  %8545 = vset.pattern.permute.xlu0 %v8547_v55 }
 0x10f   :  { %8059 = vmatpush3.bf16.msra.mxu0 %v9706_v7  ;;  %8546 = vset.pattern.permute.xlu1 %v8547_v55  ;;  %v22_v55 = vld [vmem:[%s10548_s3 + $0x8] sm:$0xff] }
 0x110   :  { %8155 = vmatpush3.bf16.msra.mxu1 %v9708_v57  ;;  %8061 = vmatprep.subr.bf16.mxu0 %v9732_v47 }
 0x111   :  { %8157 = vmatprep.subr.bf16.mxu1 %v9742_v6 }
 0x113   :  { %8063 = vmatpush3.bf16.msra.mxu0 %v9732_v47 }
 0x114   :  { %8159 = vmatpush3.bf16.msra.mxu1 %v9742_v6  ;;  %8065 = vmatprep.subr.bf16.mxu0 %v8064_v50 }
 0x115   :  { %8161 = vmatprep.subr.bf16.mxu1 %v8160_v60 }
 0x116   :  { %7171 = vmatmul.mubr.f32.vlgmr.msra.gmra.mrb[8].mxu0 %v8847_v63 }
 0x117   :  { %7303 = vmatmul.mubr.f32.vlgmr.msra.gmra.mrb[8].mxu1 %v8847_v63  ;;  %8067 = vmatpush3.bf16.msra.mxu0 %v8064_v50  ;;  %v9999_v50 = vsel %vm5223_vm7, %v9940_v41, 0.0 }
 0x118   :  { %8163 = vmatpush3.bf16.msra.mxu1 %v8160_v60  ;;  %8069 = vmatprep.subr.bf16.mxu0 %v8068_v8  ;;  %v10800_v60 = vld [vmem:[#allocation12_spill] sm:$0xff]  ;;  %v5248_v34 = vand.u32 4294901760, %v9999_v50 }
 0x119   :  { %8165 = vmatprep.subr.bf16.mxu1 %v8164_v43  ;;  %7173 = vmatprep.mubr.f32.mxu0 %v8949_v23  ;;  %vm4495_vm13 = vcmp.eq.s32.totalorder %v10800_v60, %v9911_v36  ;;  %vm5227_vm15 = vcmp.eq.s32.totalorder %v10800_v60, %v9924_v30 }
 0x11a   :  { %7305 = vmatprep.mubr.f32.mxu1 %v8949_v23  ;;  %7174 = vmatmul.mubr.f32.gmra.mrb[10].mxu0 %v8983_v52 }
 0x11b   :  { %7306 = vmatmul.mubr.f32.gmra.mrb[10].mxu1 %v8983_v52  ;;  %8071 = vmatpush3.bf16.msra.mxu0 %v8068_v8  ;;  %v10033_v8 = vsub.f32 %v9950_v51, %v4513_v10 }
 0x11c   :  { %8167 = vmatpush3.bf16.msra.mxu1 %v8164_v43  ;;  %8073 = vmatprep.subr.bf16.mxu0 %v8072_v12  ;;  %v5251_v43 = vand.u32 4294901760, %v10002_v3 }
 0x11d   :  { %8169 = vmatprep.subr.bf16.mxu1 %v8168_v56  ;;  %7192 = vmatprep.mubr.f32.mxu0 %v8763_v53 }
 0x11e   :  { %7324 = vmatprep.mubr.f32.mxu1 %v8763_v53 }
 0x11f   :  { %8075 = vmatpush3.bf16.msra.mxu0 %v8072_v12 }
 0x120   :  { %8171 = vmatpush3.bf16.msra.mxu1 %v8168_v56  ;;  %8077 = vmatprep.subr.bf16.mxu0 %v8076_v29  ;;  %v10078_v56 = vsel %vm5227_vm15, %v9940_v41, 0.0 }
 0x121   :  { %8173 = vmatprep.subr.bf16.mxu1 %v8172_v17  ;;  %10807 = vst [vmem:[#allocation62_spill] sm:$0xff] %v10078_v56  ;;  %v5260_v11 = vand.u32 4294901760, %v10078_v56 }
 0x123   :  { %8079 = vmatpush3.bf16.msra.mxu0 %v8076_v29  ;;  %v10627_v29 = vand.u32 4294901760, %v10033_v8 }
 0x124   :  { %8175 = vmatpush3.bf16.msra.mxu1 %v8172_v17  ;;  %8081 = vmatprep.subr.bf16.mxu0 %v9571_v28  ;;  %v10095_v17 = vpack.c.bf16 %v5251_v43, %v5248_v34 }
 0x125   :  { %8177 = vmatprep.subr.bf16.mxu1 %v9577_v46  ;;  %v4633_v14 = vsub.f32 %v10033_v8, %v10627_v29 }
 0x126   :  { %7193 = vmatmul.mubr.f32.vlgmr.msra.gmra.mrb[8].mxu0 %v8806_v1 }
 0x127   :  { %7325 = vmatmul.mubr.f32.vlgmr.msra.gmra.mrb[8].mxu1 %v8806_v1  ;;  %8083 = vmatpush3.bf16.msra.mxu0 %v9571_v28  ;;  %v10795_v28 = vld [vmem:[#allocation4_spill] sm:$0xff] }
 0x128   :  { %8179 = vmatpush3.bf16.msra.mxu1 %v9577_v46  ;;  %8085 = vmatprep.subr.bf16.mxu0 %v9698_v13  ;;  %vm4493_vm9 = vcmp.eq.s32.totalorder %v10795_v28, %v9911_v36  ;;  %v9988_v46 = vpack.c.bf16 %v4513_v10, %v4510_v4  ;;  %10797 = vst [vmem:[#allocation4_spill] sm:$0xff] %v9999_v50  ;;  %v5257_v10 = vand.u32 4294901760, %v10058_v9 }
 0x129   :  { %8181 = vmatprep.subr.bf16.mxu1 %v9700_v62  ;;  %7195 = vmatprep.mubr.f32.mxu0 %v8918_v49  ;;  %v10007_v40 = vsel %vm4493_vm9, %v9933_v27, 0.0  ;;  %vm5225_vm11 = vcmp.eq.s32.totalorder %v10795_v28, %v9924_v30 }
 0x12a   :  { %7327 = vmatprep.mubr.f32.mxu1 %v8918_v49  ;;  %7196 = vmatmul.mubr.f32.gmra.mrb[10].mxu0 %v8967_v45  ;;  %10799 = vst [vmem:[#allocation58_spill] sm:$0xff] %v10007_v40  ;;  %v4522_v19 = vand.u32 4294901760, %v10007_v40  ;;  %v10052_v61 = vsel %vm5225_vm11, %v9940_v41, 0.0 }
 0x12b   :  { %7328 = vmatmul.mubr.f32.gmra.mrb[10].mxu1 %v8967_v45  ;;  %8087 = vmatpush3.bf16.msra.mxu0 %v9698_v13  ;;  %v10018_v13 = vsel %vm4494_vm10, %v9933_v27, 0.0  ;;  %v5254_v4 = vand.u32 4294901760, %v10052_v61 }
 0x12c   :  { %8183 = vmatpush3.bf16.msra.mxu1 %v9700_v62  ;;  %8089 = vmatprep.subr.bf16.mxu0 %v9706_v7  ;;  %10801 = vst [vmem:[#allocation12_spill] sm:$0xff] %v10018_v13  ;;  %v10802_v62 = vld [vmem:[#allocation13_spill] sm:$0xff]  ;;  %v4525_v12 = vand.u32 4294901760, %v10018_v13 }
 0x12d   :  { %8185 = vmatprep.subr.bf16.mxu1 %v9708_v57  ;;  %vm4496_vm14 = vcmp.eq.s32.totalorder %v10802_v62, %v9911_v36  ;;  %7214 = vmatprep.mubr.f32.mxu0 %v8763_v53  ;;  %vm5228_vm1 = vcmp.eq.s32.totalorder %v10802_v62, %v9924_v30  ;;  %10803 = vst [vmem:[#allocation13_spill] sm:$0xff] %v10052_v61  ;;  %v10629_v36 = vand.u32 4294901760, %v10036_v32 }
 0x12e   :  { %7346 = vmatprep.mubr.f32.mxu1 %v8763_v53  ;;  %v10084_v31 = vsel %vm5228_vm1, %v9940_v41, 0.0  ;;  %v10099_v30 = vsub.f32 %v9999_v50, %v5248_v34  ;;  %v10102_v41 = vsub.f32 %v10002_v3, %v5251_v43  ;;  %v10112_v28 = vpack.c.bf16 %v4525_v12, %v4522_v19 }
 0x12f   :  { %8091 = vmatpush3.bf16.msra.mxu0 %v9706_v7  ;;  %v10064_v7 = vsel %vm4495_vm13, %v9933_v27, 0.0  ;;  %10808 = vst [vmem:[#allocation63_spill] sm:$0xff] %v10084_v31  ;;  %v5358_v21 = vsub.f32 %v10036_v32, %v10629_v36  ;;  %v10139_v36 = vpack.c.bf16 %v5257_v10, %v5254_v4  ;;  %v10144_v60 = vsub.f32 %v10018_v13, %v4525_v12 }
 0x130   :  { %8187 = vmatpush3.bf16.msra.mxu1 %v9708_v57  ;;  %10805 = vst [vmem:[#allocation60_spill] sm:$0xff] %v10064_v7  ;;  %8093 = vmatprep.subr.bf16.mxu0 %v9732_v47  ;;  %v10072_v57 = vsel %vm4496_vm14, %v9933_v27, 0.0  ;;  %v10630_v27 = vand.u32 4294901760, %v10043_v22  ;;  %v4528_v37 = vand.u32 4294901760, %v10064_v7  ;;  %v10154_v43 = vsub.f32 %v10058_v9, %v5257_v10 }
 0x131   :  { %8189 = vmatprep.subr.bf16.mxu1 %v9742_v6  ;;  %10806 = vst [vmem:[#allocation61_spill] sm:$0xff] %v10072_v57  ;;  %v4531_v18 = vand.u32 4294901760, %v10072_v57  ;;  %v5359_v12 = vand.u32 4294901760, %v5358_v21  ;;  %v10809_v13 = vand.u32 4294901760, %v10090_v15  ;;  %v10811_v10 = vand.u32 4294901760, %v10099_v30 }
 0x132   :  { %v5365_v34 = vsub.f32 %v10043_v22, %v10630_v27 }
 0x133   :  { %8095 = vmatpush3.bf16.msra.mxu0 %v9732_v47  ;;  %v5263_v47 = vand.u32 4294901760, %v10084_v31  ;;  %v10141_v62 = vpack.c.bf16 %v4531_v18, %v4528_v37  ;;  %v4640_v3 = vsub.f32 %v10090_v15, %v10809_v13  ;;  %v5372_v9 = vsub.f32 %v10099_v30, %v10811_v10 }
 0x134   :  { %8191 = vmatpush3.bf16.msra.mxu1 %v9742_v6  ;;  %8193 = vmatprep.subr.bf16.mxu0 %v9988_v46  ;;  %v4626_v6 = vsub.f32 %v10025_v48, %v10628_v33  ;;  %v10135_v33 = vsub.f32 %v10007_v40, %v4522_v19  ;;  %v10151_v19 = vsub.f32 %v10052_v61, %v5254_v4  ;;  %v4634_v40 = vand.u32 4294901760, %v4633_v14 }
 0x135   :  { %8289 = vmatprep.subr.bf16.mxu1 %v9990_v26  ;;  %v10148_v27 = vpack.c.bf16 %v5263_v47, %v5260_v11  ;;  %v5366_v4 = vand.u32 4294901760, %v5365_v34  ;;  %v10812_v14 = vand.u32 4294901760, %v10102_v41  ;;  %v10177_v13 = vsub.f32 %v10064_v7, %v4528_v37 }
 0x136   :  { %7215 = vmatmul.mubr.f32.vlgmr.msra.gmra.mrb[8].mxu0 %v8806_v1  ;;  %v4627_v29 = vand.u32 4294901760, %v4626_v6  ;;  %v4647_v6 = vsub.f32 %v10093_v58, %v10810_v35  ;;  %v10180_v34 = vsub.f32 %v10072_v57, %v4531_v18  ;;  %v10642_v10 = vand.u32 4294901760, %v10151_v19 }
 0x137   :  { %7347 = vmatmul.mubr.f32.vlgmr.msra.gmra.mrb[8].mxu1 %v8806_v1  ;;  %8195 = vmatpush3.bf16.msra.mxu0 %v9988_v46  ;;  %v5379_v21 = vsub.f32 %v10102_v41, %v10812_v14  ;;  %v10643_v14 = vand.u32 4294901760, %v10154_v43  ;;  %v10187_v61 = vsub.f32 %v10078_v56, %v5260_v11  ;;  %v10190_v50 = vsub.f32 %v10084_v31, %v5263_v47  ;;  %v21_v11 = vld [vmem:[%s10548_s3] sm:$0xff]  ;;  %v23_v47 = vld [vmem:[%s10548_s3 + $0x10] sm:$0xff] }
 0x138   :  { %8291 = vmatpush3.bf16.msra.mxu1 %v9990_v26  ;;  %7217 = vmatprep.mubr.f32.mxu0 %v8918_v49  ;;  %v8208_v37 = vpack.c.bf16 %v4634_v40, %v4627_v29  ;;  %v4641_v18 = vand.u32 4294901760, %v4640_v3  ;;  %v8304_v35 = vpack.c.bf16 %v5366_v4, %v5359_v12  ;;  %v4648_v57 = vand.u32 4294901760, %v4647_v6 }
 0x139   :  { %7349 = vmatprep.mubr.f32.mxu1 %v8918_v49  ;;  %8197 = vmatprep.subr.bf16.mxu0 %v10038_v5  ;;  %v5373_v7 = vand.u32 4294901760, %v5372_v9  ;;  %v5380_v20 = vand.u32 4294901760, %v5379_v21  ;;  %v10814_v40 = vand.u32 4294901760, %v10144_v60  ;;  %v10645_v29 = vand.u32 4294901760, %v10177_v13 }
 0x13a   :  { %8293 = vmatprep.subr.bf16.mxu1 %v10095_v17  ;;  %7218 = vmatmul.mubr.f32.gmra.mrb[10].mxu0 %v8967_v45  ;;  %v5386_v12 = vsub.f32 %v10151_v19, %v10642_v10  ;;  %v5393_v6 = vsub.f32 %v10154_v43, %v10643_v14  ;;  %v24_v10 = vld [vmem:[%s10548_s3 + $0x18] sm:$0xff]  ;;  %v10817_v31 = vand.u32 4294901760, %v10190_v50 }
 0x13b   :  { %7350 = vmatmul.mubr.f32.gmra.mrb[10].mxu1 %v8967_v45  ;;  %8199 = vmatpush3.bf16.msra.mxu0 %v10038_v5  ;;  %v4661_v9 = vsub.f32 %v10144_v60, %v10814_v40  ;;  %v8308_v40 = vpack.c.bf16 %v5380_v20, %v5373_v7  ;;  %v10815_v20 = vand.u32 4294901760, %v10180_v34 }
 0x13c   :  { %8295 = vmatpush3.bf16.msra.mxu1 %v10095_v17  ;;  %8201 = vmatprep.subr.bf16.mxu0 %v10112_v28 }
 0x13d   :  { %8297 = vmatprep.subr.bf16.mxu1 %v10139_v36  ;;  %7368 = vmatprep.mubr.f32.mxu0 %v8850_v54  ;;  %v4662_v4 = vand.u32 4294901760, %v4661_v9  ;;  %v4675_v7 = vsub.f32 %v10180_v34, %v10815_v20 }
 0x13e   :  { %7500 = vmatprep.mubr.f32.mxu1 %v8850_v54  ;;  %v10813_v54 = vand.u32 4294901760, %v10135_v33  ;;  %763 = vperm.xlu0 %8545, %v21_v11   ;;  %v4668_v11 = vsub.f32 %v10177_v13, %v10645_v29 }
 0x13f   :  { %8203 = vmatpush3.bf16.msra.mxu0 %v10112_v28  ;;  %773 = vperm.xlu1 %8546, %v23_v47   ;;  %v10816_v47 = vand.u32 4294901760, %v10187_v61 }
 0x140   :  { %8299 = vmatpush3.bf16.msra.mxu1 %v10139_v36  ;;  %v4654_v3 = vsub.f32 %v10135_v33, %v10813_v54  ;;  %8205 = vmatprep.subr.bf16.mxu0 %v10141_v62  ;;  %v8212_v54 = vpack.c.bf16 %v4648_v57, %v4641_v18  ;;  %v5387_v57 = vand.u32 4294901760, %v5386_v12  ;;  %v5394_v18 = vand.u32 4294901760, %v5393_v6 }
 0x141   :  { %8301 = vmatprep.subr.bf16.mxu1 %v10148_v27  ;;  %v5400_v21 = vsub.f32 %v10187_v61, %v10816_v47  ;;  %v4669_v20 = vand.u32 4294901760, %v4668_v11  ;;  %v4676_v6 = vand.u32 4294901760, %v4675_v7 }
 0x142   :  { %v4655_v14 = vand.u32 4294901760, %v4654_v3  ;;  %v5407_v3 = vsub.f32 %v10190_v50, %v10817_v31  ;;  %768 = vperm.xlu0 %8545, %v22_v55   ;;  %v8312_v12 = vpack.c.bf16 %v5394_v18, %v5387_v57 }
 0x143   :  { %8207 = vmatpush3.bf16.msra.mxu0 %v10141_v62  ;;  %778 = vperm.xlu1 %8546, %v24_v10   ;;  %v5401_v29 = vand.u32 4294901760, %v5400_v21 }
 0x144   :  { %8303 = vmatpush3.bf16.msra.mxu1 %v10148_v27  ;;  %8209 = vmatprep.subr.bf16.mxu0 %v8208_v37  ;;  %v8216_v9 = vpack.c.bf16 %v4662_v4, %v4655_v14  ;;  %v5408_v47 = vand.u32 4294901760, %v5407_v3 }
 0x145   :  { %8305 = vmatprep.subr.bf16.mxu1 %v8304_v35 }
 0x146   :  { %7369 = vmatmul.mubr.f32.vlgmr.msra.gmra.mrb[12].mxu0 %v8880_v25  ;;  %v8316_v21 = vpack.c.bf16 %v5408_v47, %v5401_v29  ;;  %v27_v29 = vld [vmem:[%s10548_s3 + $0x30] sm:$0xff]  ;;  %v8320_v47 = vpack.c.bf16 %v10043_v22, %v10036_v32 }
 0x147   :  { %7501 = vmatmul.mubr.f32.vlgmr.msra.gmra.mrb[12].mxu1 %v8880_v25  ;;  %8211 = vmatpush3.bf16.msra.mxu0 %v8208_v37 }
 0x148   :  { %8307 = vmatpush3.bf16.msra.mxu1 %v8304_v35  ;;  %8213 = vmatprep.subr.bf16.mxu0 %v8212_v54 }
 0x149   :  { %8309 = vmatprep.subr.bf16.mxu1 %v8308_v40  ;;  %v6688_v56 = vpop.f32.mrb[0].mxu0  ;;  %7371 = vmatprep.mubr.f32.mxu0 %v8973_v44 }
 0x14a   :  { %v6820_v24 = vpop.f32.mrb[0].mxu1  ;;  %7503 = vmatprep.mubr.f32.mxu1 %v8973_v44  ;;  %v748_v31 = vmul.f32 %v6688_v56, %v6688_v56  ;;  %v721_v37 = vpop.f32.mrb[1].mxu0  ;;  %7372 = vmatmul.mubr.f32.gmra.mrb[14].mxu0 %v8990_v38  ;;  %v25_v44 = vld [vmem:[%s10548_s3 + $0x20] sm:$0xff] }
 0x14b   :  { %v10244_v10 = vadd.f32 %v6820_v24, %v6688_v56  ;;  %v1520_v25 = vmul.f32 %v6820_v24, %v6820_v24  ;;  %v1493_v35 = vpop.f32.mrb[1].mxu1  ;;  %7504 = vmatmul.mubr.f32.gmra.mrb[14].mxu1 %v8990_v38  ;;  %v747_v14 = vmul.f32 %v721_v37, %v721_v37  ;;  %8215 = vmatpush3.bf16.msra.mxu0 %v8212_v54  ;;  %v26_v24 = vld [vmem:[%s10548_s3 + $0x28] sm:$0xff] }
 0x14c   :  { %v10248_v55 = vadd.f32 %v1493_v35, %v721_v37  ;;  %v1519_v4 = vmul.f32 %v1493_v35, %v1493_v35  ;;  %8311 = vmatpush3.bf16.msra.mxu1 %v8308_v40  ;;  %8217 = vmatprep.subr.bf16.mxu0 %v8216_v9  ;;  %v8220_v56 = vpack.c.bf16 %v4676_v6, %v4669_v20  ;;  %v28_v20 = vld [vmem:[%s10548_s3 + $0x38] sm:$0xff] }
 0x14d   :  { %8313 = vmatprep.subr.bf16.mxu1 %v8312_v12  ;;  %v751_v11 = vadd.f32 %v748_v31, %v747_v14  ;;  %v6691_v7 = vpop.f32.mrb[2].mxu0  ;;  %7390 = vmatprep.mubr.f32.mxu0 %v8763_v53  ;;  %v8224_v6 = vpack.c.bf16 %v10033_v8, %v10025_v48 }
 0x14e   :  { %v1523_v38 = vadd.f32 %v1520_v25, %v1519_v4  ;;  %v6823_v57 = vpop.f32.mrb[2].mxu1  ;;  %7522 = vmatprep.mubr.f32.mxu1 %v8763_v53  ;;  %v733_v40 = vpop.f32.mrb[3].mxu0  ;;  %783 = vperm.xlu0 %8545, %v25_v44   ;;  %v750_v31 = vmul.f32 %v6691_v7, %v6691_v7  ;;  %v8228_v44 = vpack.c.bf16 %v10093_v58, %v10090_v15 }
 0x14f   :  { %v10258_v54 = vadd.f32 %v6823_v57, %v6691_v7  ;;  %v1505_v18 = vpop.f32.mrb[3].mxu1  ;;  %788 = vperm.xlu1 %8546, %v26_v24   ;;  %v749_v3 = vmul.f32 %v733_v40, %v733_v40  ;;  %8219 = vmatpush3.bf16.msra.mxu0 %v8216_v9  ;;  %v1522_v25 = vmul.f32 %v6823_v57, %v6823_v57 }
 0x150   :  { %v10260_v37 = vadd.f32 %v1505_v18, %v733_v40  ;;  %v1521_v35 = vmul.f32 %v1505_v18, %v1505_v18  ;;  %8315 = vmatpush3.bf16.msra.mxu1 %v8312_v12  ;;  %8221 = vmatprep.subr.bf16.mxu0 %v8220_v56  ;;  %v8324_v24 = vpack.c.bf16 %v10102_v41, %v10099_v30 }
 0x151   :  { %8317 = vmatprep.subr.bf16.mxu1 %v8316_v21  ;;  %v752_v9 = vadd.f32 %v751_v11, %v749_v3 }
 0x152   :  { %v1524_v12 = vadd.f32 %v1523_v38, %v1521_v35  ;;  %793 = vperm.xlu0 %8545, %v27_v29   ;;  %v8236_v29 = vpack.c.bf16 %v10180_v34, %v10177_v13 }
 0x153   :  { %798 = vperm.xlu1 %8546, %v28_v20   ;;  %v753_v14 = vadd.f32 %v752_v9, %v750_v31  ;;  %8223 = vmatpush3.bf16.msra.mxu0 %v8220_v56  ;;  %v8232_v56 = vpack.c.bf16 %v10144_v60, %v10135_v33  ;;  %v8332_v20 = vpack.c.bf16 %v10190_v50, %v10187_v61 }
 0x154   :  { %v1525_v4 = vadd.f32 %v1524_v12, %v1522_v25  ;;  %8319 = vmatpush3.bf16.msra.mxu1 %v8316_v21  ;;  %8225 = vmatprep.subr.bf16.mxu0 %v8224_v6  ;;  %v8328_v21 = vpack.c.bf16 %v10154_v43, %v10151_v19  ;;  %v10821_v12 = vand.u32 4294901760, %v10043_v22  ;;  %v10827_v22 = vand.u32 4294901760, %v10144_v60 }
 0x155   :  { %8321 = vmatprep.subr.bf16.mxu1 %v8320_v47  ;;  %v754_v40 = vrot.slane %v753_v14, 4  ;;  %v10832_v60 = vand.u32 4294901760, %v10187_v61 }
 0x156   :  { %v1526_v18 = vrot.slane %v1525_v4, 4  ;;  %7391 = vmatmul.mubr.f32.vlgmr.msra.gmra.mrb[12].mxu0 %v8806_v1 }
 0x157   :  { %7523 = vmatmul.mubr.f32.vlgmr.msra.gmra.mrb[12].mxu1 %v8806_v1  ;;  %v755_v11 = vadd.f32 %v754_v40, %v753_v14  ;;  %8227 = vmatpush3.bf16.msra.mxu0 %v8224_v6 }
 0x158   :  { %v1527_v38 = vadd.f32 %v1526_v18, %v1525_v4  ;;  %8323 = vmatpush3.bf16.msra.mxu1 %v8320_v47  ;;  %8229 = vmatprep.subr.bf16.mxu0 %v8228_v44  ;;  %v10823_v4 = vand.u32 4294901760, %v10093_v58  ;;  %v10828_v58 = vand.u32 4294901760, %v10151_v19 }
 0x159   :  { %8325 = vmatprep.subr.bf16.mxu1 %v8324_v24  ;;  %v756_v7 = vrot.slane %v755_v11, 2  ;;  %7393 = vmatprep.mubr.f32.mxu0 %v8918_v49 }
 0x15a   :  { %v1528_v57 = vrot.slane %v1527_v38, 2  ;;  %7525 = vmatprep.mubr.f32.mxu1 %v8918_v49  ;;  %7394 = vmatmul.mubr.f32.gmra.mrb[14].mxu0 %v8967_v45 }
 0x15b   :  { %7526 = vmatmul.mubr.f32.gmra.mrb[14].mxu1 %v8967_v45  ;;  %v757_v3 = vadd.f32 %v756_v7, %v755_v11  ;;  %8231 = vmatpush3.bf16.msra.mxu0 %v8228_v44 }
 0x15c   :  { %v1529_v35 = vadd.f32 %v1528_v57, %v1527_v38  ;;  %8327 = vmatpush3.bf16.msra.mxu1 %v8324_v24  ;;  %8233 = vmatprep.subr.bf16.mxu0 %v8232_v56 }
 0x15d   :  { %8329 = vmatprep.subr.bf16.mxu1 %v8328_v21  ;;  %v758_v6 = vrot.slane %v757_v3, 1  ;;  %7412 = vmatprep.mubr.f32.mxu0 %v8785_v59 }
 0x15e   :  { %v1530_v47 = vrot.slane %v1529_v35, 1  ;;  %7544 = vmatprep.mubr.f32.mxu1 %v8785_v59  ;;  %v10818_v59 = vand.u32 4294901760, %v10025_v48  ;;  %v10824_v48 = vand.u32 4294901760, %v10099_v30  ;;  %v10829_v30 = vand.u32 4294901760, %v10154_v43 }
 0x15f   :  { %v759_v31 = vadd.f32 %v758_v6, %v757_v3  ;;  %8235 = vmatpush3.bf16.msra.mxu0 %v8232_v56  ;;  %v10833_v43 = vand.u32 4294901760, %v10190_v50 }
 0x160   :  { %v1531_v25 = vadd.f32 %v1530_v47, %v1529_v35  ;;  %8331 = vmatpush3.bf16.msra.mxu1 %v8328_v21  ;;  %8237 = vmatprep.subr.bf16.mxu0 %v8236_v29  ;;  %v8360_v40 = vpack.c.bf16 %v10829_v30, %v10828_v58 }
 0x161   :  { %8333 = vmatprep.subr.bf16.mxu1 %v8332_v20  ;;  %v8364_v19 = vpack.c.bf16 %v10833_v43, %v10832_v60 }
 0x162   :  { %v10292_v9 = vadd.f32 %v1531_v25, %v759_v31 }
 0x163   :  { %8239 = vmatpush3.bf16.msra.mxu0 %v8236_v29 }
 0x164   :  { %8335 = vmatpush3.bf16.msra.mxu1 %v8332_v20  ;;  %8241 = vmatprep.subr.bf16.mxu0 %v9988_v46 }
 0x165   :  { %8337 = vmatprep.subr.bf16.mxu1 %v9990_v26 }
 0x166   :  { %7413 = vmatmul.mubr.f32.vlgmr.msra.gmra.mrb[12].mxu0 %v8828_v16 }
 0x167   :  { %7545 = vmatmul.mubr.f32.vlgmr.msra.gmra.mrb[12].mxu1 %v8828_v16  ;;  %8243 = vmatpush3.bf16.msra.mxu0 %v9988_v46  ;;  %v10819_v16 = vand.u32 4294901760, %v10033_v8  ;;  %v10825_v8 = vand.u32 4294901760, %v10102_v41 }
 0x168   :  { %8339 = vmatpush3.bf16.msra.mxu1 %v9990_v26  ;;  %8245 = vmatprep.subr.bf16.mxu0 %v10038_v5 }
 0x169   :  { %8341 = vmatprep.subr.bf16.mxu1 %v10095_v17  ;;  %7415 = vmatprep.mubr.f32.mxu0 %v8932_v39  ;;  %v8356_v24 = vpack.c.bf16 %v10825_v8, %v10824_v48 }
 0x16a   :  { %7547 = vmatprep.mubr.f32.mxu1 %v8932_v39  ;;  %7416 = vmatmul.mubr.f32.gmra.mrb[14].mxu0 %v8976_v42  ;;  %v8256_v39 = vpack.c.bf16 %v10819_v16, %v10818_v59 }
 0x16b   :  { %7548 = vmatmul.mubr.f32.gmra.mrb[14].mxu1 %v8976_v42  ;;  %8247 = vmatpush3.bf16.msra.mxu0 %v10038_v5  ;;  %v10820_v42 = vand.u32 4294901760, %v10036_v32  ;;  %v10826_v32 = vand.u32 4294901760, %v10135_v33  ;;  %v10831_v33 = vand.u32 4294901760, %v10180_v34 }
 0x16c   :  { %8343 = vmatpush3.bf16.msra.mxu1 %v10095_v17  ;;  %8249 = vmatprep.subr.bf16.mxu0 %v10112_v28 }
 0x16d   :  { %8345 = vmatprep.subr.bf16.mxu1 %v10139_v36  ;;  %7434 = vmatprep.mubr.f32.mxu0 %v8810_v2  ;;  %v8352_v14 = vpack.c.bf16 %v10821_v12, %v10820_v42 }
 0x16e   :  { %7566 = vmatprep.mubr.f32.mxu1 %v8810_v2  ;;  %v10822_v2 = vand.u32 4294901760, %v10090_v15  ;;  %v8264_v15 = vpack.c.bf16 %v10827_v22, %v10826_v32 }
 0x16f   :  { %8251 = vmatpush3.bf16.msra.mxu0 %v10112_v28 }
 0x170   :  { %8347 = vmatpush3.bf16.msra.mxu1 %v10139_v36  ;;  %8253 = vmatprep.subr.bf16.mxu0 %v10141_v62  ;;  %v8260_v44 = vpack.c.bf16 %v10823_v4, %v10822_v2 }
 0x171   :  { %8349 = vmatprep.subr.bf16.mxu1 %v10148_v27 }
 0x173   :  { %8255 = vmatpush3.bf16.msra.mxu0 %v10141_v62 }
 0x174   :  { %8351 = vmatpush3.bf16.msra.mxu1 %v10148_v27  ;;  %8257 = vmatprep.subr.bf16.mxu0 %v8256_v39 }
 0x175   :  { %8353 = vmatprep.subr.bf16.mxu1 %v8352_v14 }
 0x176   :  { %7435 = vmatmul.mubr.f32.vlgmr.msra.gmra.mrb[12].mxu0 %v8847_v63 }
 0x177   :  { %7567 = vmatmul.mubr.f32.vlgmr.msra.gmra.mrb[12].mxu1 %v8847_v63  ;;  %8259 = vmatpush3.bf16.msra.mxu0 %v8256_v39  ;;  %v10830_v63 = vand.u32 4294901760, %v10177_v13 }
 0x178   :  { %8355 = vmatpush3.bf16.msra.mxu1 %v8352_v14  ;;  %8261 = vmatprep.subr.bf16.mxu0 %v8260_v44 }
 0x179   :  { %8357 = vmatprep.subr.bf16.mxu1 %v8356_v24  ;;  %7437 = vmatprep.mubr.f32.mxu0 %v8949_v23  ;;  %v8268_v41 = vpack.c.bf16 %v10831_v33, %v10830_v63 }
 0x17a   :  { %7569 = vmatprep.mubr.f32.mxu1 %v8949_v23  ;;  %7438 = vmatmul.mubr.f32.gmra.mrb[14].mxu0 %v8983_v52 }
 0x17b   :  { %7570 = vmatmul.mubr.f32.gmra.mrb[14].mxu1 %v8983_v52  ;;  %8263 = vmatpush3.bf16.msra.mxu0 %v8260_v44 }
 0x17c   :  { %8359 = vmatpush3.bf16.msra.mxu1 %v8356_v24  ;;  %8265 = vmatprep.subr.bf16.mxu0 %v8264_v15 }
 0x17d   :  { %8361 = vmatprep.subr.bf16.mxu1 %v8360_v40  ;;  %7456 = vmatprep.mubr.f32.mxu0 %v8763_v53 }
 0x17e   :  { %7588 = vmatprep.mubr.f32.mxu1 %v8763_v53 }
 0x17f   :  { %8267 = vmatpush3.bf16.msra.mxu0 %v8264_v15 }
 0x180   :  { %8363 = vmatpush3.bf16.msra.mxu1 %v8360_v40  ;;  %8269 = vmatprep.subr.bf16.mxu0 %v8268_v41 }
 0x181   :  { %8365 = vmatprep.subr.bf16.mxu1 %v8364_v19 }
 0x183   :  { %8271 = vmatpush3.bf16.msra.mxu0 %v8268_v41 }
 0x184   :  { %8367 = vmatpush3.bf16.msra.mxu1 %v8364_v19  ;;  %8273 = vmatprep.subr.bf16.mxu0 %v9988_v46 }
 0x185   :  { %8369 = vmatprep.subr.bf16.mxu1 %v9990_v26 }
 0x186   :  { %7457 = vmatmul.mubr.f32.vlgmr.msra.gmra.mrb[12].mxu0 %v8806_v1 }
 0x187   :  { %7589 = vmatmul.mubr.f32.vlgmr.msra.gmra.mrb[12].mxu1 %v8806_v1  ;;  %8275 = vmatpush3.bf16.msra.mxu0 %v9988_v46 }
 0x188   :  { %8371 = vmatpush3.bf16.msra.mxu1 %v9990_v26  ;;  %8277 = vmatprep.subr.bf16.mxu0 %v10038_v5 }
 0x189   :  { %8373 = vmatprep.subr.bf16.mxu1 %v10095_v17  ;;  %7459 = vmatprep.mubr.f32.mxu0 %v8918_v49 }
 0x18a   :  { %7591 = vmatprep.mubr.f32.mxu1 %v8918_v49  ;;  %7460 = vmatmul.mubr.f32.gmra.mrb[14].mxu0 %v8967_v45 }
 0x18b   :  { %7592 = vmatmul.mubr.f32.gmra.mrb[14].mxu1 %v8967_v45  ;;  %8279 = vmatpush3.bf16.msra.mxu0 %v10038_v5 }
 0x18c   :  { %8375 = vmatpush3.bf16.msra.mxu1 %v10095_v17  ;;  %8281 = vmatprep.subr.bf16.mxu0 %v10112_v28 }
 0x18d   :  { %8377 = vmatprep.subr.bf16.mxu1 %v10139_v36  ;;  %7478 = vmatprep.mubr.f32.mxu0 %v8763_v53 }
 0x18e   :  { %7610 = vmatprep.mubr.f32.mxu1 %v8763_v53 }
 0x18f   :  { %8283 = vmatpush3.bf16.msra.mxu0 %v10112_v28 }
 0x190   :  { %8379 = vmatpush3.bf16.msra.mxu1 %v10139_v36  ;;  %8285 = vmatprep.subr.bf16.mxu0 %v10141_v62 }
 0x191   :  { %8381 = vmatprep.subr.bf16.mxu1 %v10148_v27 }
 0x193   :  { %8287 = vmatpush3.bf16.msra.mxu0 %v10141_v62 }
 0x194   :  { %8383 = vmatpush3.bf16.msra.mxu1 %v10148_v27 }
 0x196   :  { %7479 = vmatmul.mubr.f32.vlgmr.msra.gmra.mrb[12].mxu0 %v8806_v1 }
 0x197   :  { %7611 = vmatmul.mubr.f32.vlgmr.msra.gmra.mrb[12].mxu1 %v8806_v1  ;;  %7481 = vmatprep.mubr.f32.mxu0 %v8918_v49 }
 0x198   :  { %7613 = vmatprep.mubr.f32.mxu1 %v8918_v49 }
 0x19a   :  { %7482 = vmatmul.mubr.f32.gmra.mrb[14].mxu0 %v8967_v45 }
 0x19b   :  { %7614 = vmatmul.mubr.f32.gmra.mrb[14].mxu1 %v8967_v45 }
 0x1a9   :  { %v6952_v23 = vpop.f32.mrb[4].mxu0 }
 0x1aa   :  { %v7084_v52 = vpop.f32.mrb[4].mxu1  ;;  %v2248_v53 = vadd.f32 %v6952_v23, %v10244_v10  ;;  %v2252_v46 = vmul.f32 %v6952_v23, %v6952_v23  ;;  %v2225_v50 = vpop.f32.mrb[5].mxu0 }
 0x1ab   :  { %v2984_v26 = vmul.f32 %v7084_v52, %v7084_v52  ;;  %v2957_v5 = vpop.f32.mrb[5].mxu1  ;;  %v2247_v61 = vadd.f32 %v2225_v50, %v10248_v55  ;;  %v2251_v36 = vmul.f32 %v2225_v50, %v2225_v50 }
 0x1ac   :  { %v2983_v1 = vmul.f32 %v2957_v5, %v2957_v5  ;;  %v2980_v17 = vadd.f32 %v7084_v52, %v2248_v53 }
 0x1ad   :  { %v2255_v27 = vadd.f32 %v2252_v46, %v2251_v36  ;;  %v2979_v28 = vadd.f32 %v2957_v5, %v2247_v61  ;;  %v6955_v62 = vpop.f32.mrb[6].mxu0 }
 0x1ae   :  { %v2987_v49 = vadd.f32 %v2984_v26, %v2983_v1  ;;  %v7087_v13 = vpop.f32.mrb[6].mxu1  ;;  %v2250_v45 = vadd.f32 %v6955_v62, %v10258_v54  ;;  %v2237_v34 = vpop.f32.mrb[7].mxu0  ;;  %v2254_v56 = vmul.f32 %v6955_v62, %v6955_v62 }
 0x1af   :  { %v2969_v18 = vpop.f32.mrb[7].mxu1  ;;  %v2249_v10 = vadd.f32 %v2237_v34, %v10260_v37  ;;  %v2253_v11 = vmul.f32 %v2237_v34, %v2237_v34  ;;  %v2986_v7 = vmul.f32 %v7087_v13, %v7087_v13 }
 0x1b0   :  { %v2985_v38 = vmul.f32 %v2969_v18, %v2969_v18  ;;  %v2982_v21 = vadd.f32 %v7087_v13, %v2250_v45 }
 0x1b1   :  { %v2256_v55 = vadd.f32 %v2255_v27, %v2253_v11  ;;  %v2981_v57 = vadd.f32 %v2969_v18, %v2249_v10 }
 0x1b2   :  { %v2988_v3 = vadd.f32 %v2987_v49, %v2985_v38 }
 0x1b3   :  { %v2257_v35 = vadd.f32 %v2256_v55, %v2254_v56 }
 0x1b4   :  { %v2989_v29 = vadd.f32 %v2988_v3, %v2986_v7 }
 0x1b5   :  { %v2258_v20 = vrot.slane %v2257_v35, 4 }
 0x1b6   :  { %v2990_v6 = vrot.slane %v2989_v29, 4 }
 0x1b7   :  { %v2259_v47 = vadd.f32 %v2258_v20, %v2257_v35 }
 0x1b8   :  { %v2991_v31 = vadd.f32 %v2990_v6, %v2989_v29  ;;  %v10834_v29 = vld [vmem:[#allocation2_spill] sm:$0xff]  ;;  %v10835_v6 = vld [vmem:[#allocation5_spill] sm:$0xff] }
 0x1b9   :  { %v2260_v25 = vrot.slane %v2259_v47, 2 }
 0x1ba   :  { %v2992_v54 = vrot.slane %v2991_v31, 2 }
 0x1bb   :  { %v2261_v59 = vadd.f32 %v2260_v25, %v2259_v47 }
 0x1bc   :  { %v2993_v16 = vadd.f32 %v2992_v54, %v2991_v31  ;;  %v10836_v31 = vld [vmem:[#allocation3_spill] sm:$0xff]  ;;  %v10837_v54 = vld [vmem:[#allocation6_spill] sm:$0xff] }
 0x1bd   :  { %v2262_v39 = vrot.slane %v2261_v59, 1 }
 0x1be   :  { %v2994_v37 = vrot.slane %v2993_v16, 1  ;;  %v10405_v35 = vpop.permute.xlu1 %773 }
 0x1bf   :  { %v2263_v42 = vadd.f32 %v2262_v39, %v2261_v59 }
 0x1c0   :  { %v2995_v14 = vadd.f32 %v2994_v37, %v2993_v16  ;;  %v10838_v16 = vld [vmem:[#allocation22_spill] sm:$0xff]  ;;  %v10839_v37 = vld [vmem:[#allocation7_spill] sm:$0xff] }
 0x1c1   :  { %v2264_v12 = vadd.f32 %v2263_v42, %v10292_v9  ;;  %v803_v42 = vmul.f32 %v10405_v35, %v10839_v37 }
 0x1c3   :  { %v2996_v2 = vadd.f32 %v2995_v14, %v2264_v12  ;;  %v10840_v14 = vld [vmem:[#allocation23_spill] sm:$0xff] }
 0x209   :  { %v7216_v4 = vpop.f32.mrb[8].mxu0 }
 0x20a   :  { %v7348_v44 = vpop.f32.mrb[8].mxu1  ;;  %v3712_v48 = vadd.f32 %v7216_v4, %v2980_v17  ;;  %v3716_v8 = vmul.f32 %v7216_v4, %v7216_v4  ;;  %v3689_v32 = vpop.f32.mrb[9].mxu0  ;;  %v10841_v4 = vld [vmem:[#allocation9_spill] sm:$0xff] }
 0x20b   :  { %v4448_v24 = vmul.f32 %v7348_v44, %v7348_v44  ;;  %v4421_v22 = vpop.f32.mrb[9].mxu1  ;;  %v3711_v15 = vadd.f32 %v3689_v32, %v2979_v28  ;;  %v3715_v58 = vmul.f32 %v3689_v32, %v3689_v32 }
 0x20c   :  { %v4447_v30 = vmul.f32 %v4421_v22, %v4421_v22  ;;  %v10393_v40 = vadd.f32 %v7348_v44, %v3712_v48  ;;  %v1535_v44 = vmul.f32 %v10841_v4, %v10405_v35 }
 0x20d   :  { %v3719_v63 = vadd.f32 %v3716_v8, %v3715_v58  ;;  %v10395_v33 = vadd.f32 %v4421_v22, %v3711_v15  ;;  %v7219_v60 = vpop.f32.mrb[10].mxu0  ;;  %v10420_v8 = vpop.permute.xlu1 %778  ;;  %v10843_v22 = vld [vmem:[#allocation25_spill] sm:$0xff]  ;;  %v10844_v58 = vld [vmem:[#allocation26_spill] sm:$0xff] }
 0x20e   :  { %v4451_v41 = vadd.f32 %v4448_v24, %v4447_v30  ;;  %v7351_v9 = vpop.f32.mrb[10].mxu1  ;;  %v3714_v43 = vadd.f32 %v7219_v60, %v2982_v21  ;;  %v3701_v19 = vpop.f32.mrb[11].mxu0  ;;  %v3718_v26 = vmul.f32 %v7219_v60, %v7219_v60  ;;  %v10842_v24 = vld [vmem:[#allocation24_spill] sm:$0xff]  ;;  %v2267_v30 = vmul.f32 %v10844_v58, %v10405_v35  ;;  %v10861_v58 = vld [vmem:[#allocation43_spill] sm:$0xff] }
 0x20f   :  { %v4433_v23 = vpop.f32.mrb[11].mxu1  ;;  %v3713_v52 = vadd.f32 %v3701_v19, %v2981_v57  ;;  %v3717_v53 = vmul.f32 %v3701_v19, %v3701_v19  ;;  %v4450_v5 = vmul.f32 %v7351_v9, %v7351_v9  ;;  %v764_v57 = vpop.permute.xlu0 %763 }
 0x210   :  { %v4449_v46 = vmul.f32 %v4433_v23, %v4433_v23  ;;  %v10397_v50 = vadd.f32 %v7351_v9, %v3714_v43  ;;  %v801_v20 = vmul.f32 %v764_v57, %v10834_v29  ;;  %v1533_v25 = vmul.f32 %v10836_v31, %v764_v57  ;;  %v10846_v43 = vld [vmem:[#allocation10_spill] sm:$0xff] }
 0x211   :  { %v3720_v61 = vadd.f32 %v3719_v63, %v3717_v53  ;;  %v10399_v36 = vadd.f32 %v4433_v23, %v3713_v52  ;;  %v2265_v39 = vmul.f32 %v10838_v16, %v764_v57  ;;  %v2997_v32 = vmul.f32 %v10842_v24, %v764_v57  ;;  %v10847_v53 = vld [vmem:[#allocation38_spill] sm:$0xff] }
 0x212   :  { %v4452_v1 = vadd.f32 %v4451_v41, %v4449_v46  ;;  %v10845_v41 = vld [vmem:[#allocation8_spill] sm:$0xff]  ;;  %v1536_v19 = vmul.f32 %v10846_v43, %v10420_v8  ;;  %v3729_v46 = vmul.f32 %v10847_v53, %v764_v57  ;;  %v10855_v29 = vld [vmem:[#allocation42_spill] sm:$0xff] }
 0x213   :  { %v3721_v17 = vadd.f32 %v3720_v61, %v3718_v26  ;;  %v10403_v3 = vpop.permute.xlu0 %768  ;;  %v804_v60 = vmul.f32 %v10420_v8, %v10845_v41  ;;  %v10848_v26 = vld [vmem:[#allocation28_spill] sm:$0xff] }
 0x214   :  { %v4453_v27 = vadd.f32 %v4452_v1, %v4450_v5  ;;  %v802_v47 = vmul.f32 %v10403_v3, %v10835_v6  ;;  %v1534_v59 = vmul.f32 %v10837_v54, %v10403_v3  ;;  %v2998_v15 = vmul.f32 %v10843_v22, %v10403_v3  ;;  %v10849_v1 = vld [vmem:[#allocation39_spill] sm:$0xff]  ;;  %v10862_v41 = vld [vmem:[#allocation32_spill] sm:$0xff] }
 0x215   :  { %v3722_v28 = vrot.slane %v3721_v17, 4  ;;  %v2999_v5 = vmul.f32 %v10848_v26, %v10405_v35  ;;  %v5194_v22 = vmul.f32 %v9950_v51, %v10403_v3  ;;  %v10866_v51 = vld [vmem:[#allocation56_spill] sm:$0xff] }
 0x216   :  { %v4454_v49 = vrot.slane %v4453_v27, 4  ;;  %v809_v12 = vadd.f32 %v802_v47, %v801_v20  ;;  %v1541_v48 = vadd.f32 %v1534_v59, %v1533_v25  ;;  %v3005_v61 = vadd.f32 %v2998_v15, %v2997_v32  ;;  %v10856_v47 = vld [vmem:[#allocation29_spill] sm:$0xff]  ;;  %v10857_v59 = vld [vmem:[#allocation30_spill] sm:$0xff] }
 0x217   :  { %v3723_v62 = vadd.f32 %v3722_v28, %v3721_v17  ;;  %v10431_v52 = vpop.permute.xlu0 %783  ;;  %v3730_v17 = vmul.f32 %v10849_v1, %v10403_v3  ;;  %v10850_v28 = vld [vmem:[#allocation27_spill] sm:$0xff]  ;;  %v3731_v20 = vmul.f32 %v10855_v29, %v10405_v35  ;;  %v3000_v31 = vmul.f32 %v10856_v47, %v10420_v8 }
 0x218   :  { %v4455_v13 = vadd.f32 %v4454_v49, %v4453_v27  ;;  %v810_v9 = vadd.f32 %v809_v12, %v803_v42  ;;  %v1542_v23 = vadd.f32 %v1541_v48, %v1535_v44  ;;  %v2268_v49 = vmul.f32 %v10850_v28, %v10420_v8  ;;  %v10859_v12 = vld [vmem:[#allocation17_spill] sm:$0xff]  ;;  %v10860_v48 = vld [vmem:[#allocation44_spill] sm:$0xff]  ;;  %v10873_v47 = vld [vmem:[#allocation19_spill] sm:$0xff] }
 0x219   :  { %v3724_v45 = vrot.slane %v3723_v62, 2  ;;  %v3737_v6 = vadd.f32 %v3730_v17, %v3729_v46  ;;  %v3006_v25 = vadd.f32 %v3005_v61, %v2999_v5  ;;  %v2269_v16 = vmul.f32 %v10857_v59, %v10431_v52  ;;  %v10865_v46 = vld [vmem:[#allocation54_spill] sm:$0xff]  ;;  %v10867_v61 = vld [vmem:[#allocation20_spill] sm:$0xff]  ;;  %v10875_v59 = vld [vmem:[#allocation21_spill] sm:$0xff] }
 0x21a   :  { %v4456_v34 = vrot.slane %v4455_v13, 2  ;;  %v811_v27 = vadd.f32 %v810_v9, %v804_v60  ;;  %v5193_v44 = vmul.f32 %v9947_v0, %v764_v57  ;;  %v4463_v24 = vmul.f32 %v10860_v48, %v10405_v35  ;;  %v10863_v9 = vld [vmem:[#allocation31_spill] sm:$0xff] }
 0x21b   :  { %v3725_v18 = vadd.f32 %v3724_v45, %v3723_v62  ;;  %v3007_v15 = vadd.f32 %v3006_v25, %v3000_v31  ;;  %v3001_v60 = vmul.f32 %v10862_v41, %v10431_v52  ;;  %v5925_v26 = vmul.f32 %v10865_v46, %v764_v57  ;;  %v10874_v31 = vld [vmem:[#allocation4_spill] sm:$0xff]  ;;  %v10878_v48 = vld [vmem:[#allocation47_spill] sm:$0xff]  ;;  %v10883_v46 = vld [vmem:[#allocation49_spill] sm:$0xff] }
 0x21c   :  { %v4457_v10 = vadd.f32 %v4456_v34, %v4455_v13  ;;  %v10851_v13 = vld [vmem:[#allocation14_spill] sm:$0xff]  ;;  %v1543_v34 = vadd.f32 %v1542_v23, %v1536_v19  ;;  %v5195_v5 = vmul.f32 %v10866_v51, %v10405_v35  ;;  %v5201_v28 = vadd.f32 %v5194_v22, %v5193_v44 }
 0x21d   :  { %v3726_v11 = vrot.slane %v3725_v18, 1  ;;  %v805_v45 = vmul.f32 %v10431_v52, %v10851_v13  ;;  %v10864_v19 = vld [vmem:[#allocation18_spill] sm:$0xff]  ;;  %v10869_v13 = vld [vmem:[#allocation45_spill] sm:$0xff]  ;;  %v5927_v25 = vmul.f32 %v10874_v31, %v10405_v35 }
 0x21e   :  { %v4458_v38 = vrot.slane %v4457_v10, 1  ;;  %v10884_v51 = vld [vmem:[#allocation50_spill] sm:$0xff] }
 0x21f   :  { %v3727_v56 = vadd.f32 %v3726_v11, %v3725_v18  ;;  %v10852_v18 = vld [vmem:[#allocation16_spill] sm:$0xff]  ;;  %v10444_v11 = vpop.permute.xlu1 %788  ;;  %v812_v42 = vadd.f32 %v811_v27, %v805_v45  ;;  %v4464_v45 = vmul.f32 %v10869_v13, %v10420_v8 }
 0x220   :  { %v4459_v7 = vadd.f32 %v4458_v38, %v4457_v10  ;;  %v1537_v10 = vmul.f32 %v10852_v18, %v10431_v52  ;;  %v10853_v38 = vld [vmem:[#allocation40_spill] sm:$0xff]  ;;  %v2270_v43 = vmul.f32 %v10863_v9, %v10444_v11 }
 0x221   :  { %v3728_v21 = vadd.f32 %v3727_v56, %v2996_v2  ;;  %v2266_v2 = vmul.f32 %v10840_v14, %v10403_v3  ;;  %v4461_v56 = vmul.f32 %v10853_v38, %v764_v57  ;;  %v1538_v14 = vmul.f32 %v10859_v12, %v10444_v11  ;;  %v10870_v57 = vld [vmem:[#allocation46_spill] sm:$0xff]  ;;  %v10871_v38 = vld [vmem:[#allocation33_spill] sm:$0xff] }
 0x222   :  { %v1544_v4 = vadd.f32 %v1543_v34, %v1537_v10  ;;  %v3733_v10 = vmul.f32 %v10870_v57, %v10431_v52  ;;  %v10887_v57 = vld [vmem:[#allocation12_spill] sm:$0xff] }
 0x223   :  { %v10401_v55 = vadd.f32 %v4459_v7, %v3728_v21  ;;  %v2273_v63 = vadd.f32 %v2266_v2, %v2265_v39  ;;  %v10854_v21 = vld [vmem:[#allocation41_spill] sm:$0xff]  ;;  %v10858_v39 = vld [vmem:[#allocation15_spill] sm:$0xff]  ;;  %v10459_v2 = vpop.permute.xlu0 %793  ;;  %v10479_v27 = vpop.permute.xlu1 %798 }
 0x224   :  { %v4462_v7 = vmul.f32 %v10854_v21, %v10403_v3  ;;  %v806_v37 = vmul.f32 %v10444_v11, %v10858_v39  ;;  %v807_v0 = vmul.f32 %v10459_v2, %v10864_v19  ;;  %v1539_v1 = vmul.f32 %v10867_v61, %v10459_v2  ;;  %v10872_v21 = vld [vmem:[#allocation34_spill] sm:$0xff] }
 0x225   :  { %v2274_v62 = vadd.f32 %v2273_v63, %v2267_v30  ;;  %v3732_v30 = vmul.f32 %v10861_v58, %v10420_v8  ;;  %v3738_v63 = vadd.f32 %v3737_v6, %v3731_v20  ;;  %v1545_v17 = vadd.f32 %v1544_v4, %v1538_v14  ;;  %v10877_v4 = vld [vmem:[#allocation48_spill] sm:$0xff] }
 0x226   :  { %v4469_v32 = vadd.f32 %v4462_v7, %v4461_v56  ;;  %v813_v23 = vadd.f32 %v812_v42, %v806_v37  ;;  %v3002_v56 = vmul.f32 %v10871_v38, %v10444_v11  ;;  %v2271_v7 = vmul.f32 %v10872_v21, %v10459_v2  ;;  %v10876_v42 = vld [vmem:[#allocation57_spill] sm:$0xff]  ;;  %v10888_v38 = vld [vmem:[#allocation52_spill] sm:$0xff] }
 0x227   :  { %v2275_v54 = vadd.f32 %v2274_v62, %v2268_v49  ;;  %v10868_v49 = vld [vmem:[#allocation55_spill] sm:$0xff]  ;;  %v3739_v18 = vadd.f32 %v3738_v63, %v3732_v30  ;;  %v3008_v6 = vadd.f32 %v3007_v15, %v3001_v60  ;;  %v5196_v12 = vmul.f32 %v10876_v42, %v10420_v8 }
 0x228   :  { %v5926_v62 = vmul.f32 %v10868_v49, %v10403_v3  ;;  %v4470_v34 = vadd.f32 %v4469_v32, %v4463_v24  ;;  %v814_v29 = vadd.f32 %v813_v23, %v807_v0  ;;  %v808_v3 = vmul.f32 %v10479_v27, %v10873_v47  ;;  %v10879_v32 = vld [vmem:[#allocation36_spill] sm:$0xff]  ;;  %v10880_v63 = vld [vmem:[#allocation35_spill] sm:$0xff]  ;;  %v10882_v23 = vld [vmem:[#allocation58_spill] sm:$0xff] }
 0x229   :  { %v2276_v53 = vadd.f32 %v2275_v54, %v2269_v16  ;;  %v1546_v54 = vadd.f32 %v1545_v17, %v1539_v1  ;;  %v1540_v16 = vmul.f32 %v10875_v59, %v10479_v27  ;;  %v5202_v14 = vadd.f32 %v5201_v28, %v5195_v5 }
 0x22a   :  { %v5933_v39 = vadd.f32 %v5926_v62, %v5925_v26  ;;  %v4471_v37 = vadd.f32 %v4470_v34, %v4464_v45  ;;  %v4465_v44 = vmul.f32 %v10877_v4, %v10431_v52  ;;  %v3734_v24 = vmul.f32 %v10878_v48, %v10444_v11  ;;  %v10885_v62 = vld [vmem:[#allocation37_spill] sm:$0xff] }
 0x22b   :  { %v2277_v20 = vadd.f32 %v2276_v53, %v2270_v43  ;;  %v3003_v22 = vmul.f32 %v10879_v32, %v10459_v2  ;;  %v3740_v35 = vadd.f32 %v3739_v18, %v3733_v10  ;;  %v3009_v58 = vadd.f32 %v3008_v6, %v3002_v56  ;;  %v10881_v43 = vld [vmem:[#allocation11_spill] sm:$0xff]  ;;  %v10886_v34 = vld [vmem:[#allocation13_spill] sm:$0xff] }
 0x22c   :  { %v815_v30 = vadd.f32 %v814_v29, %v808_v3  ;;  %v2272_v41 = vmul.f32 %v10880_v63, %v10479_v27  ;;  %v1547_v60 = vadd.f32 %v1546_v54, %v1540_v16  ;;  %v5203_v9 = vadd.f32 %v5202_v14, %v5196_v12  ;;  %v10890_v54 = vld [vmem:[#allocation59_spill] sm:$0xff]  ;;  %v10892_v14 = vld [vmem:[#allocation53_spill] sm:$0xff] }
 0x22d   :  { %v2278_v15 = vadd.f32 %v2277_v20, %v2271_v7  ;;  %v5928_v19 = vmul.f32 %v10881_v43, %v10420_v8  ;;  %v5934_v0 = vadd.f32 %v5933_v39, %v5927_v25  ;;  %v5197_v53 = vmul.f32 %v10882_v23, %v10431_v52  ;;  %v10889_v20 = vld [vmem:[#allocation51_spill] sm:$0xff]  ;;  %v10894_v63 = vld [vmem:[#allocation61_spill] sm:$0xff] }
 0x22e   :  { %v4466_v26 = vmul.f32 %v10883_v46, %v10444_v11  ;;  %v3735_v5 = vmul.f32 %v10884_v51, %v10459_v2  ;;  %v3741_v61 = vadd.f32 %v3740_v35, %v3734_v24  ;;  %v4472_v1 = vadd.f32 %v4471_v37, %v4465_v44  ;;  %v10895_v23 = vld [vmem:[#allocation63_spill] sm:$0xff] }
 0x22f   :  { %v3010_v17 = vadd.f32 %v3009_v58, %v3003_v22  ;;  %v816_v28 = vrot.slane %v815_v30, 4  ;;  %v2279_v49 = vadd.f32 %v2278_v15, %v2272_v41  ;;  %v3004_v13 = vmul.f32 %v10885_v62, %v10479_v27  ;;  %v10893_v22 = vld [vmem:[#allocation62_spill] sm:$0xff] }
 0x230   :  { %v1548_v45 = vrot.slane %v1547_v60, 4  ;;  %v5935_v8 = vadd.f32 %v5934_v0, %v5928_v19  ;;  %v5929_v18 = vmul.f32 %v10886_v34, %v10431_v52  ;;  %v5198_v10 = vmul.f32 %v10887_v57, %v10444_v11  ;;  %v10891_v52 = vld [vmem:[#allocation60_spill] sm:$0xff] }
 0x231   :  { %v4467_v56 = vmul.f32 %v10888_v38, %v10459_v2  ;;  %v3742_v21 = vadd.f32 %v3741_v61, %v3735_v5  ;;  %v4473_v7 = vadd.f32 %v4472_v1, %v4466_v26  ;;  %v5204_v29 = vadd.f32 %v5203_v9, %v5197_v53 }
 0x232   :  { %v3736_v6 = vmul.f32 %v10889_v20, %v10479_v27  ;;  %v817_v47 = vadd.f32 %v816_v28, %v815_v30  ;;  %v2280_v3 = vrot.slane %v2279_v49, 4  ;;  %v3011_v31 = vadd.f32 %v3010_v17, %v3004_v13 }
 0x233   :  { %v1549_v25 = vadd.f32 %v1548_v45, %v1547_v60  ;;  %v5930_v59 = vmul.f32 %v10890_v54, %v10444_v11  ;;  %v5199_v16 = vmul.f32 %v10891_v52, %v10459_v2  ;;  %v5936_v39 = vadd.f32 %v5935_v8, %v5929_v18 }
 0x234   :  { %v4474_v37 = vadd.f32 %v4473_v7, %v4467_v56  ;;  %v5205_v42 = vadd.f32 %v5204_v29, %v5198_v10  ;;  %v3743_v12 = vadd.f32 %v3742_v21, %v3736_v6  ;;  %v4468_v4 = vmul.f32 %v10892_v14, %v10479_v27 }
 0x235   :  { %v818_v44 = vrot.slane %v817_v47, 2  ;;  %v2281_v48 = vadd.f32 %v2280_v3, %v2279_v49  ;;  %v3012_v24 = vrot.slane %v3011_v31, 4  ;;  %v1550_v32 = vrot.slane %v1549_v25, 2 }
 0x236   :  { %v5931_v35 = vmul.f32 %v10893_v22, %v10459_v2  ;;  %v5937_v15 = vadd.f32 %v5936_v39, %v5930_v59  ;;  %v5206_v58 = vadd.f32 %v5205_v42, %v5199_v16  ;;  %v3744_v11 = vrot.slane %v3743_v12, 4 }
 0x237   :  { %v4475_v30 = vadd.f32 %v4474_v37, %v4468_v4  ;;  %v5200_v41 = vmul.f32 %v10894_v63, %v10479_v27  ;;  %v819_v60 = vadd.f32 %v818_v44, %v817_v47  ;;  %v2282_v9 = vrot.slane %v2281_v48, 2 }
 0x238   :  { %v3013_v43 = vadd.f32 %v3012_v24, %v3011_v31  ;;  %v1551_v19 = vadd.f32 %v1550_v32, %v1549_v25  ;;  %v5938_v0 = vadd.f32 %v5937_v15, %v5931_v35  ;;  %v5932_v53 = vmul.f32 %v10895_v23, %v10479_v27 }
 0x239   :  { %v3745_v46 = vadd.f32 %v3744_v11, %v3743_v12  ;;  %v4476_v26 = vrot.slane %v4475_v30, 4  ;;  %v5207_v51 = vadd.f32 %v5206_v58, %v5200_v41  ;;  %v820_v5 = vrot.slane %v819_v60, 1 }
 0x23a   :  { %v2283_v2 = vadd.f32 %v2282_v9, %v2281_v48  ;;  %v3014_v61 = vrot.slane %v3013_v43, 2  ;;  %v1552_v1 = vrot.slane %v1551_v19, 1  ;;  %v5939_v17 = vadd.f32 %v5938_v0, %v5932_v53 }
 0x23b   :  { %v3746_v28 = vrot.slane %v3745_v46, 2  ;;  %v4477_v49 = vadd.f32 %v4476_v26, %v4475_v30  ;;  %v5208_v62 = vrot.slane %v5207_v51, 4  ;;  %v821_v13 = vadd.f32 %v820_v5, %v819_v60 }
 0x23c   :  { %v2284_v45 = vrot.slane %v2283_v2, 1  ;;  %v3015_v8 = vadd.f32 %v3014_v61, %v3013_v43  ;;  %v1553_v57 = vadd.f32 %v1552_v1, %v1551_v19  ;;  %v5940_v7 = vrot.slane %v5939_v17, 4 }
 0x23d   :  { %v3747_v47 = vadd.f32 %v3746_v28, %v3745_v46  ;;  %v4478_v3 = vrot.slane %v4477_v49, 2  ;;  %v5209_v31 = vadd.f32 %v5208_v62, %v5207_v51 }
 0x23e   :  { %v3016_v54 = vrot.slane %v3015_v8, 1  ;;  %v2285_v42 = vadd.f32 %v2284_v45, %v2283_v2  ;;  %v5941_v22 = vadd.f32 %v5940_v7, %v5939_v17 }
 0x23f   :  { %v3748_v9 = vrot.slane %v3747_v47, 1  ;;  %v4479_v43 = vadd.f32 %v4478_v3, %v4477_v49  ;;  %v5210_v19 = vrot.slane %v5209_v31, 2 }
 0x240   :  { %v3017_v60 = vadd.f32 %v3016_v54, %v3015_v8  ;;  %v5942_v1 = vrot.slane %v5941_v22, 2 }
 0x241   :  { %v3749_v5 = vadd.f32 %v3748_v9, %v3747_v47  ;;  %v4480_v2 = vrot.slane %v4479_v43, 1  ;;  %v5211_v61 = vadd.f32 %v5210_v19, %v5209_v31 }
 0x269   :  { %v7480_v34 = vpop.f32.mrb[12].mxu0 }
 0x26a   :  { %v7612_v18 = vpop.f32.mrb[12].mxu1  ;;  %v5176_v10 = vadd.f32 %v7480_v34, %v10393_v40  ;;  %v5180_v27 = vmul.f32 %v7480_v34, %v7480_v34  ;;  %v5153_v56 = vpop.f32.mrb[13].mxu0  ;;  %v1554_v40 = vadd.f32 %v1553_v57, %v821_v13  ;;  %v4481_v34 = vadd.f32 %v4480_v2, %v4479_v43 }
 0x26b   :  { %v5912_v38 = vmul.f32 %v7612_v18, %v7612_v18  ;;  %v5885_v21 = vpop.f32.mrb[13].mxu1  ;;  %v5175_v29 = vadd.f32 %v5153_v56, %v10395_v33  ;;  %v5179_v20 = vmul.f32 %v5153_v56, %v5153_v56  ;;  %v5943_v57 = vadd.f32 %v5942_v1, %v5941_v22 }
 0x26c   :  { %v5911_v6 = vmul.f32 %v5885_v21, %v5885_v21  ;;  %v5908_v25 = vadd.f32 %v7612_v18, %v5176_v10  ;;  %v5212_v18 = vrot.slane %v5211_v61, 1 }
 0x26d   :  { %v5183_v59 = vadd.f32 %v5180_v27, %v5179_v20  ;;  %v5907_v52 = vadd.f32 %v5885_v21, %v5175_v29  ;;  %v7483_v39 = vpop.f32.mrb[14].mxu0  ;;  %v5944_v20 = vrot.slane %v5943_v57, 1 }
 0x26e   :  { %v5915_v16 = vadd.f32 %v5912_v38, %v5911_v6  ;;  %v7615_v37 = vpop.f32.mrb[14].mxu1  ;;  %v5948_v12 = vmul.f32 %v5908_v25, %v5908_v25  ;;  %v5178_v14 = vadd.f32 %v7483_v39, %v10397_v50  ;;  %v5165_v4 = vpop.f32.mrb[15].mxu0  ;;  %v5182_v35 = vmul.f32 %v7483_v39, %v7483_v39 }
 0x26f   :  { %v5897_v44 = vpop.f32.mrb[15].mxu1  ;;  %v5947_v33 = vmul.f32 %v5907_v52, %v5907_v52  ;;  %v5177_v48 = vadd.f32 %v5165_v4, %v10399_v36  ;;  %v5181_v24 = vmul.f32 %v5165_v4, %v5165_v4  ;;  %v5914_v58 = vmul.f32 %v7615_v37, %v7615_v37 }
 0x270   :  { %v5913_v32 = vmul.f32 %v5897_v44, %v5897_v44  ;;  %v5910_v15 = vadd.f32 %v7615_v37, %v5178_v14  ;;  %v2286_v50 = vadd.f32 %v2285_v42, %v1554_v40  ;;  %v5213_v3 = vadd.f32 %v5212_v18, %v5211_v61 }
 0x271   :  { %v5951_v11 = vadd.f32 %v5948_v12, %v5947_v33  ;;  %v5184_v30 = vadd.f32 %v5183_v59, %v5181_v24  ;;  %v5909_v63 = vadd.f32 %v5897_v44, %v5177_v48  ;;  %v5945_v39 = vadd.f32 %v5944_v20, %v5943_v57 }
 0x272   :  { %v5916_v41 = vadd.f32 %v5915_v16, %v5913_v32  ;;  %v5950_v46 = vmul.f32 %v5910_v15, %v5910_v15  ;;  %v3018_v28 = vadd.f32 %v3017_v60, %v2286_v50 }
 0x273   :  { %v5185_v0 = vadd.f32 %v5184_v30, %v5182_v35  ;;  %v5949_v53 = vmul.f32 %v5909_v63, %v5909_v63 }
 0x274   :  { %v5917_v23 = vadd.f32 %v5916_v41, %v5914_v58  ;;  %v3750_v27 = vadd.f32 %v3749_v5, %v3018_v28 }
 0x275   :  { %v5186_v36 = vrot.slane %v5185_v0, 4  ;;  %v5952_v51 = vadd.f32 %v5951_v11, %v5949_v53 }
 0x276   :  { %v5918_v26 = vrot.slane %v5917_v23, 4  ;;  %v4482_v47 = vadd.f32 %v4481_v34, %v3750_v27 }
 0x277   :  { %v5187_v17 = vadd.f32 %v5186_v36, %v5185_v0  ;;  %v5953_v13 = vadd.f32 %v5952_v51, %v5950_v46 }
 0x278   :  { %v5919_v62 = vadd.f32 %v5918_v26, %v5917_v23  ;;  %v5214_v52 = vadd.f32 %v5213_v3, %v4482_v47 }
 0x279   :  { %v5188_v45 = vrot.slane %v5187_v17, 2  ;;  %v5954_v49 = vrot.slane %v5953_v13, 4 }
 0x27a   :  { %v5920_v8 = vrot.slane %v5919_v62, 2  ;;  %v5946_v42 = vadd.f32 %v5945_v39, %v5214_v52 }
 0x27b   :  { %v5189_v10 = vadd.f32 %v5188_v45, %v5187_v17  ;;  %v5955_v56 = vadd.f32 %v5954_v49, %v5953_v13 }
 0x27c   :  { %v5921_v38 = vadd.f32 %v5920_v8, %v5919_v62 }
 0x27d   :  { %v5190_v21 = vrot.slane %v5189_v10, 1  ;;  %v5956_v29 = vrot.slane %v5955_v56, 2 }
 0x27e   :  { %v5922_v7 = vrot.slane %v5921_v38, 1 }
 0x27f   :  { %v5191_v6 = vadd.f32 %v5190_v21, %v5189_v10  ;;  %v5957_v31 = vadd.f32 %v5956_v29, %v5955_v56 }
 0x280   :  { %v5923_v54 = vadd.f32 %v5922_v7, %v5921_v38 }
 0x281   :  { %v5192_v25 = vadd.f32 %v5191_v6, %v10401_v55  ;;  %v5958_v59 = vrot.slane %v5957_v31, 1 }
 0x283   :  { %v5924_v16 = vadd.f32 %v5923_v54, %v5192_v25  ;;  %v5959_v37 = vadd.f32 %v5958_v59, %v5957_v31 }
 0x285   :  { %v5960_v40 = vsub.f32 %v5959_v37, %v5924_v16 }
 0x287   :  { %v5961_v12 = vmul.f32 0.5, %v5960_v40 }
 0x289   :  { %v5962_v14 = vadd.f32 %v5961_v12, %v5946_v42 }
 0x28b   :  { %5963 = vst [vmem:[%s10549_s4] sm:$0x1] %v5962_v14 }

</bundles_post_ra>
